<compile_context>
chip_gen: v7x
topology: tpu7x:2x2x1
jax: 0.10.0
libtpu: 0.0.40
codegen_flags: <defaults>
</compile_context>

<pallas_src>
import jax
import jax.numpy as jnp
from jax import lax
from jax.experimental import pallas as pl
from jax.experimental.pallas import tpu as pltpu


def _silu(v):
    return v * jax.nn.sigmoid(v)


# ------------------------------ kernel body ---------------------------------- #

def _make_mbconv_kernel(*, expand, cin, hidden, cout, reduced, k, stride, padding,
                        use_residual, H, W, Ho, Wo, Hp2, Wp2):
    """Fused MBConv body: one batch element per grid step, channel-major layout."""
    C = hidden  # depthwise / SE / projection channel count (== cin when not expanding)

    def body(*refs):
        it = iter(refs)
        x_ref = next(it)                       # (1, cin, H, W)  f32 (NCHW block)
        w_tap_ref = next(it) if expand else None   # (9, hidden, cin)  bf16, BN1 scale folded
        w_dw_ref = next(it)                    # (C, k*k)          f32, BN2 scale folded
        w_se1_ref = next(it)                   # (reduced, C)      bf16
        w_se2_ref = next(it)                   # (C, reduced)      bf16
        w_proj_ref = next(it)                  # (cout, C)         bf16, BN3 scale folded
        bias_ref = next(it)                    # (cmax, 5)         f32 packed biases
        o_ref = next(it)                       # (1, cout, Ho*Wo)
        xp_ref = next(it) if expand else None  # (cin, H+2, W+2)   scratch (expand pad)
        hp_ref = next(it)                      # (C, Hp2, Wp2)     scratch (dw pad)

        x = x_ref[0]                           # (cin, H, W) f32

        # ---- 1) expand: 3x3 / s1 / p1 conv + BN bias + SiLU, channel-major output ----
        if expand:
            # Zero only the 1-px border of the padded-input scratch each step (cheap and
            # correct under any megacore split of the grid), then write the interior.
            xp_ref[:, 0:1, :] = jnp.zeros((cin, 1, W + 2), jnp.float32)
            xp_ref[:, H + 1:H + 2, :] = jnp.zeros((cin, 1, W + 2), jnp.float32)
            xp_ref[:, :, 0:1] = jnp.zeros((cin, H + 2, 1), jnp.float32)
            xp_ref[:, :, W + 1:W + 2] = jnp.zeros((cin, H + 2, 1), jnp.float32)
            xp_ref[:, 1:H + 1, 1:W + 1] = x

            xp = xp_ref[...].astype(jnp.bfloat16)      # bf16 MXU operand
            w_taps = w_tap_ref[...]                    # (9, hidden, cin) bf16
            acc1 = jnp.zeros((hidden, H * W), jnp.float32)
            for t in range(9):                         # 9*cin <= 128: per-tap dots
                kh, kw = divmod(t, 3)
                tap = xp[:, kh:kh + H, kw:kw + W].reshape(cin, H * W)
                acc1 = acc1 + jnp.dot(w_taps[t], tap,
                                      preferred_element_type=jnp.float32)
            h1 = _silu(acc1 + bias_ref[0:hidden, 0:1])  # (hidden, H*W), lane-dense
            hp_interior = h1.reshape(C, H, W)
        else:
            hp_interior = x                             # hidden == cin

        # ---- 2) depthwise k x k conv (stride) + BN bias + SiLU ----
        # Zero-pad into the VMEM scratch: only the border rows/cols, then the interior.
        if padding > 0:
            hp_ref[:, 0:padding, :] = jnp.zeros((C, padding, Wp2), jnp.float32)
            hp_ref[:, :, 0:padding] = jnp.zeros((C, Hp2, padding), jnp.float32)
        if Hp2 - padding - H > 0:
            hp_ref[:, padding + H:Hp2, :] = jnp.zeros(
                (C, Hp2 - padding - H, Wp2), jnp.float32)
        if Wp2 - padding - W > 0:
            hp_ref[:, :, padding + W:Wp2] = jnp.zeros(
                (C, Hp2, Wp2 - padding - W), jnp.float32)
        hp_ref[:, padding:padding + H, padding:padding + W] = hp_interior

        hp = hp_ref[...]
        w_dw = w_dw_ref[...]                            # (C, k*k) f32 (BN2 scale folded)
        acc2 = jnp.zeros((C, Ho, Wo), jnp.float32)
        if stride == 1:
            for t in range(k * k):
                kh, kw = divmod(t, k)
                win = hp[:, kh:kh + Ho, kw:kw + Wo]
                acc2 = acc2 + win * w_dw[:, t:t + 1].reshape(C, 1, 1)
        else:
            # Pre-split into stride^2 phase planes once; taps become contiguous slices.
            hp5 = hp.reshape(C, Hp2 // stride, stride, Wp2 // stride, stride)
            planes = [[hp5[:, :, rh, :, rw] for rw in range(stride)]
                      for rh in range(stride)]
            for t in range(k * k):
                kh, kw = divmod(t, k)
                qh, rh = divmod(kh, stride)
                qw, rw = divmod(kw, stride)
                win = planes[rh][rw][:, qh:qh + Ho, qw:qw + Wo]
                acc2 = acc2 + win * w_dw[:, t:t + 1].reshape(C, 1, 1)
        a2 = _silu(acc2.reshape(C, Ho * Wo) + bias_ref[0:C, 1:2])   # (C, Ho*Wo) lane-dense

        # ---- 3) Squeeze-Excitation gate (pooled = lane-axis reduce; tiny bf16 matmuls) ----
        pooled = jnp.mean(a2, axis=1, keepdims=True)                # (C, 1)
        g = jnp.dot(w_se1_ref[...], pooled.astype(jnp.bfloat16),
                    preferred_element_type=jnp.float32) + bias_ref[0:reduced, 3:4]
        g = _silu(g)
        g = jnp.dot(w_se2_ref[...], g.astype(jnp.bfloat16),
                    preferred_element_type=jnp.float32) + bias_ref[0:C, 4:5]
        gate = jax.nn.sigmoid(g)                                    # (C, 1)

        # ---- 4) gate + 1x1 projection + BN bias (+ residual); direct (cout, HW) store ----
        gated = (a2 * gate).astype(jnp.bfloat16)
        y = jnp.dot(w_proj_ref[...], gated,
                    preferred_element_type=jnp.float32)             # (cout, Ho*Wo)
        y = y + bias_ref[0:cout, 2:3]
        if use_residual:
            y = y + x.reshape(cin, H * W)
        # TODO(synk): stochastic_depth is training-only randomness; identity at inference.
        o_ref[0] = y.astype(o_ref.dtype)

    return body


# --------------------------- pallas_call wrapper ----------------------------- #

def inverted_residual_forward(params, x_nchw, *, cin, cout, kernel, stride,
                              padding, expand_ratio, reduction=4):
    hidden = cin * expand_ratio
    expand = hidden != cin
    use_residual = (cin == cout) and (stride == 1)
    reduced = int(cin / reduction)

    N, _, H, W = x_nchw.shape
    Ho = (H + 2 * padding - kernel) // stride + 1
    Wo = (W + 2 * padding - kernel) // stride + 1

    # Padded depthwise-input extents: cover every tap read, fit the interior, and be a
    # multiple of `stride` so the phase-plane reshape is exact.
    def _pad_ext(sz, out_sz):
        need = max((out_sz - 1) * stride + kernel, sz + padding)
        return stride * (-(-need // stride))
    Hp2 = _pad_ext(H, Ho)
    Wp2 = _pad_ext(W, Wo)
    assert Hp2 >= (Ho - 1) * stride + kernel and Hp2 >= H + padding
    assert Wp2 >= (Wo - 1) * stride + kernel and Wp2 >= W + padding

    x = x_nchw.astype(jnp.float32)     # NCHW fed directly (channel-major in-kernel)

    # --- host-side weight transforms: fold BN scales, transpose for channel-major dots ---
    s2, b2 = params["bn2"]
    s3, b3 = params["bn3"]
    w_dw = (params["w_dw"] * s2.reshape(1, 1, hidden))
    w_dw = w_dw.reshape(kernel * kernel, hidden).T.astype(jnp.float32)        # (C, k*k)
    w_proj = (params["w_proj"] * s3.reshape(1, cout)).T.astype(jnp.bfloat16)  # (cout, C)
    w_se1 = params["w_se1"].T.astype(jnp.bfloat16)                            # (reduced, C)
    w_se2 = params["w_se2"].T.astype(jnp.bfloat16)                            # (C, reduced)

    if expand:
        s1, b1 = params["bn1"]
        w_tap = (params["w_exp"] * s1.reshape(1, 1, 1, hidden))
        w_tap = w_tap.transpose(0, 1, 3, 2).reshape(9, hidden, cin).astype(jnp.bfloat16)

    # Pack all per-channel bias vectors into one constant (fewer tiny inputs / DMAs).
    cmax = max(hidden, cout, reduced)
    bias_pack = jnp.zeros((cmax, 5), jnp.float32)
    if expand:
        bias_pack = bias_pack.at[:hidden, 0].set(b1.reshape(hidden))
    bias_pack = bias_pack.at[:hidden, 1].set(b2.reshape(hidden))
    bias_pack = bias_pack.at[:cout, 2].set(b3.reshape(cout))
    bias_pack = bias_pack.at[:reduced, 3].set(params["b_se1"].reshape(reduced))
    bias_pack = bias_pack.at[:hidden, 4].set(params["b_se2"].reshape(hidden))

    args = [x]
    in_specs = [pl.BlockSpec((1, cin, H, W), lambda b: (b, 0, 0, 0))]

    def add_const(a):
        nd = a.ndim
        args.append(a)
        in_specs.append(pl.BlockSpec(tuple(a.shape), lambda b, _nd=nd: (0,) * _nd))

    if expand:
        add_const(w_tap)
    add_const(w_dw)
    add_const(w_se1)
    add_const(w_se2)
    add_const(w_proj)
    add_const(bias_pack)

    scratch = []
    if expand:
        scratch.append(pltpu.VMEM((cin, H + 2, W + 2), jnp.float32))
    scratch.append(pltpu.VMEM((hidden, Hp2, Wp2), jnp.float32))

    kern = _make_mbconv_kernel(expand=expand, cin=cin, hidden=hidden, cout=cout,
                               reduced=reduced, k=kernel, stride=stride,
                               padding=padding, use_residual=use_residual,
                               H=H, W=W, Ho=Ho, Wo=Wo, Hp2=Hp2, Wp2=Wp2)

    # TODO(synk): for real EfficientNet spatial sizes, add an Ho-tile grid axis (with conv
    # halo) and/or a batch-tile per step so the MXU stays occupied and per-step VMEM fits
    # v7x's 64 MiB; the toy shapes here fit comfortably per step.
    out = pl.pallas_call(
        kern,
        out_shape=jax.ShapeDtypeStruct((N, cout, Ho * Wo), jnp.float32),
        grid=(N,),
        in_specs=in_specs,
        out_specs=pl.BlockSpec((1, cout, Ho * Wo), lambda b: (b, 0, 0)),
        scratch_shapes=scratch,
        compiler_params=pltpu.CompilerParams(
            dimension_semantics=("parallel",),
            vmem_limit_bytes=32 * 1024 * 1024),
    )(*args)

    # Channel-major output is already NCHW; the reshape is free.
    return out.reshape(N, cout, Ho, Wo)


# ------------------------------ parameters ----------------------------------- #

def init_params(key, cin, cout, kernel, expand_ratio, reduction=4):
    hidden = cin * expand_ratio
    reduced = int(cin / reduction)
    ks = jax.random.split(key, 10)

    def nrm(k, shape, s=0.1):
        return (jax.random.normal(k, shape, jnp.float32) * s).astype(jnp.float32)

    def bn(k, c):
        k1, k2, k3, k4 = jax.random.split(k, 4)
        gamma = 1.0 + 0.1 * jax.random.normal(k1, (c,), jnp.float32)
        beta = 0.1 * jax.random.normal(k2, (c,), jnp.float32)
        mean = 0.1 * jax.random.normal(k3, (c,), jnp.float32)
        var = jax.random.uniform(k4, (c,), jnp.float32, 0.5, 1.5)
        scale = gamma / jnp.sqrt(var + 1e-5)
        bias = beta - mean * scale
        return (scale.reshape(1, c).astype(jnp.float32),
                bias.reshape(1, c).astype(jnp.float32))

    p = {}
    if hidden != cin:
        p["w_exp"] = nrm(ks[0], (3, 3, cin, hidden))            # HWIO
        p["bn1"] = bn(ks[1], hidden)
    p["w_dw"] = nrm(ks[2], (kernel, kernel, hidden))            # depthwise HWC
    p["bn2"] = bn(ks[3], hidden)
    p["w_se1"] = nrm(ks[4], (hidden, reduced))
    p["b_se1"] = nrm(ks[5], (1, reduced))
    p["w_se2"] = nrm(ks[6], (reduced, hidden))
    p["b_se2"] = nrm(ks[7], (1, hidden))
    p["w_proj"] = nrm(ks[8], (hidden, cout))                    # 1x1 conv
    p["bn3"] = bn(ks[9], cout)
    return p


# -------------------------- pure-JAX reference ------------------------------- #

def reference_forward(params, x_nchw, *, cin, cout, kernel, stride, padding,
                      expand_ratio):
    hidden = cin * expand_ratio
    dn = ("NHWC", "HWIO", "NHWC")
    hp = lax.Precision.HIGHEST

    def silu(v):
        return v * jax.nn.sigmoid(v)

    x = jnp.transpose(x_nchw, (0, 2, 3, 1)).astype(jnp.float32)
    inputs = x
    if hidden != cin:
        y = lax.conv_general_dilated(x, params["w_exp"], (1, 1),
                                     [(1, 1), (1, 1)], dimension_numbers=dn,
                                     precision=hp)
        s, b = params["bn1"]
        x = silu(y * s.reshape(1, 1, 1, -1) + b.reshape(1, 1, 1, -1))

    wdw = params["w_dw"].reshape(kernel, kernel, 1, hidden)
    y = lax.conv_general_dilated(x, wdw, (stride, stride),
                                 [(padding, padding), (padding, padding)],
                                 dimension_numbers=dn,
                                 feature_group_count=hidden, precision=hp)
    s, b = params["bn2"]
    x = silu(y * s.reshape(1, 1, 1, -1) + b.reshape(1, 1, 1, -1))

    pooled = jnp.mean(x, axis=(1, 2))
    h = silu(jnp.dot(pooled, params["w_se1"], precision=hp) + params["b_se1"])
    a = jax.nn.sigmoid(jnp.dot(h, params["w_se2"], precision=hp)
                       + params["b_se2"])
    x = x * a[:, None, None, :]

    y = jnp.einsum("nhwc,co->nhwo", x, params["w_proj"], precision=hp)
    s, b = params["bn3"]
    y = y * s.reshape(1, 1, 1, -1) + b.reshape(1, 1, 1, -1)
    if cin == cout and stride == 1:
        y = y + inputs
    return jnp.transpose(y, (0, 3, 1, 2))


# ---------------------------------- main ------------------------------------- #

if __name__ == "__main__":
    cin, cout = 4, 4
    kernel, stride, padding = 3, 1, 1
    expand_ratio = 2                     # hidden_dim = 8, expand branch active
    N, H, W = 2, 16, 16

    key = jax.random.PRNGKey(0)
    pkey, xkey = jax.random.split(key)
    params = init_params(pkey, cin, cout, kernel, expand_ratio, reduction=4)
    x = jax.random.normal(xkey, (N, cin, H, W), jnp.float32)

    out = inverted_residual_forward(params, x, cin=cin, cout=cout,
                                    kernel=kernel, stride=stride,
                                    padding=padding, expand_ratio=expand_ratio,
                                    reduction=4)
    out = jax.block_until_ready(out)
    assert out.shape == (N, cout, H, W), out.shape

    ref = reference_forward(params, x, cin=cin, cout=cout, kernel=kernel,
                            stride=stride, padding=padding,
                            expand_ratio=expand_ratio)
    # bf16 MXU operands (f32 accumulation) vs. the f32-HIGHEST reference: tolerance is
    # loosened accordingly (per the perf-review correctness note).
    err = float(jnp.max(jnp.abs(out - ref)))
    assert err < 5e-2, f"max abs error {err}"
    print("KERNEL_OK")
</pallas_src>

<mosaic_0001>
module attributes {stable_mosaic.version = 11 : i64} {
  func.func @body(%arg0: i32, %arg1: memref<1x4x16x16xf32, #tpu.memory_space<vmem>>, %arg2: memref<9x8x4xbf16, #tpu.memory_space<vmem>>, %arg3: memref<8x9xf32, #tpu.memory_space<vmem>>, %arg4: memref<1x8xbf16, #tpu.memory_space<vmem>>, %arg5: memref<8x1xbf16, #tpu.memory_space<vmem>>, %arg6: memref<4x8xbf16, #tpu.memory_space<vmem>>, %arg7: memref<8x5xf32, #tpu.memory_space<vmem>>, %arg8: memref<1x4x256xf32, #tpu.memory_space<vmem>>, %arg9: memref<4x18x18xf32, #tpu.memory_space<vmem>>, %arg10: memref<8x18x18xf32, #tpu.memory_space<vmem>>) attributes {dimension_semantics = [#tpu.dimension_semantics<parallel>], iteration_bounds = array<i64: 2>, scalar_prefetch = 0 : i64, scratch_operands = 2 : i64, tpu.core_type = #tpu.core_type<tc>, window_params = [{transform_indices = @transform_0, window_bounds = array<i64: 1, 4, 16, 16>}, {pipeline_mode = #tpu.pipeline_mode<synchronous>, transform_indices = @transform_1, window_bounds = array<i64: 9, 8, 4>}, {pipeline_mode = #tpu.pipeline_mode<synchronous>, transform_indices = @transform_2, window_bounds = array<i64: 8, 9>}, {pipeline_mode = #tpu.pipeline_mode<synchronous>, transform_indices = @transform_3, window_bounds = array<i64: 1, 8>}, {pipeline_mode = #tpu.pipeline_mode<synchronous>, transform_indices = @transform_4, window_bounds = array<i64: 8, 1>}, {pipeline_mode = #tpu.pipeline_mode<synchronous>, transform_indices = @transform_5, window_bounds = array<i64: 4, 8>}, {pipeline_mode = #tpu.pipeline_mode<synchronous>, transform_indices = @transform_6, window_bounds = array<i64: 8, 5>}, {transform_indices = @transform_7, window_bounds = array<i64: 1, 4, 256>}]} {
    %c0 = arith.constant 0 : index
    %c0_0 = arith.constant 0 : index
    %c0_1 = arith.constant 0 : index
    %c0_2 = arith.constant 0 : index
    %0 = vector.load %arg1[%c0, %c0_0, %c0_1, %c0_2] : memref<1x4x16x16xf32, #tpu.memory_space<vmem>>, vector<1x4x16x16xf32>
    %1 = vector.shape_cast %0 : vector<1x4x16x16xf32> to vector<4x16x16xf32>
    %cst = arith.constant 0.000000e+00 : f32
    %2 = vector.broadcast %cst : f32 to vector<4x1x18xf32>
    %c0_3 = arith.constant 0 : index
    %c0_4 = arith.constant 0 : index
    %c0_5 = arith.constant 0 : index
    %3 = vector.load %arg9[%c0_3, %c0_4, %c0_5] : memref<4x18x18xf32, #tpu.memory_space<vmem>>, vector<4x1x18xf32>
    tpu.vector_store %arg9[%c0_3, %c0_4, %c0_5], %2 {strides = array<i32>} : memref<4x18x18xf32, #tpu.memory_space<vmem>>, vector<4x1x18xf32>,
    %cst_6 = arith.constant 0.000000e+00 : f32
    %4 = vector.broadcast %cst_6 : f32 to vector<4x1x18xf32>
    %c0_7 = arith.constant 0 : index
    %c17 = arith.constant 17 : index
    %c0_8 = arith.constant 0 : index
    %5 = vector.load %arg9[%c0_7, %c17, %c0_8] : memref<4x18x18xf32, #tpu.memory_space<vmem>>, vector<4x1x18xf32>
    tpu.vector_store %arg9[%c0_7, %c17, %c0_8], %4 {strides = array<i32>} : memref<4x18x18xf32, #tpu.memory_space<vmem>>, vector<4x1x18xf32>,
    %cst_9 = arith.constant 0.000000e+00 : f32
    %6 = vector.broadcast %cst_9 : f32 to vector<4x18x1xf32>
    %c0_10 = arith.constant 0 : index
    %c0_11 = arith.constant 0 : index
    %c0_12 = arith.constant 0 : index
    %7 = vector.load %arg9[%c0_10, %c0_11, %c0_12] : memref<4x18x18xf32, #tpu.memory_space<vmem>>, vector<4x18x1xf32>
    tpu.vector_store %arg9[%c0_10, %c0_11, %c0_12], %6 {strides = array<i32>} : memref<4x18x18xf32, #tpu.memory_space<vmem>>, vector<4x18x1xf32>,
    %cst_13 = arith.constant 0.000000e+00 : f32
    %8 = vector.broadcast %cst_13 : f32 to vector<4x18x1xf32>
    %c0_14 = arith.constant 0 : index
    %c0_15 = arith.constant 0 : index
    %c17_16 = arith.constant 17 : index
    %9 = vector.load %arg9[%c0_14, %c0_15, %c17_16] : memref<4x18x18xf32, #tpu.memory_space<vmem>>, vector<4x18x1xf32>
    tpu.vector_store %arg9[%c0_14, %c0_15, %c17_16], %8 {strides = array<i32>} : memref<4x18x18xf32, #tpu.memory_space<vmem>>, vector<4x18x1xf32>,
    %c0_17 = arith.constant 0 : index
    %c1 = arith.constant 1 : index
    %c1_18 = arith.constant 1 : index
    %10 = vector.load %arg9[%c0_17, %c1, %c1_18] : memref<4x18x18xf32, #tpu.memory_space<vmem>>, vector<4x16x16xf32>
    tpu.vector_store %arg9[%c0_17, %c1, %c1_18], %1 {strides = array<i32>} : memref<4x18x18xf32, #tpu.memory_space<vmem>>, vector<4x16x16xf32>,
    %c0_19 = arith.constant 0 : index
    %c0_20 = arith.constant 0 : index
    %c0_21 = arith.constant 0 : index
    %11 = vector.load %arg9[%c0_19, %c0_20, %c0_21] : memref<4x18x18xf32, #tpu.memory_space<vmem>>, vector<4x18x18xf32>
    %12 = arith.truncf %11 : vector<4x18x18xf32> to vector<4x18x18xbf16>
    %c0_22 = arith.constant 0 : index
    %c0_23 = arith.constant 0 : index
    %c0_24 = arith.constant 0 : index
    %13 = vector.load %arg2[%c0_22, %c0_23, %c0_24] : memref<9x8x4xbf16, #tpu.memory_space<vmem>>, vector<9x8x4xbf16>
    %cst_25 = arith.constant 0.000000e+00 : f32
    %14 = vector.broadcast %cst_25 : f32 to vector<8x256xf32>
    %15 = vector.extract_strided_slice %12 {offsets = [0, 0, 0], sizes = [4, 16, 16], strides = [1, 1, 1]} : vector<4x18x18xbf16> to vector<4x16x16xbf16>
    %16 = vector.shape_cast %15 : vector<4x16x16xbf16> to vector<4x256xbf16>
    %17 = vector.extract_strided_slice %13 {offsets = [0, 0, 0], sizes = [1, 8, 4], strides = [1, 1, 1]} : vector<9x8x4xbf16> to vector<1x8x4xbf16>
    %18 = vector.shape_cast %17 : vector<1x8x4xbf16> to vector<8x4xbf16>
    %cst_26 = arith.constant dense<0.000000e+00> : vector<8x256xf32>
    %19 = tpu.matmul %18, %16, %cst_26 {dimension_numbers = #tpu.dot_dimension_numbers<[1], [0], [0], [1], [0, 0, 1, 1], [], []>} : vector<8x4xbf16>, vector<4x256xbf16>, vector<8x256xf32> -> vector<8x256xf32>
    %20 = arith.addf %14, %19 : vector<8x256xf32>
    %21 = vector.extract_strided_slice %12 {offsets = [0, 0, 1], sizes = [4, 16, 16], strides = [1, 1, 1]} : vector<4x18x18xbf16> to vector<4x16x16xbf16>
    %22 = vector.shape_cast %21 : vector<4x16x16xbf16> to vector<4x256xbf16>
    %23 = vector.extract_strided_slice %13 {offsets = [1, 0, 0], sizes = [1, 8, 4], strides = [1, 1, 1]} : vector<9x8x4xbf16> to vector<1x8x4xbf16>
    %24 = vector.shape_cast %23 : vector<1x8x4xbf16> to vector<8x4xbf16>
    %cst_27 = arith.constant dense<0.000000e+00> : vector<8x256xf32>
    %25 = tpu.matmul %24, %22, %cst_27 {dimension_numbers = #tpu.dot_dimension_numbers<[1], [0], [0], [1], [0, 0, 1, 1], [], []>} : vector<8x4xbf16>, vector<4x256xbf16>, vector<8x256xf32> -> vector<8x256xf32>
    %26 = arith.addf %20, %25 : vector<8x256xf32>
    %27 = vector.extract_strided_slice %12 {offsets = [0, 0, 2], sizes = [4, 16, 16], strides = [1, 1, 1]} : vector<4x18x18xbf16> to vector<4x16x16xbf16>
    %28 = vector.shape_cast %27 : vector<4x16x16xbf16> to vector<4x256xbf16>
    %29 = vector.extract_strided_slice %13 {offsets = [2, 0, 0], sizes = [1, 8, 4], strides = [1, 1, 1]} : vector<9x8x4xbf16> to vector<1x8x4xbf16>
    %30 = vector.shape_cast %29 : vector<1x8x4xbf16> to vector<8x4xbf16>
    %cst_28 = arith.constant dense<0.000000e+00> : vector<8x256xf32>
    %31 = tpu.matmul %30, %28, %cst_28 {dimension_numbers = #tpu.dot_dimension_numbers<[1], [0], [0], [1], [0, 0, 1, 1], [], []>} : vector<8x4xbf16>, vector<4x256xbf16>, vector<8x256xf32> -> vector<8x256xf32>
    %32 = arith.addf %26, %31 : vector<8x256xf32>
    %33 = vector.extract_strided_slice %12 {offsets = [0, 1, 0], sizes = [4, 16, 16], strides = [1, 1, 1]} : vector<4x18x18xbf16> to vector<4x16x16xbf16>
    %34 = vector.shape_cast %33 : vector<4x16x16xbf16> to vector<4x256xbf16>
    %35 = vector.extract_strided_slice %13 {offsets = [3, 0, 0], sizes = [1, 8, 4], strides = [1, 1, 1]} : vector<9x8x4xbf16> to vector<1x8x4xbf16>
    %36 = vector.shape_cast %35 : vector<1x8x4xbf16> to vector<8x4xbf16>
    %cst_29 = arith.constant dense<0.000000e+00> : vector<8x256xf32>
    %37 = tpu.matmul %36, %34, %cst_29 {dimension_numbers = #tpu.dot_dimension_numbers<[1], [0], [0], [1], [0, 0, 1, 1], [], []>} : vector<8x4xbf16>, vector<4x256xbf16>, vector<8x256xf32> -> vector<8x256xf32>
    %38 = arith.addf %32, %37 : vector<8x256xf32>
    %39 = vector.extract_strided_slice %12 {offsets = [0, 1, 1], sizes = [4, 16, 16], strides = [1, 1, 1]} : vector<4x18x18xbf16> to vector<4x16x16xbf16>
    %40 = vector.shape_cast %39 : vector<4x16x16xbf16> to vector<4x256xbf16>
    %41 = vector.extract_strided_slice %13 {offsets = [4, 0, 0], sizes = [1, 8, 4], strides = [1, 1, 1]} : vector<9x8x4xbf16> to vector<1x8x4xbf16>
    %42 = vector.shape_cast %41 : vector<1x8x4xbf16> to vector<8x4xbf16>
    %cst_30 = arith.constant dense<0.000000e+00> : vector<8x256xf32>
    %43 = tpu.matmul %42, %40, %cst_30 {dimension_numbers = #tpu.dot_dimension_numbers<[1], [0], [0], [1], [0, 0, 1, 1], [], []>} : vector<8x4xbf16>, vector<4x256xbf16>, vector<8x256xf32> -> vector<8x256xf32>
    %44 = arith.addf %38, %43 : vector<8x256xf32>
    %45 = vector.extract_strided_slice %12 {offsets = [0, 1, 2], sizes = [4, 16, 16], strides = [1, 1, 1]} : vector<4x18x18xbf16> to vector<4x16x16xbf16>
    %46 = vector.shape_cast %45 : vector<4x16x16xbf16> to vector<4x256xbf16>
    %47 = vector.extract_strided_slice %13 {offsets = [5, 0, 0], sizes = [1, 8, 4], strides = [1, 1, 1]} : vector<9x8x4xbf16> to vector<1x8x4xbf16>
    %48 = vector.shape_cast %47 : vector<1x8x4xbf16> to vector<8x4xbf16>
    %cst_31 = arith.constant dense<0.000000e+00> : vector<8x256xf32>
    %49 = tpu.matmul %48, %46, %cst_31 {dimension_numbers = #tpu.dot_dimension_numbers<[1], [0], [0], [1], [0, 0, 1, 1], [], []>} : vector<8x4xbf16>, vector<4x256xbf16>, vector<8x256xf32> -> vector<8x256xf32>
    %50 = arith.addf %44, %49 : vector<8x256xf32>
    %51 = vector.extract_strided_slice %12 {offsets = [0, 2, 0], sizes = [4, 16, 16], strides = [1, 1, 1]} : vector<4x18x18xbf16> to vector<4x16x16xbf16>
    %52 = vector.shape_cast %51 : vector<4x16x16xbf16> to vector<4x256xbf16>
    %53 = vector.extract_strided_slice %13 {offsets = [6, 0, 0], sizes = [1, 8, 4], strides = [1, 1, 1]} : vector<9x8x4xbf16> to vector<1x8x4xbf16>
    %54 = vector.shape_cast %53 : vector<1x8x4xbf16> to vector<8x4xbf16>
    %cst_32 = arith.constant dense<0.000000e+00> : vector<8x256xf32>
    %55 = tpu.matmul %54, %52, %cst_32 {dimension_numbers = #tpu.dot_dimension_numbers<[1], [0], [0], [1], [0, 0, 1, 1], [], []>} : vector<8x4xbf16>, vector<4x256xbf16>, vector<8x256xf32> -> vector<8x256xf32>
    %56 = arith.addf %50, %55 : vector<8x256xf32>
    %57 = vector.extract_strided_slice %12 {offsets = [0, 2, 1], sizes = [4, 16, 16], strides = [1, 1, 1]} : vector<4x18x18xbf16> to vector<4x16x16xbf16>
    %58 = vector.shape_cast %57 : vector<4x16x16xbf16> to vector<4x256xbf16>
    %59 = vector.extract_strided_slice %13 {offsets = [7, 0, 0], sizes = [1, 8, 4], strides = [1, 1, 1]} : vector<9x8x4xbf16> to vector<1x8x4xbf16>
    %60 = vector.shape_cast %59 : vector<1x8x4xbf16> to vector<8x4xbf16>
    %cst_33 = arith.constant dense<0.000000e+00> : vector<8x256xf32>
    %61 = tpu.matmul %60, %58, %cst_33 {dimension_numbers = #tpu.dot_dimension_numbers<[1], [0], [0], [1], [0, 0, 1, 1], [], []>} : vector<8x4xbf16>, vector<4x256xbf16>, vector<8x256xf32> -> vector<8x256xf32>
    %62 = arith.addf %56, %61 : vector<8x256xf32>
    %63 = vector.extract_strided_slice %12 {offsets = [0, 2, 2], sizes = [4, 16, 16], strides = [1, 1, 1]} : vector<4x18x18xbf16> to vector<4x16x16xbf16>
    %64 = vector.shape_cast %63 : vector<4x16x16xbf16> to vector<4x256xbf16>
    %65 = vector.extract_strided_slice %13 {offsets = [8, 0, 0], sizes = [1, 8, 4], strides = [1, 1, 1]} : vector<9x8x4xbf16> to vector<1x8x4xbf16>
    %66 = vector.shape_cast %65 : vector<1x8x4xbf16> to vector<8x4xbf16>
    %cst_34 = arith.constant dense<0.000000e+00> : vector<8x256xf32>
    %67 = tpu.matmul %66, %64, %cst_34 {dimension_numbers = #tpu.dot_dimension_numbers<[1], [0], [0], [1], [0, 0, 1, 1], [], []>} : vector<8x4xbf16>, vector<4x256xbf16>, vector<8x256xf32> -> vector<8x256xf32>
    %68 = arith.addf %62, %67 : vector<8x256xf32>
    %c0_35 = arith.constant 0 : index
    %c0_36 = arith.constant 0 : index
    %69 = vector.load %arg7[%c0_35, %c0_36] : memref<8x5xf32, #tpu.memory_space<vmem>>, vector<8x1xf32>
    %70 = vector.broadcast %69 : vector<8x1xf32> to vector<8x256xf32>
    %71 = arith.addf %68, %70 : vector<8x256xf32>
    %72 = arith.negf %71 : vector<8x256xf32>
    %73 = math.exp %72 : vector<8x256xf32>
    %cst_37 = arith.constant 1.000000e+00 : f32
    %74 = vector.broadcast %cst_37 : f32 to vector<8x256xf32>
    %75 = arith.addf %74, %73 : vector<8x256xf32>
    %76 = arith.divf %74, %75 : vector<8x256xf32>
    %77 = arith.mulf %71, %76 : vector<8x256xf32>
    %78 = vector.shape_cast %77 : vector<8x256xf32> to vector<8x16x16xf32>
    %cst_38 = arith.constant 0.000000e+00 : f32
    %79 = vector.broadcast %cst_38 : f32 to vector<8x1x18xf32>
    %c0_39 = arith.constant 0 : index
    %c0_40 = arith.constant 0 : index
    %c0_41 = arith.constant 0 : index
    %80 = vector.load %arg10[%c0_39, %c0_40, %c0_41] : memref<8x18x18xf32, #tpu.memory_space<vmem>>, vector<8x1x18xf32>
    tpu.vector_store %arg10[%c0_39, %c0_40, %c0_41], %79 {strides = array<i32>} : memref<8x18x18xf32, #tpu.memory_space<vmem>>, vector<8x1x18xf32>,
    %cst_42 = arith.constant 0.000000e+00 : f32
    %81 = vector.broadcast %cst_42 : f32 to vector<8x18x1xf32>
    %c0_43 = arith.constant 0 : index
    %c0_44 = arith.constant 0 : index
    %c0_45 = arith.constant 0 : index
    %82 = vector.load %arg10[%c0_43, %c0_44, %c0_45] : memref<8x18x18xf32, #tpu.memory_space<vmem>>, vector<8x18x1xf32>
    tpu.vector_store %arg10[%c0_43, %c0_44, %c0_45], %81 {strides = array<i32>} : memref<8x18x18xf32, #tpu.memory_space<vmem>>, vector<8x18x1xf32>,
    %cst_46 = arith.constant 0.000000e+00 : f32
    %83 = vector.broadcast %cst_46 : f32 to vector<8x1x18xf32>
    %c0_47 = arith.constant 0 : index
    %c17_48 = arith.constant 17 : index
    %c0_49 = arith.constant 0 : index
    %84 = vector.load %arg10[%c0_47, %c17_48, %c0_49] : memref<8x18x18xf32, #tpu.memory_space<vmem>>, vector<8x1x18xf32>
    tpu.vector_store %arg10[%c0_47, %c17_48, %c0_49], %83 {strides = array<i32>} : memref<8x18x18xf32, #tpu.memory_space<vmem>>, vector<8x1x18xf32>,
    %cst_50 = arith.constant 0.000000e+00 : f32
    %85 = vector.broadcast %cst_50 : f32 to vector<8x18x1xf32>
    %c0_51 = arith.constant 0 : index
    %c0_52 = arith.constant 0 : index
    %c17_53 = arith.constant 17 : index
    %86 = vector.load %arg10[%c0_51, %c0_52, %c17_53] : memref<8x18x18xf32, #tpu.memory_space<vmem>>, vector<8x18x1xf32>
    tpu.vector_store %arg10[%c0_51, %c0_52, %c17_53], %85 {strides = array<i32>} : memref<8x18x18xf32, #tpu.memory_space<vmem>>, vector<8x18x1xf32>,
    %c0_54 = arith.constant 0 : index
    %c1_55 = arith.constant 1 : index
    %c1_56 = arith.constant 1 : index
    %87 = vector.load %arg10[%c0_54, %c1_55, %c1_56] : memref<8x18x18xf32, #tpu.memory_space<vmem>>, vector<8x16x16xf32>
    tpu.vector_store %arg10[%c0_54, %c1_55, %c1_56], %78 {strides = array<i32>} : memref<8x18x18xf32, #tpu.memory_space<vmem>>, vector<8x16x16xf32>,
    %c0_57 = arith.constant 0 : index
    %c0_58 = arith.constant 0 : index
    %c0_59 = arith.constant 0 : index
    %88 = vector.load %arg10[%c0_57, %c0_58, %c0_59] : memref<8x18x18xf32, #tpu.memory_space<vmem>>, vector<8x18x18xf32>
    %c0_60 = arith.constant 0 : index
    %c0_61 = arith.constant 0 : index
    %89 = vector.load %arg3[%c0_60, %c0_61] : memref<8x9xf32, #tpu.memory_space<vmem>>, vector<8x9xf32>
    %cst_62 = arith.constant 0.000000e+00 : f32
    %90 = vector.broadcast %cst_62 : f32 to vector<8x16x16xf32>
    %91 = vector.extract_strided_slice %88 {offsets = [0, 0, 0], sizes = [8, 16, 16], strides = [1, 1, 1]} : vector<8x18x18xf32> to vector<8x16x16xf32>
    %92 = vector.extract_strided_slice %89 {offsets = [0, 0], sizes = [8, 1], strides = [1, 1]} : vector<8x9xf32> to vector<8x1xf32>
    %93 = vector.shape_cast %92 : vector<8x1xf32> to vector<8x1x1xf32>
    %94 = vector.broadcast %93 : vector<8x1x1xf32> to vector<8x16x16xf32>
    %95 = arith.mulf %91, %94 : vector<8x16x16xf32>
    %96 = arith.addf %90, %95 : vector<8x16x16xf32>
    %97 = vector.extract_strided_slice %88 {offsets = [0, 0, 1], sizes = [8, 16, 16], strides = [1, 1, 1]} : vector<8x18x18xf32> to vector<8x16x16xf32>
    %98 = vector.extract_strided_slice %89 {offsets = [0, 1], sizes = [8, 1], strides = [1, 1]} : vector<8x9xf32> to vector<8x1xf32>
    %99 = vector.shape_cast %98 : vector<8x1xf32> to vector<8x1x1xf32>
    %100 = vector.broadcast %99 : vector<8x1x1xf32> to vector<8x16x16xf32>
    %101 = arith.mulf %97, %100 : vector<8x16x16xf32>
    %102 = arith.addf %96, %101 : vector<8x16x16xf32>
    %103 = vector.extract_strided_slice %88 {offsets = [0, 0, 2], sizes = [8, 16, 16], strides = [1, 1, 1]} : vector<8x18x18xf32> to vector<8x16x16xf32>
    %104 = vector.extract_strided_slice %89 {offsets = [0, 2], sizes = [8, 1], strides = [1, 1]} : vector<8x9xf32> to vector<8x1xf32>
    %105 = vector.shape_cast %104 : vector<8x1xf32> to vector<8x1x1xf32>
    %106 = vector.broadcast %105 : vector<8x1x1xf32> to vector<8x16x16xf32>
    %107 = arith.mulf %103, %106 : vector<8x16x16xf32>
    %108 = arith.addf %102, %107 : vector<8x16x16xf32>
    %109 = vector.extract_strided_slice %88 {offsets = [0, 1, 0], sizes = [8, 16, 16], strides = [1, 1, 1]} : vector<8x18x18xf32> to vector<8x16x16xf32>
    %110 = vector.extract_strided_slice %89 {offsets = [0, 3], sizes = [8, 1], strides = [1, 1]} : vector<8x9xf32> to vector<8x1xf32>
    %111 = vector.shape_cast %110 : vector<8x1xf32> to vector<8x1x1xf32>
    %112 = vector.broadcast %111 : vector<8x1x1xf32> to vector<8x16x16xf32>
    %113 = arith.mulf %109, %112 : vector<8x16x16xf32>
    %114 = arith.addf %108, %113 : vector<8x16x16xf32>
    %115 = vector.extract_strided_slice %88 {offsets = [0, 1, 1], sizes = [8, 16, 16], strides = [1, 1, 1]} : vector<8x18x18xf32> to vector<8x16x16xf32>
    %116 = vector.extract_strided_slice %89 {offsets = [0, 4], sizes = [8, 1], strides = [1, 1]} : vector<8x9xf32> to vector<8x1xf32>
    %117 = vector.shape_cast %116 : vector<8x1xf32> to vector<8x1x1xf32>
    %118 = vector.broadcast %117 : vector<8x1x1xf32> to vector<8x16x16xf32>
    %119 = arith.mulf %115, %118 : vector<8x16x16xf32>
    %120 = arith.addf %114, %119 : vector<8x16x16xf32>
    %121 = vector.extract_strided_slice %88 {offsets = [0, 1, 2], sizes = [8, 16, 16], strides = [1, 1, 1]} : vector<8x18x18xf32> to vector<8x16x16xf32>
    %122 = vector.extract_strided_slice %89 {offsets = [0, 5], sizes = [8, 1], strides = [1, 1]} : vector<8x9xf32> to vector<8x1xf32>
    %123 = vector.shape_cast %122 : vector<8x1xf32> to vector<8x1x1xf32>
    %124 = vector.broadcast %123 : vector<8x1x1xf32> to vector<8x16x16xf32>
    %125 = arith.mulf %121, %124 : vector<8x16x16xf32>
    %126 = arith.addf %120, %125 : vector<8x16x16xf32>
    %127 = vector.extract_strided_slice %88 {offsets = [0, 2, 0], sizes = [8, 16, 16], strides = [1, 1, 1]} : vector<8x18x18xf32> to vector<8x16x16xf32>
    %128 = vector.extract_strided_slice %89 {offsets = [0, 6], sizes = [8, 1], strides = [1, 1]} : vector<8x9xf32> to vector<8x1xf32>
    %129 = vector.shape_cast %128 : vector<8x1xf32> to vector<8x1x1xf32>
    %130 = vector.broadcast %129 : vector<8x1x1xf32> to vector<8x16x16xf32>
    %131 = arith.mulf %127, %130 : vector<8x16x16xf32>
    %132 = arith.addf %126, %131 : vector<8x16x16xf32>
    %133 = vector.extract_strided_slice %88 {offsets = [0, 2, 1], sizes = [8, 16, 16], strides = [1, 1, 1]} : vector<8x18x18xf32> to vector<8x16x16xf32>
    %134 = vector.extract_strided_slice %89 {offsets = [0, 7], sizes = [8, 1], strides = [1, 1]} : vector<8x9xf32> to vector<8x1xf32>
    %135 = vector.shape_cast %134 : vector<8x1xf32> to vector<8x1x1xf32>
    %136 = vector.broadcast %135 : vector<8x1x1xf32> to vector<8x16x16xf32>
    %137 = arith.mulf %133, %136 : vector<8x16x16xf32>
    %138 = arith.addf %132, %137 : vector<8x16x16xf32>
    %139 = vector.extract_strided_slice %88 {offsets = [0, 2, 2], sizes = [8, 16, 16], strides = [1, 1, 1]} : vector<8x18x18xf32> to vector<8x16x16xf32>
    %140 = vector.extract_strided_slice %89 {offsets = [0, 8], sizes = [8, 1], strides = [1, 1]} : vector<8x9xf32> to vector<8x1xf32>
    %141 = vector.shape_cast %140 : vector<8x1xf32> to vector<8x1x1xf32>
    %142 = vector.broadcast %141 : vector<8x1x1xf32> to vector<8x16x16xf32>
    %143 = arith.mulf %139, %142 : vector<8x16x16xf32>
    %144 = arith.addf %138, %143 : vector<8x16x16xf32>
    %145 = vector.shape_cast %144 : vector<8x16x16xf32> to vector<8x256xf32>
    %c0_63 = arith.constant 0 : index
    %c1_64 = arith.constant 1 : index
    %146 = vector.load %arg7[%c0_63, %c1_64] : memref<8x5xf32, #tpu.memory_space<vmem>>, vector<8x1xf32>
    %147 = vector.broadcast %146 : vector<8x1xf32> to vector<8x256xf32>
    %148 = arith.addf %145, %147 : vector<8x256xf32>
    %149 = arith.negf %148 : vector<8x256xf32>
    %150 = math.exp %149 : vector<8x256xf32>
    %cst_65 = arith.constant 1.000000e+00 : f32
    %151 = vector.broadcast %cst_65 : f32 to vector<8x256xf32>
    %152 = arith.addf %151, %150 : vector<8x256xf32>
    %153 = arith.divf %151, %152 : vector<8x256xf32>
    %154 = arith.mulf %148, %153 : vector<8x256xf32>
    %cst_66 = arith.constant dense<0.000000e+00> : vector<8xf32>
    %155 = vector.multi_reduction <add>, %154, %cst_66 [1] : vector<8x256xf32> to vector<8xf32>
    %156 = vector.shape_cast %155 : vector<8xf32> to vector<8x1xf32>
    %cst_67 = arith.constant 2.560000e+02 : f32
    %157 = vector.broadcast %cst_67 : f32 to vector<8x1xf32>
    %158 = arith.divf %156, %157 : vector<8x1xf32>
    %c0_68 = arith.constant 0 : index
    %c0_69 = arith.constant 0 : index
    %159 = vector.load %arg4[%c0_68, %c0_69] : memref<1x8xbf16, #tpu.memory_space<vmem>>, vector<1x8xbf16>
    %160 = arith.truncf %158 : vector<8x1xf32> to vector<8x1xbf16>
    %cst_70 = arith.constant dense<0.000000e+00> : vector<1x1xf32>
    %161 = tpu.matmul %159, %160, %cst_70 {dimension_numbers = #tpu.dot_dimension_numbers<[1], [0], [0], [1], [0, 0, 1, 1], [], []>} : vector<1x8xbf16>, vector<8x1xbf16>, vector<1x1xf32> -> vector<1x1xf32>
    %c0_71 = arith.constant 0 : index
    %c3 = arith.constant 3 : index
    %162 = vector.load %arg7[%c0_71, %c3] : memref<8x5xf32, #tpu.memory_space<vmem>>, vector<1x1xf32>
    %163 = arith.addf %161, %162 : vector<1x1xf32>
    %164 = arith.negf %163 : vector<1x1xf32>
    %165 = math.exp %164 : vector<1x1xf32>
    %cst_72 = arith.constant 1.000000e+00 : f32
    %166 = vector.broadcast %cst_72 : f32 to vector<1x1xf32>
    %167 = arith.addf %166, %165 : vector<1x1xf32>
    %168 = arith.divf %166, %167 : vector<1x1xf32>
    %169 = arith.mulf %163, %168 : vector<1x1xf32>
    %c0_73 = arith.constant 0 : index
    %c0_74 = arith.constant 0 : index
    %170 = vector.load %arg5[%c0_73, %c0_74] : memref<8x1xbf16, #tpu.memory_space<vmem>>, vector<8x1xbf16>
    %171 = arith.truncf %169 : vector<1x1xf32> to vector<1x1xbf16>
    %cst_75 = arith.constant dense<0.000000e+00> : vector<8x1xf32>
    %172 = tpu.matmul %170, %171, %cst_75 {dimension_numbers = #tpu.dot_dimension_numbers<[1], [0], [0], [1], [0, 0, 1, 1], [], []>} : vector<8x1xbf16>, vector<1x1xbf16>, vector<8x1xf32> -> vector<8x1xf32>
    %c0_76 = arith.constant 0 : index
    %c4 = arith.constant 4 : index
    %173 = vector.load %arg7[%c0_76, %c4] : memref<8x5xf32, #tpu.memory_space<vmem>>, vector<8x1xf32>
    %174 = arith.addf %172, %173 : vector<8x1xf32>
    %175 = arith.negf %174 : vector<8x1xf32>
    %176 = math.exp %175 : vector<8x1xf32>
    %cst_77 = arith.constant 1.000000e+00 : f32
    %177 = vector.broadcast %cst_77 : f32 to vector<8x1xf32>
    %178 = arith.addf %177, %176 : vector<8x1xf32>
    %179 = arith.divf %177, %178 : vector<8x1xf32>
    %180 = vector.broadcast %179 : vector<8x1xf32> to vector<8x256xf32>
    %181 = arith.mulf %154, %180 : vector<8x256xf32>
    %182 = arith.truncf %181 : vector<8x256xf32> to vector<8x256xbf16>
    %c0_78 = arith.constant 0 : index
    %c0_79 = arith.constant 0 : index
    %183 = vector.load %arg6[%c0_78, %c0_79] : memref<4x8xbf16, #tpu.memory_space<vmem>>, vector<4x8xbf16>
    %cst_80 = arith.constant dense<0.000000e+00> : vector<4x256xf32>
    %184 = tpu.matmul %183, %182, %cst_80 {dimension_numbers = #tpu.dot_dimension_numbers<[1], [0], [0], [1], [0, 0, 1, 1], [], []>} : vector<4x8xbf16>, vector<8x256xbf16>, vector<4x256xf32> -> vector<4x256xf32>
    %c0_81 = arith.constant 0 : index
    %c2 = arith.constant 2 : index
    %185 = vector.load %arg7[%c0_81, %c2] : memref<8x5xf32, #tpu.memory_space<vmem>>, vector<4x1xf32>
    %186 = vector.broadcast %185 : vector<4x1xf32> to vector<4x256xf32>
    %187 = arith.addf %184, %186 : vector<4x256xf32>
    %188 = vector.shape_cast %1 : vector<4x16x16xf32> to vector<4x256xf32>
    %189 = arith.addf %187, %188 : vector<4x256xf32>
    %c0_82 = arith.constant 0 : index
    %c0_83 = arith.constant 0 : index
    %c0_84 = arith.constant 0 : index
    %190 = vector.load %arg8[%c0_82, %c0_83, %c0_84] : memref<1x4x256xf32, #tpu.memory_space<vmem>>, vector<1x4x256xf32>
    %191 = vector.shape_cast %190 : vector<1x4x256xf32> to vector<4x256xf32>
    %192 = vector.shape_cast %189 : vector<4x256xf32> to vector<1x4x256xf32>
    tpu.vector_store %arg8[%c0_82, %c0_83, %c0_84], %192 {strides = array<i32>} : memref<1x4x256xf32, #tpu.memory_space<vmem>>, vector<1x4x256xf32>,
    return
  }
  func.func @transform_0(%arg0: i32) -> (i32, i32, i32, i32) {
    %c0_i32 = arith.constant 0 : i32
    %c0_i32_0 = arith.constant 0 : i32
    %c0_i32_1 = arith.constant 0 : i32
    %c0_i32_2 = arith.constant 0 : i32
    return %arg0, %c0_i32, %c0_i32_0, %c0_i32_1 : i32, i32, i32, i32
  }
  func.func @transform_1(%arg0: i32) -> (i32, i32, i32) {
    %c0_i32 = arith.constant 0 : i32
    %c0_i32_0 = arith.constant 0 : i32
    %c0_i32_1 = arith.constant 0 : i32
    %c0_i32_2 = arith.constant 0 : i32
    return %c0_i32, %c0_i32_0, %c0_i32_1 : i32, i32, i32
  }
  func.func @transform_2(%arg0: i32) -> (i32, i32) {
    %c0_i32 = arith.constant 0 : i32
    %c0_i32_0 = arith.constant 0 : i32
    %c0_i32_1 = arith.constant 0 : i32
    return %c0_i32, %c0_i32_0 : i32, i32
  }
  func.func @transform_3(%arg0: i32) -> (i32, i32) {
    %c0_i32 = arith.constant 0 : i32
    %c0_i32_0 = arith.constant 0 : i32
    %c0_i32_1 = arith.constant 0 : i32
    return %c0_i32, %c0_i32_0 : i32, i32
  }
  func.func @transform_4(%arg0: i32) -> (i32, i32) {
    %c0_i32 = arith.constant 0 : i32
    %c0_i32_0 = arith.constant 0 : i32
    %c0_i32_1 = arith.constant 0 : i32
    return %c0_i32, %c0_i32_0 : i32, i32
  }
  func.func @transform_5(%arg0: i32) -> (i32, i32) {
    %c0_i32 = arith.constant 0 : i32
    %c0_i32_0 = arith.constant 0 : i32
    %c0_i32_1 = arith.constant 0 : i32
    return %c0_i32, %c0_i32_0 : i32, i32
  }
  func.func @transform_6(%arg0: i32) -> (i32, i32) {
    %c0_i32 = arith.constant 0 : i32
    %c0_i32_0 = arith.constant 0 : i32
    %c0_i32_1 = arith.constant 0 : i32
    return %c0_i32, %c0_i32_0 : i32, i32
  }
  func.func @transform_7(%arg0: i32) -> (i32, i32, i32) {
    %c0_i32 = arith.constant 0 : i32
    %c0_i32_0 = arith.constant 0 : i32
    %c0_i32_1 = arith.constant 0 : i32
    return %arg0, %c0_i32, %c0_i32_0 : i32, i32, i32
  }
}

</mosaic_0001>

<bundles_post_ra>
// kernel: tpu_custom_call.1
= control target key start
LH: loop header
LB: loop body
LE: loop exit
PB: predicated region body
PF: predicated region fallthrough
CT: control target
= control target key end

     0   :  { %12 = vsyncpa [#allocation5], 0  ;;  %s9421_s0 = inlined_call_operand.hbm [shape: f32[2,4,16,16], index: 0, kind: input, shape index: {}]   ;;  %s9422_s1 = inlined_call_operand.vmem [shape: bf16[9,8,4], index: 1, kind: input, shape index: {}]   ;;  %s9423_s2 = inlined_call_operand.vmem [shape: f32[8,9], index: 2, kind: input, shape index: {}]   ;;  %s9424_s3 = inlined_call_operand.vmem [shape: bf16[1,8], index: 3, kind: input, shape index: {}]   ;;  %s9425_s4 = inlined_call_operand.vmem [shape: bf16[8,1], index: 4, kind: input, shape index: {}]   ;;  %s9426_s5 = inlined_call_operand.vmem [shape: bf16[4,8], index: 5, kind: input, shape index: {}]   ;;  %s9427_s6 = inlined_call_operand.vmem [shape: f32[8,5], index: 6, kind: input, shape index: {}]   ;;  %s9428_s7 = inlined_call_operand.hbm [shape: f32[2,4,256], index: 7, kind: output, shape index: {}]  }
   0x1   :  { %14 = vsyncpa [#allocation5 + $0x1], 0 }
   0x2   :  { %15 = vsyncpa [#allocation6], 0 }
   0x3   :  { %17 = vsyncpa [#allocation6 + $0x1], 0  ;;  %s6138_s24 = smov 0   ;;  %s6140_s25 = smov 0  }
   0x4   :  { %s6142_s26 = smov 0   ;;  %s6144_s27 = smov 0  }
   0x5 LB: > { %s6159_s28 = sadd.s32 4294967295, %s6066_s27   ;;  %s5770_s29 = sadd.s32 4294967294, %s6066_s27   ;;  %s6066_s27 = sphi %s6144_s27, %s9755_s27   ;;  %s6062_s26 = sphi %s6142_s26, %s9754_s26   ;;  %s6058_s25 = sphi %s6140_s25, %s9753_s25   ;;  %s6054_s24 = sphi %s6138_s24, %s9752_s24  }
   0x6   : > { %s6163_s30 = sadd.s32 1, %s6066_s27   ;;  %s30_s8 = sadd.s32 1, %s6062_s26 }
   0x7   : > { %s27_s9 = ssub.s32 %s6066_s27, %s6163_s30  ;;  %p37_p0 = scmp.ne.s32.totalorder %s6062_s26, %s6058_s25 }
   0x8   : > { %p28_p1 = scmp.eq.s32.totalorder %s27_s9, 0  ;;  %p38_p2 = scmp.eq.s32.totalorder %s6066_s27, 0 }
   0x9   : > { %p43_p3 = scmp.ne.s32.totalorder %s6058_s25, %s6054_s24  ;;  %p44_p4 = scmp.eq.s32.totalorder %s6159_s28, 0 }
   0xa   : > { %s6175_s10 = scalar_select %p28_p1, %s6062_s26, %s30_s8  }
   0xb   : > { %p6177_p5 = por %p38_p2, %p37_p0  ;;  %p6181_p6 = por %p44_p4, %p43_p3 }
   0xc   : > { %p193_p7 = scmp.eq.s32.totalorder %s6159_s28, 1  ;;  %p199_p8 = scmp.eq.s32.totalorder %s5770_s29, 1 }
   0xd   : > { %p5842_p10 = scmp.lt.s32.totalorder %s6066_s27, 2  ;;  %s237_s15 = sand.u32 1, %s6062_s26  }
   0xe   : > { %p6188_p11 = por %p193_p7, %p37_p0  ;;  %p6192_p12 = por %p199_p8, %p43_p3 }
   0xf   : > { %s5812_s16 = sshll.u32 %s6066_s27, 10  ;;  %s5773_s17 = sshll.u32 %s237_s15, 6 }
  0x10   : > { %s9526_s13 = scalar_select %p6188_p11, 1, 0 }
  0x11   : > { %s9527_s14 = scalar_select %p6192_p12, 1, 0 }
  0x12   : > { %s6201_s20 = scalar_lea.hbm %s9421_s0, %s5812_s16  ;;  %s241_s21 = scalar_lea.vmem [#allocation4], %s5773_s17 }
  0x13   : > { %s248_s22 = sshll.u32 %s241_s21, 4  ;;  %p6205_p13 = pnand %p5842_p10, %p6177_p5  ;;  %s6209_s22 = int_to_ptr.vmem [resolvable:$true] %s248_s22 }
  0x14   : > { %s6211_s29 = scalar_lea.sflag [#allocation5], %s237_s15  ;;  %s5970_s8 = scalar_lea.hbm %s6201_s20, 1024 }
  0x15   : > { %p5971_p0 = scmp.ne.s32.totalorder %s6201_s20, %s5970_s8  ;;  %p5972_p1 = pneg %p6205_p13 }
  0x16   : > { %s5975_s16 = scalar_lea.hbm %s9421_s0, 2048  ;;  %p5976_p4 = scmp.lt.u32.totalorder %s6201_s20, %s9421_s0 }
  0x17   : > { %p5973_p2 = pnand %p5972_p1, %p5971_p0  ;;  %p5977_p5 = scmp.lt.u32.totalorder %s5975_s16, %s5970_s8 }
  0x18   : > { %p5979_p8 = scmp.lt.u32.totalorder %s5970_s8, %s6201_s20 }
  0x19   : > { %p5974_p3 = pneg %p5973_p2  ;;  %p5978_p7 = por %p5977_p5, %p5976_p4 }
  0x1b   : > { %p5980_p10 = por %p5979_p8, %p5978_p7 }
  0x1d   : > { %p5981_p9 = pnand %p5980_p10, %p5974_p3 }
  0x1f   : > { %5984 = shalt.err (!%p5981_p9)
}
  0x20   : > { %s5985_s15 = scalar_lea.vmem %s6209_s22, 1024  ;;  %s6068_s19 = smov [#allocation4]  }
  0x21   : > { %p5986_p0 = scmp.ne.s32.totalorder %s6209_s22, %s5985_s15  ;;  %s5990_s21 = sshll.u32 %s6068_s19, 4  ;;  %s5991_s21 = int_to_ptr.vmem [resolvable:$false] %s5990_s21 }
  0x22   : > { %s5992_s9 = scalar_lea.vmem %s5991_s21, 2048  ;;  %p5993_p11 = scmp.lt.s32.totalorder %s6209_s22, %s5991_s21 }
  0x23   : > { %p5988_p2 = pnand %p5986_p0, %p5972_p1  ;;  %p5994_p4 = scmp.lt.s32.totalorder %s5992_s9, %s5985_s15 }
  0x25   : > { %p5989_p12 = pneg %p5988_p2  ;;  %p5995_p5 = por %p5994_p4, %p5993_p11 }
  0x27   : > { %p5996_p7 = pnand %p5995_p5, %p5989_p12 }
  0x29   : > { %5999 = shalt.err (!%p5996_p7)
}
  0x2a   : > { %s6069_s8 = smov 128   ;;  %s6070_s11 = smov 8  }
  0x2b   : > { %5837 = dma.hbm_to_vmem [thread:$0]  (!%p6205_p13), %s6201_s20, 1024, %s6209_s22, %s6211_s29, %s6069_s8, %s6069_s8, %s6070_s11  }
  0x2c   : > { %p5776_p9 = scmp.ge.s32.totalorder %s6066_s27, 1  ;;  %p256_p1 = scmp.lt.s32.totalorder %s6066_s27, 3 }
  0x2e   : > { %p257_p3 = pnand %p5776_p9, %p256_p1 }
  0x30   : > { %260 = sbr.rel (%p257_p3) target bundleno = 2628 (0xa44), region = 48 }
  0x37   : > { %s6242_s16 = sand.u32 1, %s6058_s25  }
  0x38   : > { %s5777_s17 = sshll.u32 %s6242_s16, 6  ;;  %s263_s18 = scalar_lea.sflag [#allocation5], %s6242_s16 }
  0x39   : > { %s6246_s15 = scalar_lea.vmem [#allocation4], %s5777_s17 }
  0x3a   : > { %6045 = dma.done.wait (%p6181_p6), %s263_s18, 1024  }
  0x3b   : > { %6047 = vsyncadd (%p6181_p6), %s263_s18, 4294966272  ;;  %vm306_vm0 = vcmask 139264   ;;  %v6071_v0 = vmov 1983009808   ;;  %v439_v2 = vlaneseq  ;;  %v9430_v3 = vmov 0.0   ;;  %v300_v6 = vld [vmem:[%s6246_s15 + $0x10] sm:$0xff] }
  0x3c   : > { %v6252_v1 = vunpack.c.l.s4 %v6071_v0  ;;  %308 = vst.msk [vmem:[#allocation2 + $0x18] sm:$0x1] %vm306_vm0, %v9430_v3  ;;  %vm315_vm1 = vcmask 7168   ;;  %vm329_vm2 = vcmask 146568   ;;  %307 = vst.msk [vmem:[#allocation2] sm:$0x1] %vm306_vm0, %v9430_v3 }
  0x3d   : > { %309 = vst.msk [vmem:[#allocation2 + $0x30] sm:$0x1] %vm306_vm0, %v9430_v3  ;;  %310 = vst.msk [vmem:[#allocation2 + $0x48] sm:$0x1] %vm306_vm0, %v9430_v3  ;;  %vm318_vm3 = vcmask 1024   ;;  %vm332_vm4 = vcmask 140424  }
  0x3e   : > { %311 = vst.msk [vmem:[#allocation2 + $0x11] sm:$0x1] %vm306_vm0, %v9430_v3  ;;  %312 = vst.msk [vmem:[#allocation2 + $0x29] sm:$0x1] %vm306_vm0, %v9430_v3  ;;  %v438_v4 = vunpack.c.0.s8 %v6252_v1  ;;  %v6432_v5 = vshrl.u32 %v439_v2, 7  ;;  %v298_v7 = vld [vmem:[%s6246_s15] sm:$0xff] }
  0x3f   : > { %313 = vst.msk [vmem:[#allocation2 + $0x41] sm:$0x1] %vm306_vm0, %v9430_v3  ;;  %314 = vst.msk [vmem:[#allocation2 + $0x59] sm:$0x1] %vm306_vm0, %v9430_v3  ;;  %s6073_s12 = smov 1   ;;  %v299_v8 = vld [vmem:[%s6246_s15 + $0x8] sm:$0xff] }
  0x40   : > { %3302 = vst.msk [vmem:[#allocation3] sm:$0x1] %vm306_vm0, %v9430_v3  ;;  %3303 = vst.msk [vmem:[#allocation3 + $0x18] sm:$0x1] %vm306_vm0, %v9430_v3  ;;  %355 = vrot.lane.b32.xlu1 %v300_v6, %s6073_s12  ;;  %351 = vrot.lane.b32.xlu0 %v298_v7, %s6073_s12  ;;  %v303_v9 = vld [vmem:[%s6246_s15 + $0x28] sm:$0xff]  ;;  %v301_v10 = vld [vmem:[%s6246_s15 + $0x18] sm:$0xff]  ;;  %v6458_v11 = vsub.s32 %v438_v4, %v6432_v5 }
  0x41   : > { %3304 = vst.msk [vmem:[#allocation3 + $0x30] sm:$0x1] %vm306_vm0, %v9430_v3  ;;  %3305 = vst.msk [vmem:[#allocation3 + $0x48] sm:$0x1] %vm306_vm0, %v9430_v3  ;;  %v5540_v12 = vcombine.low %v299_v8, %v303_v9  ;;  %v5541_v13 = vcombine.high %v299_v8, %v303_v9  ;;  %v302_v14 = vld [vmem:[%s6246_s15 + $0x20] sm:$0xff]  ;;  %v305_v15 = vld [vmem:[%s6246_s15 + $0x38] sm:$0xff] }
  0x42   : > { %3306 = vst.msk [vmem:[#allocation3 + $0x60] sm:$0x1] %vm306_vm0, %v9430_v3  ;;  %3307 = vst.msk [vmem:[#allocation3 + $0x78] sm:$0x1] %vm306_vm0, %v9430_v3  ;;  %v5472_v16 = vcombine.low %v298_v7, %v302_v14  ;;  %v5473_v17 = vcombine.high %v298_v7, %v302_v14  ;;  %v5556_v18 = vcombine.low %v301_v10, %v305_v15  ;;  %v304_v20 = vld [vmem:[%s6246_s15 + $0x30] sm:$0xff]  ;;  %v9438_v21 = vmov 0  }
  0x43   : > { %3308 = vst.msk [vmem:[#allocation3 + $0x90] sm:$0x1] %vm306_vm0, %v9430_v3  ;;  %3309 = vst.msk [vmem:[#allocation3 + $0xa8] sm:$0x1] %vm306_vm0, %v9430_v3  ;;  %v5557_v19 = vcombine.high %v301_v10, %v305_v15  ;;  %967 = vmatprep.mubr.bf16.mxu1 %v9438_v21  ;;  %v6465_v22 = vrot.slane %v5540_v12, %v6458_v11  ;;  %v6468_v23 = vrot.slane %v5541_v13, %v6458_v11  ;;  %vm375_vm5 = vcmask 138248   ;;  %s6075_s20 = smov 127  }
  0x44   : > { %320 = vst.msk [vmem:[#allocation2 + $0x18] sm:$0xff] %vm315_vm1, %v9430_v3  ;;  %321 = vst.msk [vmem:[#allocation2 + $0x20] sm:$0xff] %vm315_vm1, %v9430_v3  ;;  %v5488_v24 = vcombine.low %v300_v6, %v304_v20  ;;  %v5489_v25 = vcombine.high %v300_v6, %v304_v20  ;;  %919 = vmatprep.mubr.bf16.mxu0 %v9438_v21  ;;  %357 = vrot.lane.b32.xlu1 %v301_v10, %s6073_s12  ;;  %s9454_s22 = smov 126   ;;  %vm2125_vm6 = vcmask 1046528   ;;  %vm1254_vm7 = vsmask.f32 7424 }
  0x45   : > { %317 = vst.msk [vmem:[#allocation2 + $0x8] sm:$0xff] %vm315_vm1, %v9430_v3  ;;  %324 = vst.msk [vmem:[#allocation2 + $0x38] sm:$0xff] %vm315_vm1, %v9430_v3  ;;  %353 = vrot.lane.b32.xlu0 %v299_v8, %s6073_s12  ;;  %v6474_v26 = vrot.slane %v5472_v16, %v6458_v11  ;;  %v6477_v27 = vrot.slane %v5473_v17, %v6458_v11  ;;  %v6480_v28 = vrot.slane %v5556_v18, %v6458_v11  ;;  %s6078_s23 = smov 64   ;;  %s6079_s29 = smov 16   ;;  %vm609_vm8 = vcmask 130048  }
  0x46   : > { %327 = vst.msk [vmem:[#allocation2 + $0x50] sm:$0xff] %vm315_vm1, %v9430_v3  ;;  %3311 = vst.msk [vmem:[#allocation3 + $0x8] sm:$0xff] %vm315_vm1, %v9430_v3  ;;  %v6483_v29 = vrot.slane %v5557_v19, %v6458_v11  ;;  %v6486_v30 = vrot.slane %v5488_v24, %v6458_v11  ;;  %v6489_v31 = vrot.slane %v5489_v25, %v6458_v11  ;;  %s6080_s19 = smov 32   ;;  %s6081_s21 = smov 80   ;;  %vm613_vm9 = vcmask 261120  }
  0x47   : > { %3314 = vst.msk [vmem:[#allocation3 + $0x20] sm:$0xff] %vm315_vm1, %v9430_v3  ;;  %3317 = vst.msk [vmem:[#allocation3 + $0x38] sm:$0xff] %vm315_vm1, %v9430_v3  ;;  %s6082_s9 = smov 96   ;;  %s6083_s8 = smov 48   ;;  %vm616_vm10 = vcmask 392192   ;;  %vm619_vm11 = vcmask 523264  }
  0x48   : > { %3320 = vst.msk [vmem:[#allocation3 + $0x50] sm:$0xff] %vm315_vm1, %v9430_v3  ;;  %3323 = vst.msk [vmem:[#allocation3 + $0x68] sm:$0xff] %vm315_vm1, %v9430_v3  ;;  %361 = vrot.lane.b32.xlu1 %v303_v9, %s6073_s12  ;;  %s6084_s11 = smov 112   ;;  %vm622_vm12 = vcmask 654336   ;;  %vm625_vm13 = vcmask 785408   ;;  %vm628_vm14 = vcmask 916480  }
  0x49   : > { %3326 = vst.msk [vmem:[#allocation3 + $0x80] sm:$0xff] %vm315_vm1, %v9430_v3  ;;  %3329 = vst.msk [vmem:[#allocation3 + $0x98] sm:$0xff] %vm315_vm1, %v9430_v3  ;;  %359 = vrot.lane.b32.xlu0 %v302_v14, %s6073_s12  ;;  %vm882_vm15 = vcmask 1041408   ;;  %s6095_s17 = smov 125   ;;  %s6096_s18 = smov 124  }
  0x4a   : > { %3332 = vst.msk [vmem:[#allocation3 + $0xb0] sm:$0xff] %vm315_vm1, %v9430_v3  ;;  %316 = vst.msk [vmem:[#allocation2] sm:$0xff] %vm315_vm1, %v9430_v3  ;;  %s5686_s15 = scalar_lea.sflag [#allocation6], %s6242_s16  ;;  %p9749_p11 = scmp.ne.s32.totalorder %s9526_s13, 0 }
  0x4b   : > { %323 = vst.msk [vmem:[#allocation2 + $0x30] sm:$0xff] %vm315_vm1, %v9430_v3  ;;  %326 = vst.msk [vmem:[#allocation2 + $0x48] sm:$0xff] %vm315_vm1, %v9430_v3 }
  0x4c   : > { %3310 = vst.msk [vmem:[#allocation3] sm:$0xff] %vm315_vm1, %v9430_v3  ;;  %3313 = vst.msk [vmem:[#allocation3 + $0x18] sm:$0xff] %vm315_vm1, %v9430_v3  ;;  %365 = vrot.lane.b32.xlu1 %v305_v15, %s6073_s12 }
  0x4d   : > { %3316 = vst.msk [vmem:[#allocation3 + $0x30] sm:$0xff] %vm315_vm1, %v9430_v3  ;;  %3319 = vst.msk [vmem:[#allocation3 + $0x48] sm:$0xff] %vm315_vm1, %v9430_v3  ;;  %363 = vrot.lane.b32.xlu0 %v304_v20, %s6073_s12 }
  0x4e   : > { %3322 = vst.msk [vmem:[#allocation3 + $0x60] sm:$0xff] %vm315_vm1, %v9430_v3  ;;  %3325 = vst.msk [vmem:[#allocation3 + $0x78] sm:$0xff] %vm315_vm1, %v9430_v3 }
  0x4f   : > { %3328 = vst.msk [vmem:[#allocation3 + $0x90] sm:$0xff] %vm315_vm1, %v9430_v3  ;;  %3331 = vst.msk [vmem:[#allocation3 + $0xa8] sm:$0xff] %vm315_vm1, %v9430_v3 }
  0x50   : > { %334 = vst.msk [vmem:[#allocation2 + $0x18] sm:$0xff] %vm329_vm2, %v9430_v3  ;;  %335 = vst.msk [vmem:[#allocation2 + $0x20] sm:$0xff] %vm329_vm2, %v9430_v3 }
  0x51   : > { %330 = vst.msk [vmem:[#allocation2] sm:$0xff] %vm329_vm2, %v9430_v3  ;;  %331 = vst.msk [vmem:[#allocation2 + $0x8] sm:$0xff] %vm329_vm2, %v9430_v3 }
  0x52   : > { %338 = vst.msk [vmem:[#allocation2 + $0x38] sm:$0xff] %vm329_vm2, %v9430_v3  ;;  %341 = vst.msk [vmem:[#allocation2 + $0x50] sm:$0xff] %vm329_vm2, %v9430_v3 }
  0x53   : > { %3343 = vst.msk [vmem:[#allocation3 + $0x8] sm:$0xff] %vm329_vm2, %v9430_v3  ;;  %3346 = vst.msk [vmem:[#allocation3 + $0x20] sm:$0xff] %vm329_vm2, %v9430_v3 }
  0x54   : > { %3349 = vst.msk [vmem:[#allocation3 + $0x38] sm:$0xff] %vm329_vm2, %v9430_v3  ;;  %3352 = vst.msk [vmem:[#allocation3 + $0x50] sm:$0xff] %vm329_vm2, %v9430_v3 }
  0x55   : > { %3355 = vst.msk [vmem:[#allocation3 + $0x68] sm:$0xff] %vm329_vm2, %v9430_v3  ;;  %3358 = vst.msk [vmem:[#allocation3 + $0x80] sm:$0xff] %vm329_vm2, %v9430_v3 }
  0x56   : > { %3361 = vst.msk [vmem:[#allocation3 + $0x98] sm:$0xff] %vm329_vm2, %v9430_v3  ;;  %3364 = vst.msk [vmem:[#allocation3 + $0xb0] sm:$0xff] %vm329_vm2, %v9430_v3 }
  0x57   : > { %322 = vst.msk [vmem:[#allocation2 + $0x28] sm:$0x3] %vm318_vm3, %v9430_v3  ;;  %319 = vst.msk [vmem:[#allocation2 + $0x10] sm:$0x3] %vm318_vm3, %v9430_v3 }
  0x58   : > { %325 = vst.msk [vmem:[#allocation2 + $0x40] sm:$0x3] %vm318_vm3, %v9430_v3  ;;  %328 = vst.msk [vmem:[#allocation2 + $0x58] sm:$0x3] %vm318_vm3, %v9430_v3 }
  0x59   : > { %337 = vst.msk [vmem:[#allocation2 + $0x30] sm:$0xff] %vm329_vm2, %v9430_v3  ;;  %340 = vst.msk [vmem:[#allocation2 + $0x48] sm:$0xff] %vm329_vm2, %v9430_v3 }
  0x5a   : > { %3312 = vst.msk [vmem:[#allocation3 + $0x10] sm:$0x3] %vm318_vm3, %v9430_v3  ;;  %3315 = vst.msk [vmem:[#allocation3 + $0x28] sm:$0x3] %vm318_vm3, %v9430_v3 }
  0x5b   : > { %3318 = vst.msk [vmem:[#allocation3 + $0x40] sm:$0x3] %vm318_vm3, %v9430_v3  ;;  %3321 = vst.msk [vmem:[#allocation3 + $0x58] sm:$0x3] %vm318_vm3, %v9430_v3 }
  0x5c   : > { %3324 = vst.msk [vmem:[#allocation3 + $0x70] sm:$0x3] %vm318_vm3, %v9430_v3  ;;  %3327 = vst.msk [vmem:[#allocation3 + $0x88] sm:$0x3] %vm318_vm3, %v9430_v3 }
  0x5d   : > { %3330 = vst.msk [vmem:[#allocation3 + $0xa0] sm:$0x3] %vm318_vm3, %v9430_v3  ;;  %3333 = vst.msk [vmem:[#allocation3 + $0xb8] sm:$0x3] %vm318_vm3, %v9430_v3  ;;  %vm6094_vm3 = vmmov 0  }
  0x5e   : > { %3342 = vst.msk [vmem:[#allocation3] sm:$0xff] %vm329_vm2, %v9430_v3  ;;  %3345 = vst.msk [vmem:[#allocation3 + $0x18] sm:$0xff] %vm329_vm2, %v9430_v3 }
  0x5f   : > { %3348 = vst.msk [vmem:[#allocation3 + $0x30] sm:$0xff] %vm329_vm2, %v9430_v3  ;;  %3351 = vst.msk [vmem:[#allocation3 + $0x48] sm:$0xff] %vm329_vm2, %v9430_v3 }
  0x60   : > { %3354 = vst.msk [vmem:[#allocation3 + $0x60] sm:$0xff] %vm329_vm2, %v9430_v3  ;;  %3357 = vst.msk [vmem:[#allocation3 + $0x78] sm:$0xff] %vm329_vm2, %v9430_v3 }
  0x61   : > { %3360 = vst.msk [vmem:[#allocation3 + $0x90] sm:$0xff] %vm329_vm2, %v9430_v3  ;;  %3363 = vst.msk [vmem:[#allocation3 + $0xa8] sm:$0xff] %vm329_vm2, %v9430_v3  ;;  %vm4474_vm2 = vcmask 1045504  }
  0x62   : > { %336 = vst.msk [vmem:[#allocation2 + $0x28] sm:$0x3] %vm332_vm4, %v9430_v3  ;;  %333 = vst.msk [vmem:[#allocation2 + $0x10] sm:$0x3] %vm332_vm4, %v9430_v3 }
  0x63   : > { %339 = vst.msk [vmem:[#allocation2 + $0x40] sm:$0x3] %vm332_vm4, %v9430_v3  ;;  %342 = vst.msk [vmem:[#allocation2 + $0x58] sm:$0x3] %vm332_vm4, %v9430_v3 }
  0x64   : > { %3334 = vst.msk [vmem:[#allocation3 + $0x11] sm:$0x1] %vm306_vm0, %v9430_v3  ;;  %3335 = vst.msk [vmem:[#allocation3 + $0x29] sm:$0x1] %vm306_vm0, %v9430_v3 }
  0x65   : > { %3336 = vst.msk [vmem:[#allocation3 + $0x41] sm:$0x1] %vm306_vm0, %v9430_v3  ;;  %3337 = vst.msk [vmem:[#allocation3 + $0x59] sm:$0x1] %vm306_vm0, %v9430_v3 }
  0x66   : > { %3338 = vst.msk [vmem:[#allocation3 + $0x71] sm:$0x1] %vm306_vm0, %v9430_v3  ;;  %3339 = vst.msk [vmem:[#allocation3 + $0x89] sm:$0x1] %vm306_vm0, %v9430_v3 }
  0x67   : > { %3340 = vst.msk [vmem:[#allocation3 + $0xa1] sm:$0x1] %vm306_vm0, %v9430_v3  ;;  %3341 = vst.msk [vmem:[#allocation3 + $0xb9] sm:$0x1] %vm306_vm0, %v9430_v3  ;;  %vm878_vm0 = vcmask 31744  }
  0x68   : > { %3344 = vst.msk [vmem:[#allocation3 + $0x10] sm:$0x3] %vm332_vm4, %v9430_v3  ;;  %3347 = vst.msk [vmem:[#allocation3 + $0x28] sm:$0x3] %vm332_vm4, %v9430_v3 }
  0x69   : > { %3350 = vst.msk [vmem:[#allocation3 + $0x40] sm:$0x3] %vm332_vm4, %v9430_v3  ;;  %3353 = vst.msk [vmem:[#allocation3 + $0x58] sm:$0x3] %vm332_vm4, %v9430_v3 }
  0x6a   : > { %3356 = vst.msk [vmem:[#allocation3 + $0x70] sm:$0x3] %vm332_vm4, %v9430_v3  ;;  %3359 = vst.msk [vmem:[#allocation3 + $0x88] sm:$0x3] %vm332_vm4, %v9430_v3 }
  0x6b   : > { %3362 = vst.msk [vmem:[#allocation3 + $0xa0] sm:$0x3] %vm332_vm4, %v9430_v3  ;;  %3365 = vst.msk [vmem:[#allocation3 + $0xb8] sm:$0x3] %vm332_vm4, %v9430_v3  ;;  %vm5295_vm4 = vcmask 1043456  }
  0x6c   : > { %9529 = vst [vmem:[#allocation10_spill] sm:$0xff] %v6458_v11  ;;  %9530 = vst [vmem:[#allocation11_spill] sm:$0xff] %v6465_v22 }
  0x6d   : > { %9531 = vst [vmem:[#allocation12_spill] sm:$0xff] %v6468_v23  ;;  %9532 = vst [vmem:[#allocation13_spill] sm:$0xff] %v6474_v26 }
  0x6e   : > { %9533 = vst [vmem:[#allocation14_spill] sm:$0xff] %v6477_v27  ;;  %9534 = vst [vmem:[#allocation15_spill] sm:$0xff] %v6480_v28  ;;  %v9539_v28 = vmov 0  }
  0x6f   : > { %9535 = vst [vmem:[#allocation16_spill] sm:$0xff] %v6483_v29  ;;  %9536 = vst [vmem:[#allocation17_spill] sm:$0xff] %v6486_v30 }
  0x70   : > { %9537 = vst [vmem:[#allocation18_spill] sm:$0xff] %v6489_v31 }
  0xb2   : > { %v356_v40 = vpop.permute.xlu1 %355  ;;  %v352_v41 = vpop.permute.xlu0 %351 }
  0xb3   : > { %378 = vst.msk [vmem:[#allocation2 + $0x19] sm:$0xff] %vm375_vm5, %v356_v40  ;;  %376 = vst.msk [vmem:[#allocation2 + $0x1] sm:$0xff] %vm375_vm5, %v352_v41 }
  0xb6   : > { %v358_v42 = vpop.permute.xlu1 %357 }
  0xb7   : > { %v354_v43 = vpop.permute.xlu0 %353  ;;  %379 = vst.msk [vmem:[#allocation2 + $0x21] sm:$0xff] %vm375_vm5, %v358_v42 }
  0xb8   : > { %377 = vst.msk [vmem:[#allocation2 + $0x9] sm:$0xff] %vm375_vm5, %v354_v43 }
  0xba   : > { %v362_v44 = vpop.permute.xlu1 %361  ;;  %v387_v46 = vld [vmem:[#allocation2 + $0x18] sm:$0xff]  ;;  %v384_v50 = vld [vmem:[#allocation2] sm:$0xff] }
  0xbb   : > { %v360_v45 = vpop.permute.xlu0 %359  ;;  %381 = vst.msk [vmem:[#allocation2 + $0x39] sm:$0xff] %vm375_vm5, %v362_v44 }
  0xbc   : > { %380 = vst.msk [vmem:[#allocation2 + $0x31] sm:$0xff] %vm375_vm5, %v360_v45 }
  0xbe   : > { %v366_v47 = vpop.permute.xlu1 %365  ;;  %v388_v49 = vld [vmem:[#allocation2 + $0x20] sm:$0xff]  ;;  %v389_v62 = vld [vmem:[#allocation2 + $0x28] sm:$0x3] }
  0xbf   : > { %v364_v48 = vpop.permute.xlu0 %363  ;;  %v385_v51 = vld [vmem:[#allocation2 + $0x8] sm:$0xff]  ;;  %383 = vst.msk [vmem:[#allocation2 + $0x51] sm:$0xff] %vm375_vm5, %v366_v47  ;;  %v6519_v52 = vpack.c.bf16 %v388_v49, %v387_v46  ;;  %v386_v57 = vld [vmem:[#allocation2 + $0x10] sm:$0x3]  ;;  %v399_v0 = vpack.c.bf16 %v389_v62, %v389_v62 }
  0xc0   : > { %382 = vst.msk [vmem:[#allocation2 + $0x49] sm:$0xff] %vm375_vm5, %v364_v48  ;;  %v6521_v53 = vpack.c.bf16 %v385_v51, %v384_v50  ;;  %v397_v61 = vpack.c.bf16 %v386_v57, %v386_v57 }
  0xc1   : > { %652 = vrot.lane.b32.xlu1 %v6519_v52, %s6075_s20  ;;  %v2129_v7 = vrot.slane %v6519_v52, 1  ;;  %v2130_v8 = vrot.slane %v399_v0, 1  ;;  %v1266_v25 = vshll.u32 %v6519_v52, 16  ;;  %v418_v46 = vshrl.u32 %v6519_v52, 16 }
  0xc2   : > { %650 = vrot.lane.b32.xlu0 %v6521_v53, %s6075_s20  ;;  %v392_v63 = vld [vmem:[#allocation2 + $0x40] sm:$0x3]  ;;  %v2126_v1 = vrot.slane %v6521_v53, 1  ;;  %v2127_v2 = vrot.slane %v397_v61, 1  ;;  %v1256_v14 = vshll.u32 %v6521_v53, 16  ;;  %v417_v40 = vshrl.u32 %v6521_v53, 16 }
  0xc3   : > { %v390_v54 = vld [vmem:[#allocation2 + $0x30] sm:$0xff]  ;;  %v391_v55 = vld [vmem:[#allocation2 + $0x38] sm:$0xff]  ;;  %v401_v4 = vpack.c.bf16 %v392_v63, %v392_v63  ;;  %v6556_v16 = vsel %vm2125_vm6, %v2129_v7, %v2130_v8  ;;  %v1261_v41 = vshll.u32 %v397_v61, 16  ;;  %v1268_v44 = vrot.slane %v1266_v25, 1 }
  0xc4   : > { %v6527_v56 = vpack.c.bf16 %v391_v55, %v390_v54  ;;  %v6544_v9 = vsel %vm2125_vm6, %v2126_v1, %v2127_v2  ;;  %v1258_v20 = vrot.slane %v1256_v14, 1  ;;  %v1271_v50 = vshll.u32 %v399_v0, 16 }
  0xc5   : > { %v2133_v12 = vrot.slane %v401_v4, 1  ;;  %v1263_v47 = vrot.slane %v1261_v41, 1  ;;  %v1281_v49 = vshll.u32 %v401_v4, 16  ;;  %v1269_v55 = vor.u32 %v1268_v44, %v418_v46 }
  0xc6   : > { %654 = vrot.lane.b32.xlu0 %v6527_v56, %s6075_s20  ;;  %v395_v6 = vld [vmem:[#allocation2 + $0x58] sm:$0x3]  ;;  %v2132_v10 = vrot.slane %v6527_v56, 1  ;;  %v1276_v24 = vshll.u32 %v6527_v56, 16  ;;  %v1259_v42 = vor.u32 %v1258_v20, %v417_v40  ;;  %v425_v48 = vshrl.u32 %v6527_v56, 16 }
  0xc7   : > { %v393_v58 = vld [vmem:[#allocation2 + $0x48] sm:$0xff]  ;;  %v394_v59 = vld [vmem:[#allocation2 + $0x50] sm:$0xff]  ;;  %v403_v13 = vpack.c.bf16 %v395_v6, %v395_v6  ;;  %v1283_v61 = vrot.slane %v1281_v49, 1  ;;  %v1273_v62 = vrot.slane %v1271_v50, 1  ;;  %v6598_v7 = vpack.i.b16 %v9438_v21, %v9438_v21 }
  0xc8   : > { %v6531_v60 = vpack.c.bf16 %v394_v59, %v393_v58  ;;  %v6553_v15 = vsel %vm2125_vm6, %v2132_v10, %v2133_v12  ;;  %v1278_v43 = vrot.slane %v1276_v24, 1  ;;  %v6581_v51 = vsel %vm1254_vm7, %v1259_v42, %v1263_v47 }
  0xc9   : > { %v2136_v18 = vrot.slane %v403_v13, 1  ;;  %v6077_v58 = vmov 1934713408   ;;  %v1291_v1 = vshll.u32 %v403_v13, 16  ;;  %v6594_v4 = vsel %vm1254_vm7, %v1269_v55, %v1273_v62 }
  0xca   : > { %976 = vrot.lane.b32.xlu0 %v6521_v53, %s9454_s22  ;;  %656 = vrot.lane.b32.xlu1 %v6531_v60, %s6075_s20  ;;  %v2135_v17 = vrot.slane %v6531_v60, 1  ;;  %v1286_v45 = vshll.u32 %v6531_v60, 16  ;;  %v1279_v54 = vor.u32 %v1278_v43, %v425_v48  ;;  %v468_v59 = vunpack.c.l.s4 %v6077_v58 }
  0xcb   : > { %v426_v63 = vshrl.u32 %v6531_v60, 16  ;;  %v423_v0 = vpack.i.b16 %v6531_v60, %v6527_v56 }
  0xcc   : > { %v6564_v19 = vsel %vm2125_vm6, %v2135_v17, %v2136_v18  ;;  %v1288_v57 = vrot.slane %v1286_v45, 1  ;;  %v6591_v2 = vsel %vm1254_vm7, %v1279_v54, %v1283_v61  ;;  %v469_v8 = vunpack.c.0.s8 %v468_v59 }
  0xcd   : > { %v457_v10 = vrot.slane %v423_v0, %v6458_v11  ;;  %v427_v12 = vpack.i.b16 %v426_v63, %v425_v48  ;;  %v450_v13 = vcombine.high %v423_v0, %v6598_v7  ;;  %v419_v18 = vpack.i.b16 %v418_v46, %v417_v40 }
  0xce   : > { %980 = vrot.lane.b32.xlu0 %v6527_v56, %s9454_s22  ;;  %978 = vrot.lane.b32.xlu1 %v6519_v52, %s9454_s22  ;;  %v1289_v6 = vor.u32 %v1288_v57, %v426_v63  ;;  %v415_v56 = vpack.i.b16 %v6519_v52, %v6521_v53  ;;  %v6618_v53 = vsub.s32 %v469_v8, %v6432_v5 }
  0xcf   : > { %v523_v24 = vrot.slane %v427_v12, %v6458_v11  ;;  %v464_v25 = vrot.slane %v450_v13, %v6458_v11  ;;  %v516_v41 = vcombine.high %v427_v12, %v6598_v7  ;;  %v508_v40 = vrot.slane %v419_v18, %v6458_v11 }
  0xd0   : > { %v442_v17 = vrot.slane %v415_v56, %v6458_v11  ;;  %v435_v52 = vcombine.high %v415_v56, %v6598_v7  ;;  %9538 = vst [vmem:[#allocation19_spill] sm:$0xff] %v6618_v53  ;;  %v501_v43 = vcombine.high %v419_v18, %v6598_v7  ;;  %v2148_v59 = vpack.i.b16 %v6564_v19, %v6553_v15 }
  0xd1   : > { %v531_v46 = vcombine.low %v508_v40, %v523_v24  ;;  %v530_v48 = vrot.slane %v516_v41, %v6458_v11  ;;  %v532_v63 = vcombine.high %v508_v40, %v523_v24  ;;  %v2140_v0 = vpack.i.b16 %v6556_v16, %v6544_v9 }
  0xd2   : > { %2408 = vrot.lane.b32.xlu0 %v6544_v9, %s6075_s20  ;;  %982 = vrot.lane.b32.xlu1 %v6531_v60, %s9454_s22  ;;  %v1293_v60 = vrot.slane %v1291_v1, 1  ;;  %v466_v20 = vcombine.high %v442_v17, %v457_v10  ;;  %v449_v42 = vrot.slane %v435_v52, %v6458_v11  ;;  %v465_v44 = vcombine.low %v442_v17, %v457_v10 }
  0xd3   : > { %v515_v49 = vrot.slane %v501_v43, %v6458_v11  ;;  %v539_v54 = vrot.slane %v531_v46, %v6618_v53  ;;  %v546_v56 = vrot.slane %v532_v63, %v6618_v53  ;;  %v2176_v10 = vrot.slane %v2148_v59, %v6458_v11 }
  0xd4   : > { %v6609_v14 = vsel %vm1254_vm7, %v1289_v6, %v1293_v60  ;;  %v480_v45 = vrot.slane %v466_v20, %v6618_v53  ;;  %v482_v47 = vcombine.high %v449_v42, %v464_v25  ;;  %v6637_v50 = vrot.slane %v465_v44, %v6618_v53 }
  0xd5   : > { %v547_v57 = vcombine.low %v515_v49, %v530_v48  ;;  %v481_v58 = vcombine.low %v449_v42, %v464_v25  ;;  %v2169_v6 = vcombine.high %v2148_v59, %v6598_v7  ;;  %v548_v8 = vcombine.high %v515_v49, %v530_v48 }
  0xd6   : > { %2412 = vrot.lane.b32.xlu0 %v6553_v15, %s6075_s20  ;;  %2410 = vrot.lane.b32.xlu1 %v6556_v16, %s6075_s20  ;;  %v496_v55 = vrot.slane %v482_v47, %v6618_v53  ;;  %v497_v61 = vcombine.high %v6637_v50, %v9438_v21  ;;  %v2154_v12 = vcombine.high %v2140_v0, %v6598_v7  ;;  %v2151_v17 = vshrl.u32 %v6564_v19, 16 }
  0xd7   : > { %v555_v62 = vrot.slane %v547_v57, %v6618_v53  ;;  %v6649_v1 = vrot.slane %v481_v58, %v6618_v53  ;;  %v2161_v13 = vrot.slane %v2140_v0, %v6458_v11  ;;  %v498_v18 = vcombine.high %v480_v45, %v9438_v21 }
  0xd8   : > { %v562_v52 = vrot.slane %v548_v8, %v6618_v53  ;;  %v2183_v24 = vrot.slane %v2169_v6, %v6458_v11  ;;  %v2142_v25 = vshrl.u32 %v6544_v9, 16  ;;  %v2150_v41 = vshrl.u32 %v6553_v15, 16 }
  0xd9   : > { %v499_v60 = vcombine.high %v6649_v1, %v9438_v21  ;;  %v2185_v20 = vcombine.high %v2161_v13, %v2176_v10  ;;  %v2143_v40 = vshrl.u32 %v6556_v16, 16  ;;  %v500_v44 = vcombine.high %v496_v55, %v9438_v21 }
  0xda   : > { %2686 = vrot.lane.b32.xlu0 %v6544_v9, %s9454_s22  ;;  %2414 = vrot.lane.b32.xlu1 %v6564_v19, %s6075_s20  ;;  %v2152_v42 = vpack.i.b16 %v2151_v17, %v2150_v41  ;;  %v563_v9 = vcombine.high %v539_v54, %v9438_v21  ;;  %v565_v57 = vcombine.high %v555_v62, %v9438_v21 }
  0xdb   : > { %v2199_v43 = vrot.slane %v2185_v20, %v6618_v53  ;;  %v2144_v46 = vpack.i.b16 %v2143_v40, %v2142_v25  ;;  %v2184_v58 = vcombine.low %v2161_v13, %v2176_v10  ;;  %v566_v63 = vcombine.high %v562_v52, %v9438_v21 }
  0xdc   : > { %v2235_v47 = vcombine.high %v2152_v42, %v6598_v7  ;;  %v1297_v17 = vpack.i.b16 %v6594_v4, %v6581_v51 }
  0xdd   : > { %v2227_v48 = vrot.slane %v2144_v46, %v6458_v11  ;;  %v2220_v49 = vcombine.high %v2144_v46, %v6598_v7  ;;  %v6695_v6 = vrot.slane %v2184_v58, %v6618_v53 }
  0xde   : > { %2690 = vrot.lane.b32.xlu0 %v6553_v15, %s9454_s22  ;;  %2688 = vrot.lane.b32.xlu1 %v6556_v16, %s9454_s22  ;;  %v2242_v16 = vrot.slane %v2152_v42, %v6458_v11  ;;  %v2249_v59 = vrot.slane %v2235_v47, %v6458_v11  ;;  %v1311_v41 = vcombine.high %v1297_v17, %v6598_v7  ;;  %v1300_v47 = vshrl.u32 %v6594_v4, 16 }
  0xdf   : > { %v2216_v8 = vcombine.high %v6695_v6, %v9438_v21  ;;  %v1318_v40 = vrot.slane %v1297_v17, %v6458_v11  ;;  %v2217_v42 = vcombine.high %v2199_v43, %v9438_v21 }
  0xe2   : > { %1565 = vrot.lane.b32.xlu0 %v6581_v51, %s6075_s20  ;;  %2692 = vrot.lane.b32.xlu1 %v6564_v19, %s9454_s22  ;;  %v2168_v19 = vrot.slane %v2154_v12, %v6458_v11  ;;  %v2251_v12 = vcombine.high %v2227_v48, %v2242_v16 }
  0xe6   : > { %1569 = vrot.lane.b32.xlu0 %v6591_v2, %s6075_s20  ;;  %1567 = vrot.lane.b32.xlu1 %v6594_v4, %s6075_s20 }
  0xea   : > { %1843 = vrot.lane.b32.xlu0 %v6581_v51, %s9454_s22  ;;  %1571 = vrot.lane.b32.xlu1 %v6609_v14, %s6075_s20 }
  0xee   : > { %1847 = vrot.lane.b32.xlu0 %v6591_v2, %s9454_s22  ;;  %1845 = vrot.lane.b32.xlu1 %v6594_v4, %s9454_s22 }
  0xf2   : > { %1849 = vrot.lane.b32.xlu1 %v6609_v14, %s9454_s22  ;;  %577 = vrot.lane.b32.xlu0 %v480_v45, %s6078_s23  ;;  %v2201_v45 = vcombine.high %v2168_v19, %v2183_v24 }
  0xf4   : > { %v2215_v15 = vrot.slane %v2201_v45, %v6618_v53 }
  0xf6   : > { %568 = vrot.lane.b32.xlu0 %v539_v54, %s6079_s29  ;;  %598 = vrot.lane.b32.xlu1 %v496_v55, %s6078_s23  ;;  %v564_v55 = vcombine.high %v546_v56, %v9438_v21  ;;  %v2250_v54 = vcombine.low %v2227_v48, %v2242_v16  ;;  %v1307_v16 = vshrl.u32 %v6591_v2, 16  ;;  %v1325_v48 = vrot.slane %v1311_v41, %v6458_v11 }
  0xf8   : > { %v2258_v0 = vrot.slane %v2250_v54, %v6618_v53 }
  0xfa   : > { %571 = vrot.lane.b32.xlu0 %v497_v61, %s6080_s19  ;;  %589 = vrot.lane.b32.xlu1 %v555_v62, %s6079_s29  ;;  %v2234_v61 = vrot.slane %v2220_v49, %v6458_v11  ;;  %v2200_v62 = vcombine.low %v2168_v19, %v2183_v24  ;;  %v1308_v19 = vshrl.u32 %v6609_v14, 16  ;;  %v2219_v49 = vcombine.high %v2215_v15, %v9438_v21 }
  0xfc   : > { %v6705_v13 = vrot.slane %v2200_v62, %v6618_v53  ;;  %v2267_v24 = vcombine.high %v2234_v61, %v2249_v59 }
  0xfe   : > { %580 = vrot.lane.b32.xlu0 %v546_v56, %s6081_s21  ;;  %592 = vrot.lane.b32.xlu1 %v499_v60, %s6080_s19  ;;  %v2266_v56 = vcombine.low %v2234_v61, %v2249_v59  ;;  %v1305_v60 = vpack.i.b16 %v6609_v14, %v6591_v2  ;;  %v2218_v20 = vcombine.high %v6705_v13, %v9438_v21 }
  0xff   : > { %v1309_v14 = vpack.i.b16 %v1308_v19, %v1307_v16 }
 0x100   : > { %v2274_v10 = vrot.slane %v2266_v56, %v6618_v53  ;;  %v1333_v25 = vrot.slane %v1305_v60, %v6458_v11 }
 0x101   : > { %v1399_v4 = vrot.slane %v1309_v14, %v6458_v11  ;;  %v1392_v54 = vcombine.high %v1309_v14, %v6598_v7 }
 0x102   : > { %583 = vrot.lane.b32.xlu0 %v498_v18, %s6082_s9  ;;  %601 = vrot.lane.b32.xlu1 %v562_v52, %s6081_s21  ;;  %v1326_v18 = vcombine.high %v1305_v60, %v6598_v7  ;;  %v2265_v52 = vrot.slane %v2251_v12, %v6618_v53  ;;  %v1342_v45 = vcombine.high %v1318_v40, %v1333_v25 }
 0x103   : > { %v2284_v61 = vcombine.high %v2274_v10, %v9438_v21  ;;  %v1406_v56 = vrot.slane %v1392_v54, %v6458_v11 }
 0x104   : > { %v1340_v46 = vrot.slane %v1326_v18, %v6458_v11  ;;  %v2283_v59 = vcombine.high %v2265_v52, %v9438_v21 }
 0x106   : > { %2296 = vrot.lane.b32.xlu0 %v2199_v43, %s6078_s23  ;;  %604 = vrot.lane.b32.xlu1 %v500_v44, %s6082_s9  ;;  %v2281_v44 = vrot.slane %v2267_v24, %v6618_v53  ;;  %v1356_v43 = vrot.slane %v1342_v45, %v6618_v53  ;;  %v1357_v18 = vcombine.low %v1325_v48, %v1340_v46 }
 0x108   : > { %v2285_v60 = vcombine.high %v2281_v44, %v9438_v21  ;;  %v6759_v24 = vrot.slane %v1357_v18, %v6618_v53  ;;  %v1374_v45 = vcombine.high %v1356_v43, %v9438_v21 }
 0x10a   : > { %574 = vrot.lane.b32.xlu0 %v563_v9, %s6083_s8  ;;  %2317 = vrot.lane.b32.xlu1 %v2215_v15, %s6078_s23  ;;  %v1299_v9 = vshrl.u32 %v6581_v51, 16  ;;  %v2282_v51 = vcombine.high %v2258_v0, %v9438_v21 }
 0x10e   : > { %586 = vrot.lane.b32.xlu0 %v564_v55, %s6084_s11  ;;  %595 = vrot.lane.b32.xlu1 %v565_v57, %s6083_s8  ;;  %v1358_v55 = vcombine.high %v1325_v48, %v1340_v46  ;;  %v1301_v57 = vpack.i.b16 %v1300_v47, %v1299_v9 }
 0x110   : > { %v1372_v2 = vrot.slane %v1358_v55, %v6618_v53  ;;  %v1384_v15 = vrot.slane %v1301_v57, %v6458_v11  ;;  %v1377_v58 = vcombine.high %v1301_v57, %v6598_v7 }
 0x112   : > { %2287 = vrot.lane.b32.xlu0 %v2258_v0, %s6079_s29  ;;  %607 = vrot.lane.b32.xlu1 %v566_v63, %s6084_s11  ;;  %v1407_v63 = vcombine.low %v1384_v15, %v1399_v4  ;;  %v1341_v0 = vcombine.low %v1318_v40, %v1333_v25  ;;  %v1391_v62 = vrot.slane %v1377_v58, %v6458_v11 }
 0x113   : > { %v1375_v40 = vcombine.high %v6759_v24, %v9438_v21  ;;  %v1376_v14 = vcombine.high %v1372_v2, %v9438_v21 }
 0x114   : > { %v6751_v12 = vrot.slane %v1341_v0, %v6618_v53  ;;  %v1423_v17 = vcombine.low %v1391_v62, %v1406_v56  ;;  %v1424_v19 = vcombine.high %v1391_v62, %v1406_v56 }
 0x116   : > { %2290 = vrot.lane.b32.xlu0 %v2216_v8, %s6080_s19  ;;  %2308 = vrot.lane.b32.xlu1 %v2274_v10, %s6079_s29  ;;  %v1415_v8 = vrot.slane %v1407_v63, %v6618_v53  ;;  %v1373_v10 = vcombine.high %v6751_v12, %v9438_v21  ;;  %v1438_v46 = vrot.slane %v1424_v19, %v6618_v53 }
 0x118   : > { %v1439_v48 = vcombine.high %v1415_v8, %v9438_v21 }
 0x11a   : > { %2299 = vrot.lane.b32.xlu0 %v2265_v52, %s6081_s21  ;;  %2311 = vrot.lane.b32.xlu1 %v2218_v20, %s6080_s19  ;;  %v1431_v52 = vrot.slane %v1423_v17, %v6618_v53  ;;  %v1408_v20 = vcombine.high %v1384_v15, %v1399_v4 }
 0x11c   : > { %v1422_v41 = vrot.slane %v1408_v20, %v6618_v53  ;;  %v1441_v63 = vcombine.high %v1431_v52, %v9438_v21  ;;  %v1442_v20 = vcombine.high %v1438_v46, %v9438_v21 }
 0x11e   : > { %2302 = vrot.lane.b32.xlu0 %v2217_v42, %s6082_s9  ;;  %2320 = vrot.lane.b32.xlu1 %v2281_v44, %s6081_s21 }
 0x122   : > { %1453 = vrot.lane.b32.xlu0 %v1356_v43, %s6078_s23  ;;  %2323 = vrot.lane.b32.xlu1 %v2219_v49, %s6082_s9 }
 0x126   : > { %2293 = vrot.lane.b32.xlu0 %v2282_v51, %s6083_s8  ;;  %1474 = vrot.lane.b32.xlu1 %v1372_v2, %s6078_s23 }
 0x12a   : > { %2305 = vrot.lane.b32.xlu0 %v2283_v59, %s6084_s11  ;;  %2314 = vrot.lane.b32.xlu1 %v2284_v61, %s6083_s8  ;;  %v1440_v61 = vcombine.high %v1422_v41, %v9438_v21 }
 0x12e   : > { %1444 = vrot.lane.b32.xlu0 %v1415_v8, %s6079_s29  ;;  %2326 = vrot.lane.b32.xlu1 %v2285_v60, %s6084_s11 }
 0x132   : > { %1447 = vrot.lane.b32.xlu0 %v1373_v10, %s6080_s19  ;;  %1465 = vrot.lane.b32.xlu1 %v1431_v52, %s6079_s29 }
 0x133   : > { %v653_v42 = vpop.permute.xlu1 %652 }
 0x134   : > { %v651_v25 = vpop.permute.xlu0 %650  ;;  %v663_v57 = vshrl.u32 %v653_v42, 16 }
 0x135   : > { %v660_v9 = vpack.i.b16 %v653_v42, %v651_v25  ;;  %v662_v43 = vshrl.u32 %v651_v25, 16 }
 0x136   : > { %1456 = vrot.lane.b32.xlu0 %v1422_v41, %s6081_s21  ;;  %1468 = vrot.lane.b32.xlu1 %v1375_v40, %s6080_s19 }
 0x137   : > { %v674_v51 = vcombine.high %v660_v9, %v6598_v7  ;;  %v681_v58 = vrot.slane %v660_v9, %v6458_v11  ;;  %v664_v17 = vpack.i.b16 %v663_v57, %v662_v43 }
 0x138   : > { %v655_v44 = vpop.permute.xlu0 %654 }
 0x139   : > { %v670_v4 = vshrl.u32 %v655_v44, 16  ;;  %v688_v62 = vrot.slane %v674_v51, %v6458_v11  ;;  %v740_v42 = vcombine.high %v664_v17, %v6598_v7  ;;  %v747_v51 = vrot.slane %v664_v17, %v6458_v11 }
 0x13a   : > { %1459 = vrot.lane.b32.xlu0 %v1374_v45, %s6082_s9  ;;  %1477 = vrot.lane.b32.xlu1 %v1438_v46, %s6081_s21 }
 0x13c   : > { %v657_v16 = vpop.permute.xlu1 %656  ;;  %v6772_v47 = vpop.permute.xlu0 %976 }
 0x13d   : > { %v668_v49 = vpack.i.b16 %v657_v16, %v655_v44  ;;  %v671_v55 = vshrl.u32 %v657_v16, 16 }
 0x13e   : > { %1450 = vrot.lane.b32.xlu0 %v1439_v48, %s6083_s8  ;;  %1480 = vrot.lane.b32.xlu1 %v1376_v14, %s6082_s9 }
 0x13f   : > { %v689_v54 = vcombine.high %v668_v49, %v6598_v7  ;;  %v696_v15 = vrot.slane %v668_v49, %v6458_v11  ;;  %v672_v0 = vpack.i.b16 %v671_v55, %v670_v4 }
 0x140   : > { %v6782_v59 = vpop.permute.xlu1 %978  ;;  %v981_v2 = vpop.permute.xlu0 %980 }
 0x141   : > { %v703_v56 = vrot.slane %v689_v54, %v6458_v11  ;;  %v986_v60 = vpack.i.b16 %v6782_v59, %v6772_v47  ;;  %v705_v8 = vcombine.high %v681_v58, %v696_v15  ;;  %v755_v41 = vcombine.high %v672_v0, %v6598_v7 }
 0x142   : > { %1462 = vrot.lane.b32.xlu0 %v1440_v61, %s6084_s11  ;;  %1471 = vrot.lane.b32.xlu1 %v1441_v63, %s6083_s8  ;;  %v762_v46 = vrot.slane %v672_v0, %v6458_v11  ;;  %v754_v61 = vrot.slane %v740_v42, %v6458_v11  ;;  %v704_v63 = vcombine.low %v681_v58, %v696_v15  ;;  %v989_v15 = vshrl.u32 %v6782_v59, 16 }
 0x143   : > { %v6796_v52 = vrot.slane %v705_v8, %v6618_v53  ;;  %v721_v25 = vcombine.high %v688_v62, %v703_v56  ;;  %v1000_v40 = vcombine.high %v986_v60, %v6598_v7  ;;  %v6810_v9 = vrot.slane %v986_v60, %v6458_v11 }
 0x144   : > { %v983_v18 = vpop.permute.xlu1 %982  ;;  %v6792_v10 = vpop.permute.xlu0 %2408  ;;  %v769_v57 = vrot.slane %v755_v41, %v6458_v11  ;;  %v996_v58 = vshrl.u32 %v981_v2, 16 }
 0x145   : > { %v994_v19 = vpack.i.b16 %v983_v18, %v981_v2  ;;  %v6817_v14 = vrot.slane %v721_v25, %v6618_v53  ;;  %v6820_v49 = vrot.slane %v1000_v40, %v6458_v11  ;;  %v997_v0 = vshrl.u32 %v983_v18, 16 }
 0x146   : > { %1483 = vrot.lane.b32.xlu1 %v1442_v20, %s6084_s11  ;;  %816 = vrot.lane.b32.xlu0 %v6796_v52, %s6078_s23  ;;  %v770_v20 = vcombine.low %v747_v51, %v762_v46  ;;  %v786_v40 = vcombine.low %v754_v61, %v769_v57  ;;  %v6874_v2 = vrot.slane %v704_v63, %v6618_v53 }
 0x147   : > { %v1015_v44 = vcombine.high %v994_v19, %v6598_v7  ;;  %v6806_v45 = vrot.slane %v994_v19, %v6458_v11  ;;  %v720_v19 = vcombine.low %v688_v62, %v703_v56  ;;  %v787_v38 = vcombine.high %v754_v61, %v769_v57 }
 0x148   : > { %v6812_v16 = vpop.permute.xlu1 %2410  ;;  %v6814_v48 = vpop.permute.xlu0 %2412  ;;  %v6871_v59 = vrot.slane %v770_v20, %v6618_v53  ;;  %v6879_v39 = vrot.slane %v786_v40, %v6618_v53 }
 0x149   : > { %v6823_v55 = vrot.slane %v1015_v44, %v6458_v11  ;;  %v1031_v43 = vcombine.high %v6810_v9, %v6806_v45  ;;  %v6833_v4 = vpack.i.b16 %v6812_v16, %v6792_v10  ;;  %v988_v44 = vshrl.u32 %v6772_v47, 16 }
 0x14a   : > { %837 = vrot.lane.b32.xlu1 %v6817_v14, %s6078_s23  ;;  %v6882_v34 = vrot.slane %v720_v19, %v6618_v53 }
 0x14b   : > { %v1047_v54 = vcombine.high %v6820_v49, %v6823_v55  ;;  %v6843_v17 = vrot.slane %v1031_v43, %v6618_v53  ;;  %v6857_v18 = vrot.slane %v6833_v4, %v6458_v11  ;;  %v998_v43 = vpack.i.b16 %v997_v0, %v996_v58 }
 0x14c   : > { %v6838_v60 = vpop.permute.xlu1 %2414  ;;  %v6840_v8 = vpop.permute.xlu0 %2686  ;;  %v990_v47 = vpack.i.b16 %v989_v15, %v988_v44  ;;  %v736_v0 = vcombine.high %v6874_v2, %v9438_v21  ;;  %v771_v58 = vcombine.high %v747_v51, %v762_v46  ;;  %v738_v19 = vcombine.high %v6882_v34, %v9438_v21 }
 0x14d   : > { %v6847_v25 = vpack.i.b16 %v6838_v60, %v6814_v48  ;;  %v6850_v41 = vrot.slane %v1047_v54, %v6618_v53  ;;  %1142 = vrot.lane.b32.xlu0 %v6843_v17, %s6078_s23  ;;  %v1081_v40 = vcombine.high %v998_v43, %v6598_v7  ;;  %v1088_v44 = vrot.slane %v998_v43, %v6458_v11 }
 0x14e   : > { %v1066_v15 = vcombine.high %v990_v47, %v6598_v7  ;;  %v6906_v46 = vrot.slane %v771_v58, %v6618_v53  ;;  %v6909_v51 = vrot.slane %v787_v38, %v6618_v53  ;;  %v1073_v61 = vrot.slane %v990_v47, %v6458_v11 }
 0x14f   : > { %v6861_v42 = vrot.slane %v6847_v25, %v6458_v11  ;;  %1163 = vrot.lane.b32.xlu1 %v6850_v41, %s6078_s23  ;;  %v1095_v57 = vrot.slane %v1081_v40, %v6458_v11  ;;  %v737_v38 = vcombine.high %v6796_v52, %v9438_v21  ;;  %v739_v47 = vcombine.high %v6817_v14, %v9438_v21 }
 0x150   : > { %v6866_v56 = vpop.permute.xlu1 %2688  ;;  %v6868_v62 = vpop.permute.xlu0 %2690  ;;  %v1080_v43 = vrot.slane %v1066_v15, %v6458_v11  ;;  %v1096_v40 = vcombine.low %v1073_v61, %v1088_v44  ;;  %v1046_v37 = vcombine.low %v6820_v49, %v6823_v55  ;;  %v2429_v54 = vshrl.u32 %v6838_v60, 16 }
 0x151   : > { %807 = vrot.lane.b32.xlu0 %v6871_v59, %s6079_s29  ;;  %v2420_v60 = vshrl.u32 %v6792_v10, 16 }
 0x152   : > { %v1112_v32 = vcombine.low %v1080_v43, %v1095_v57  ;;  %v1104_v15 = vrot.slane %v1096_v40, %v6618_v53  ;;  %v6944_v14 = vrot.slane %v1046_v37, %v6618_v53  ;;  %v1113_v40 = vcombine.high %v1080_v43, %v1095_v57 }
 0x153   : > { %828 = vrot.lane.b32.xlu1 %v6879_v39, %s6079_s29  ;;  %v2428_v57 = vshrl.u32 %v6814_v48, 16  ;;  %v2447_v48 = vcombine.high %v6847_v25, %v6598_v7 }
 0x154   : > { %v6888_v20 = vpop.permute.xlu1 %2692  ;;  %v6890_v63 = vpop.permute.xlu0 %1565  ;;  %v6941_v36 = vrot.slane %v1112_v32, %v6618_v53  ;;  %v1064_v32 = vcombine.high %v6944_v14, %v9438_v21  ;;  %v6968_v31 = vrot.slane %v1113_v40, %v6618_v53 }
 0x155   : > { %810 = vrot.lane.b32.xlu0 %v736_v0, %s6080_s19  ;;  %v1030_v0 = vcombine.low %v6810_v9, %v6806_v45  ;;  %v7002_v25 = vrot.slane %v2447_v48, %v6458_v11  ;;  %v1577_v29 = vshrl.u32 %v6890_v63, 16 }
 0x157   : > { %831 = vrot.lane.b32.xlu1 %v738_v19, %s6080_s19  ;;  %v6938_v52 = vrot.slane %v1030_v0, %v6618_v53  ;;  %v1097_v0 = vcombine.high %v1073_v61, %v1088_v44  ;;  %v2421_v44 = vshrl.u32 %v6812_v16, 16 }
 0x158   : > { %v6901_v33 = vpop.permute.xlu1 %1567  ;;  %v6903_v35 = vpop.permute.xlu0 %1569 }
 0x159   : > { %819 = vrot.lane.b32.xlu0 %v6906_v46, %s6081_s21  ;;  %v6964_v3 = vrot.slane %v1097_v0, %v6618_v53  ;;  %v2430_v0 = vpack.i.b16 %v2429_v54, %v2428_v57  ;;  %v2422_v16 = vpack.i.b16 %v2421_v44, %v2420_v60  ;;  %v2432_v54 = vcombine.high %v6833_v4, %v6598_v7 }
 0x15a   : > { %v805_v60 = vcombine.high %v6909_v51, %v9438_v21 }
 0x15b   : > { %840 = vrot.lane.b32.xlu1 %v6909_v51, %s6081_s21  ;;  %v2513_v10 = vcombine.high %v2430_v0, %v6598_v7  ;;  %v2498_v44 = vcombine.high %v2422_v16, %v6598_v7  ;;  %v1575_v51 = vpack.i.b16 %v6901_v33, %v6890_v63  ;;  %v1129_v63 = vcombine.high %v6964_v3, %v9539_v28 }
 0x15c   : > { %v6920_v58 = vpop.permute.xlu1 %1571  ;;  %v6922_v19 = vpop.permute.xlu0 %1843 }
 0x15d   : > { %822 = vrot.lane.b32.xlu0 %v737_v38, %s6082_s9  ;;  %v1062_v38 = vcombine.high %v6938_v52, %v9438_v21  ;;  %v7012_v4 = vrot.slane %v2513_v10, %v6458_v11  ;;  %v1583_v48 = vpack.i.b16 %v6920_v58, %v6903_v35  ;;  %v1589_v23 = vcombine.high %v1575_v51, %v6598_v7 }
 0x15f   : > { %843 = vrot.lane.b32.xlu1 %v739_v47, %s6082_s9 }
 0x160   : > { %v6932_v45 = vpop.permute.xlu1 %1845  ;;  %v6934_v9 = vpop.permute.xlu0 %1847 }
 0x161   : > { %1133 = vrot.lane.b32.xlu0 %v1104_v15, %s6079_s29 }
 0x163   : > { %1154 = vrot.lane.b32.xlu1 %v6941_v36, %s6079_s29 }
 0x164   : > { %v6949_v49 = vpop.permute.xlu1 %1849  ;;  %v6951_v55 = vpop.permute.xlu0 %577 }
 0x165   : > { %1136 = vrot.lane.b32.xlu0 %v1062_v38, %s6080_s19  ;;  %v1063_v38 = vcombine.high %v6843_v17, %v9438_v21  ;;  %v802_v17 = vcombine.high %v6871_v59, %v9438_v21  ;;  %v1861_v22 = vpack.i.b16 %v6949_v49, %v6934_v9 }
 0x167   : > { %1157 = vrot.lane.b32.xlu1 %v1064_v32, %s6080_s19  ;;  %v1065_v32 = vcombine.high %v6850_v41, %v9438_v21  ;;  %v804_v41 = vcombine.high %v6879_v39, %v9438_v21  ;;  %v7009_v39 = vrot.slane %v2430_v0, %v6458_v11  ;;  %v7024_v0 = vrot.slane %v2498_v44, %v6458_v11 }
 0x168   : > { %v6959_v37 = vpop.permute.xlu1 %598  ;;  %v6961_v47 = vpop.permute.xlu0 %568  ;;  %v1604_v44 = vcombine.high %v1583_v48, %v6598_v7 }
 0x169   : > { %1145 = vrot.lane.b32.xlu0 %v6964_v3, %s6081_s21  ;;  %v7074_v3 = vrot.slane %v1575_v51, %v6458_v11 }
 0x16a   : > { %v7083_v26 = vrot.slane %v1604_v44, %v6458_v11 }
 0x16b   : > { %1166 = vrot.lane.b32.xlu1 %v6968_v31, %s6081_s21 }
 0x16c   : > { %v6976_v61 = vpop.permute.xlu1 %589  ;;  %v572_v43 = vpop.permute.xlu0 %571 }
 0x16d   : > { %1148 = vrot.lane.b32.xlu0 %v1063_v38, %s6082_s9  ;;  %v803_v38 = vcombine.high %v6906_v46, %v9438_v21  ;;  %v7021_v46 = vrot.slane %v2422_v16, %v6458_v11  ;;  %v1586_v16 = vshrl.u32 %v6920_v58, 16  ;;  %v633_v51 = vsel %vm609_vm8, %v6649_v1, %v6976_v61 }
 0x16e   : > { %v1882_v1 = vcombine.high %v1861_v22, %v6598_v7 }
 0x16f   : > { %1169 = vrot.lane.b32.xlu1 %v1065_v32, %s6082_s9  ;;  %v7017_v32 = vrot.slane %v2432_v54, %v6458_v11  ;;  %v1130_v54 = vcombine.high %v6941_v36, %v9438_v21  ;;  %v1578_v36 = vshrl.u32 %v6901_v33, 16 }
 0x170   : > { %v6987_v40 = vpop.permute.xlu1 %592  ;;  %v6989_v27 = vpop.permute.xlu0 %580 }
 0x171   : > { %813 = vrot.lane.b32.xlu0 %v802_v17, %s6083_s8  ;;  %v1128_v17 = vcombine.high %v1104_v15, %v9438_v21  ;;  %v2462_v15 = vcombine.low %v6857_v18, %v6861_v42  ;;  %v1585_v21 = vshrl.u32 %v6903_v35, 16  ;;  %v2528_v35 = vcombine.low %v7021_v46, %v7009_v39 }
 0x173   : > { %834 = vrot.lane.b32.xlu1 %v804_v41, %s6083_s8  ;;  %v7096_v44 = vrot.slane %v2528_v35, %v6618_v53 }
 0x174   : > { %v7004_v57 = vpop.permute.xlu1 %601  ;;  %v584_v59 = vpop.permute.xlu0 %583 }
 0x175   : > { %825 = vrot.lane.b32.xlu0 %v803_v38, %s6084_s11  ;;  %v612_v38 = vsel %vm609_vm8, %v6637_v50, %v6961_v47  ;;  %v1131_v50 = vcombine.high %v6968_v31, %v9539_v28  ;;  %v1853_v31 = vpack.i.b16 %v6932_v45, %v6922_v19 }
 0x176   : > { %v615_v58 = vsel %vm613_vm9, %v612_v38, %v572_v43  ;;  %v1587_v43 = vpack.i.b16 %v1586_v16, %v1585_v21  ;;  %v7077_v38 = vrot.slane %v1583_v48, %v6458_v11 }
 0x177   : > { %846 = vrot.lane.b32.xlu1 %v805_v60, %s6084_s11  ;;  %v2478_v60 = vcombine.low %v7017_v32, %v7002_v25  ;;  %v1867_v35 = vcombine.high %v1853_v31, %v6598_v7 }
 0x178   : > { %v7032_v10 = vpop.permute.xlu1 %604  ;;  %v7034_v41 = vpop.permute.xlu0 %2296 }
 0x179   : > { %1139 = vrot.lane.b32.xlu0 %v1128_v17, %s6083_s8 }
 0x17b   : > { %1160 = vrot.lane.b32.xlu1 %v1130_v54, %s6083_s8  ;;  %v2544_v54 = vcombine.low %v7024_v0, %v7012_v4 }
 0x17c   : > { %v7062_v17 = vpop.permute.xlu1 %2317  ;;  %v575_v33 = vpop.permute.xlu0 %574 }
 0x17d   : > { %v618_v47 = vsel %vm616_vm10, %v615_v58, %v575_v33  ;;  %1151 = vrot.lane.b32.xlu0 %v1129_v63, %s6084_s11  ;;  %v7099_v63 = vrot.slane %v2462_v15, %v6618_v53  ;;  %v7105_v33 = vrot.slane %v2544_v54, %v6618_v53 }
 0x17e   : > { %v621_v30 = vsel %vm619_vm11, %v618_v47, %v6951_v55  ;;  %v635_v55 = vsel %vm613_vm9, %v633_v51, %v6987_v40  ;;  %v7111_v40 = vrot.slane %v1589_v23, %v6458_v11  ;;  %v7136_v51 = vrot.slane %v1882_v1, %v6458_v11 }
 0x17f   : > { %1172 = vrot.lane.b32.xlu1 %v1131_v50, %s6084_s11  ;;  %v624_v21 = vsel %vm622_vm12, %v621_v30, %v6989_v27  ;;  %9540 = vst [vmem:[#allocation20_spill] sm:$0xff] %v7099_v63  ;;  %v7108_v27 = vrot.slane %v2478_v60, %v6618_v53  ;;  %v1579_v30 = vpack.i.b16 %v1578_v36, %v1577_v29 }
 0x180   : > { %v596_v48 = vpop.permute.xlu1 %595  ;;  %v587_v16 = vpop.permute.xlu0 %586  ;;  %v627_v58 = vsel %vm625_vm13, %v624_v21, %v584_v59  ;;  %v1620_v59 = vcombine.high %v7074_v3, %v7077_v38  ;;  %v1670_v60 = vcombine.high %v1587_v43, %v6598_v7  ;;  %v2494_v47 = vcombine.high %v7099_v63, %v9539_v28 }
 0x181   : > { %v637_v61 = vsel %vm616_vm10, %v635_v55, %v596_v48  ;;  %9541 = vst [vmem:[#allocation21_spill] sm:$0xff] %v7108_v27  ;;  %2565 = vrot.lane.b32.xlu0 %v7096_v44, %s6079_s29  ;;  %v630_v23 = vsel %vm628_vm14, %v627_v58, %v587_v16  ;;  %v2496_v21 = vcombine.high %v7108_v27, %v9539_v28  ;;  %v404_v58 = vld [vmem:[%s9422_s1] sm:$0xf] }
 0x182   : > { %v639_v15 = vsel %vm619_vm11, %v637_v61, %v6959_v37  ;;  %v7127_v37 = vrot.slane %v1861_v22, %v6458_v11  ;;  %v1636_v22 = vcombine.high %v7111_v40, %v7083_v26  ;;  %v7144_v55 = vrot.slane %v1853_v31, %v6458_v11 }
 0x183   : > { %2586 = vrot.lane.b32.xlu1 %v7105_v33, %s6079_s29  ;;  %v641_v29 = vsel %vm622_vm12, %v639_v15, %v7004_v57  ;;  %v1655_v48 = vcombine.high %v1579_v30, %v6598_v7  ;;  %v7151_v16 = vrot.slane %v1867_v35, %v6458_v11  ;;  %v1677_v31 = vrot.slane %v1587_v43, %v6458_v11 }
 0x184   : > { %v608_v36 = vpop.permute.xlu1 %607  ;;  %v7129_v50 = vpop.permute.xlu0 %2287  ;;  %v643_v54 = vsel %vm625_vm13, %v641_v29, %v7032_v10  ;;  %v931_v10 = vsel %vm882_vm15, %v630_v23, 0  ;;  %v1898_v1 = vcombine.high %v7144_v55, %v7127_v37  ;;  %v1634_v35 = vrot.slane %v1620_v59, %v6618_v53 }
 0x185   : > { %v645_v57 = vsel %vm628_vm14, %v643_v54, %v608_v36  ;;  %2568 = vrot.lane.b32.xlu0 %v2494_v47, %s6080_s19  ;;  %v1684_v29 = vrot.slane %v1670_v60, %v6458_v11  ;;  %v1650_v23 = vrot.slane %v1636_v22, %v6618_v53  ;;  %v1914_v36 = vcombine.high %v7151_v16, %v7136_v51 }
 0x186   : > { %5781 = vmatprep.subr.msk.bf16.mxu1 %vm882_vm15, %v645_v57  ;;  %v1662_v47 = vrot.slane %v1579_v30, %v6458_v11  ;;  %v1669_v43 = vrot.slane %v1655_v48, %v6458_v11  ;;  %v1619_v59 = vcombine.low %v7074_v3, %v7077_v38  ;;  %v7182_v57 = vrot.slane %v1898_v1, %v6618_v53 }
 0x187   : > { %2589 = vrot.lane.b32.xlu1 %v2496_v21, %s6080_s19  ;;  %936 = vmatpush1.bf16.msra.mxu1 %v931_v10  ;;  %v1635_v21 = vcombine.low %v7111_v40, %v7083_v26  ;;  %v1864_v22 = vshrl.u32 %v6949_v49, 16  ;;  %v7188_v10 = vrot.slane %v1914_v36, %v6618_v53  ;;  %v1856_v3 = vshrl.u32 %v6932_v45, 16 }
 0x188   : > { %v7160_v61 = vpop.permute.xlu1 %2308  ;;  %v7162_v15 = vpop.permute.xlu0 %2290  ;;  %v1685_v30 = vcombine.low %v1662_v47, %v1677_v31  ;;  %v1701_v48 = vcombine.low %v1669_v43, %v1684_v29  ;;  %v1863_v38 = vshrl.u32 %v6934_v9, 16  ;;  %v7204_v49 = vrot.slane %v1619_v59, %v6618_v53 }
 0x189   : > { %1731 = vrot.lane.b32.xlu0 %v1634_v35, %s6078_s23  ;;  %v1855_v40 = vshrl.u32 %v6922_v19, 16  ;;  %v7211_v9 = vrot.slane %v1635_v21, %v6618_v53 }
 0x18a   : > { %5782 = vmatmul.mubr.msk.bf16.vlgmr.msra.gmra.mrb[0].mxu1 %vm878_vm0, %v404_v58  ;;  %v7201_v26 = vrot.slane %v1685_v30, %v6618_v53  ;;  %v1865_v36 = vpack.i.b16 %v1864_v22, %v1863_v38  ;;  %v7208_v45 = vrot.slane %v1701_v48, %v6618_v53  ;;  %v1651_v19 = vcombine.high %v7204_v49, %v9539_v28 }
 0x18b   : > { %1752 = vrot.lane.b32.xlu1 %v1650_v23, %s6078_s23  ;;  %1554 = vmatprep.mubr.bf16.mxu1 %v9539_v28  ;;  %v1857_v27 = vpack.i.b16 %v1856_v3, %v1855_v40  ;;  %v1686_v22 = vcombine.high %v1662_v47, %v1677_v31  ;;  %v1653_v21 = vcombine.high %v7211_v9, %v9539_v28 }
 0x18c   : > { %v7177_v60 = vpop.permute.xlu1 %2311  ;;  %v7179_v54 = vpop.permute.xlu0 %2299  ;;  %v1948_v48 = vcombine.high %v1865_v36, %v6598_v7  ;;  %v1702_v38 = vcombine.high %v1669_v43, %v1684_v29  ;;  %v1955_v40 = vrot.slane %v1865_v36, %v6458_v11  ;;  %v1897_v36 = vcombine.low %v7144_v55, %v7127_v37 }
 0x18d   : > { %9542 = vst [vmem:[#allocation22_spill] sm:$0xff] %v7179_v54  ;;  %2009 = vrot.lane.b32.xlu0 %v7182_v57, %s6078_s23  ;;  %v1933_v3 = vcombine.high %v1857_v27, %v6598_v7  ;;  %v7235_v31 = vrot.slane %v1686_v22, %v6618_v53  ;;  %v1940_v29 = vrot.slane %v1857_v27, %v6458_v11 }
 0x18e   : > { %v1962_v47 = vrot.slane %v1948_v48, %v6458_v11  ;;  %v1652_v48 = vcombine.high %v1634_v35, %v9539_v28  ;;  %v1913_v27 = vcombine.low %v7151_v16, %v7136_v51 }
 0x18f   : > { %2030 = vrot.lane.b32.xlu1 %v7188_v10, %s6078_s23  ;;  %v1947_v43 = vrot.slane %v1933_v3, %v6458_v11 }
 0x190   : > { %v7196_v58 = vpop.permute.xlu1 %2320  ;;  %v7198_v1 = vpop.permute.xlu0 %2302  ;;  %v7269_v51 = vrot.slane %v1913_v27, %v6618_v53 }
 0x191   : > { %9543 = vst [vmem:[#allocation23_spill] sm:$0xff] %v7196_v58  ;;  %9544 = vst [vmem:[#allocation24_spill] sm:$0xff] %v7198_v1  ;;  %1722 = vrot.lane.b32.xlu0 %v7201_v26, %s6079_s29  ;;  %v7239_v1 = vrot.slane %v1702_v38, %v6618_v53  ;;  %v1654_v38 = vcombine.high %v1650_v23, %v9539_v28  ;;  %v1979_v58 = vcombine.low %v1947_v43, %v1962_v47 }
 0x192   : > { %9549 = vst [vmem:[#allocation29_spill] sm:$0xff] %v7269_v51 }
 0x193   : > { %1743 = vrot.lane.b32.xlu1 %v7208_v45, %s6079_s29  ;;  %v7266_v35 = vrot.slane %v1979_v58, %v6618_v53 }
 0x194   : > { %v7217_v30 = vpop.permute.xlu1 %2323  ;;  %v7219_v59 = vpop.permute.xlu0 %1453 }
 0x195   : > { %9545 = vst [vmem:[#allocation25_spill] sm:$0xff] %v7217_v30  ;;  %1725 = vrot.lane.b32.xlu0 %v1651_v19, %s6080_s19 }
 0x197   : > { %1746 = vrot.lane.b32.xlu1 %v1653_v21, %s6080_s19  ;;  %v1963_v21 = vcombine.low %v1940_v29, %v1955_v40 }
 0x198   : > { %v7230_v63 = vpop.permute.xlu1 %1474  ;;  %v7232_v30 = vpop.permute.xlu0 %2293 }
 0x199   : > { %1734 = vrot.lane.b32.xlu0 %v7235_v31, %s6081_s21  ;;  %v1971_v55 = vrot.slane %v1963_v21, %v6618_v53  ;;  %v1964_v21 = vcombine.high %v1940_v29, %v1955_v40 }
 0x19b   : > { %1755 = vrot.lane.b32.xlu1 %v7239_v1, %s6081_s21 }
 0x19c   : > { %v7249_v19 = vpop.permute.xlu1 %2314  ;;  %v7251_v22 = vpop.permute.xlu0 %2305 }
 0x19d   : > { %9546 = vst [vmem:[#allocation26_spill] sm:$0xff] %v7251_v22  ;;  %1737 = vrot.lane.b32.xlu0 %v1652_v48, %s6082_s9  ;;  %v7263_v22 = vrot.slane %v1897_v36, %v6618_v53  ;;  %v1931_v36 = vcombine.high %v7269_v51, %v9539_v28  ;;  %v1717_v51 = vcombine.high %v7201_v26, %v9539_v28 }
 0x19f   : > { %1758 = vrot.lane.b32.xlu1 %v1654_v38, %s6082_s9  ;;  %9548 = vst [vmem:[#allocation28_spill] sm:$0xff] %v7263_v22  ;;  %v1929_v48 = vcombine.high %v7263_v22, %v9539_v28  ;;  %v1980_v38 = vcombine.high %v1947_v43, %v1962_v47  ;;  %v1930_v47 = vcombine.high %v7182_v57, %v9539_v28  ;;  %v2707_v22 = vshrl.u32 %v6888_v20, 16 }
 0x1a0   : > { %v7259_v3 = vpop.permute.xlu1 %2326  ;;  %v1445_v37 = vpop.permute.xlu0 %1444  ;;  %v1932_v43 = vcombine.high %v7188_v10, %v9539_v28  ;;  %v2562_v10 = vcombine.high %v7105_v33, %v9539_v28 }
 0x1a1   : > { %9547 = vst [vmem:[#allocation27_spill] sm:$0xff] %v7259_v3  ;;  %2000 = vrot.lane.b32.xlu0 %v1971_v55, %s6079_s29  ;;  %v1978_v3 = vrot.slane %v1964_v21, %v6618_v53  ;;  %v7282_v54 = vrot.slane %v1980_v38, %v6618_v53 }
 0x1a3   : > { %2021 = vrot.lane.b32.xlu1 %v7266_v35, %s6079_s29 }
 0x1a4   : > { %v1466_v16 = vpop.permute.xlu1 %1465  ;;  %v1448_v23 = vpop.permute.xlu0 %1447 }
 0x1a5   : > { %2003 = vrot.lane.b32.xlu0 %v1929_v48, %s6080_s19  ;;  %v1487_v48 = vsel %vm609_vm8, %v6751_v12, %v1445_v37  ;;  %v2699_v12 = vshrl.u32 %v6866_v56, 16  ;;  %v2706_v37 = vshrl.u32 %v6868_v62, 16 }
 0x1a6   : > { %v1489_v21 = vsel %vm613_vm9, %v1487_v48, %v1448_v23  ;;  %v1502_v23 = vsel %vm609_vm8, %v6759_v24, %v1466_v16  ;;  %v1719_v24 = vcombine.high %v7208_v45, %v9539_v28  ;;  %v2704_v45 = vpack.i.b16 %v6888_v20, %v6868_v62  ;;  %v407_v62 = vld [vmem:[%s9422_s1 + $0xc] sm:$0xf] }
 0x1a7   : > { %2024 = vrot.lane.b32.xlu1 %v1931_v36, %s6080_s19 }
 0x1a8   : > { %v1469_v58 = vpop.permute.xlu1 %1468  ;;  %v1457_v27 = vpop.permute.xlu0 %1456 }
 0x1a9   : > { %2012 = vrot.lane.b32.xlu0 %v1978_v3, %s6081_s21 }
 0x1ab   : > { %2033 = vrot.lane.b32.xlu1 %v7282_v54, %s6081_s21 }
 0x1ac   : > { %v1478_v40 = vpop.permute.xlu1 %1477  ;;  %v1460_v29 = vpop.permute.xlu0 %1459 }
 0x1ad   : > { %2015 = vrot.lane.b32.xlu0 %v1930_v47, %s6082_s9 }
 0x1af   : > { %2036 = vrot.lane.b32.xlu1 %v1932_v43, %s6082_s9  ;;  %v1504_v43 = vsel %vm613_vm9, %v1502_v23, %v1469_v58  ;;  %v1996_v23 = vcombine.high %v1978_v3, %v9539_v28  ;;  %v2732_v3 = vrot.slane %v2704_v45, %v6458_v11 }
 0x1b0   : > { %v1481_v36 = vpop.permute.xlu1 %1480  ;;  %v1451_v38 = vpop.permute.xlu0 %1450 }
 0x1b1   : > { %v1491_v57 = vsel %vm616_vm10, %v1489_v21, %v1451_v38  ;;  %1728 = vrot.lane.b32.xlu0 %v1717_v51, %s6083_s8  ;;  %v2698_v51 = vshrl.u32 %v6840_v8, 16  ;;  %v2708_v38 = vpack.i.b16 %v2707_v22, %v2706_v37 }
 0x1b2   : > { %v1493_v47 = vsel %vm619_vm11, %v1491_v57, %v7219_v59  ;;  %v1718_v59 = vcombine.high %v7235_v31, %v9539_v28 }
 0x1b3   : > { %2592 = vrot.lane.b32.xlu1 %v2562_v10, %s6083_s8  ;;  %v1495_v26 = vsel %vm622_vm12, %v1493_v47, %v1457_v27  ;;  %v2700_v58 = vpack.i.b16 %v2699_v12, %v2698_v51  ;;  %v1995_v10 = vcombine.high %v1971_v55, %v9539_v28  ;;  %v2791_v47 = vcombine.high %v2708_v38, %v6598_v7 }
 0x1b4   : > { %v1472_v48 = vpop.permute.xlu1 %1471  ;;  %v1497_v33 = vsel %vm625_vm13, %v1495_v26, %v1460_v29  ;;  %v1463_v21 = vpop.permute.xlu0 %1462  ;;  %v1720_v12 = vcombine.high %v7239_v1, %v9539_v28  ;;  %v7344_v20 = vrot.slane %v2708_v38, %v6458_v11  ;;  %v1997_v26 = vcombine.high %v7266_v35, %v9539_v28 }
 0x1b5   : > { %v1506_v57 = vsel %vm616_vm10, %v1504_v43, %v1472_v48  ;;  %1740 = vrot.lane.b32.xlu0 %v1718_v59, %s6084_s11  ;;  %v1499_v27 = vsel %vm628_vm14, %v1497_v33, %v1463_v21  ;;  %v2776_v55 = vcombine.high %v2700_v58, %v6598_v7  ;;  %v7358_v43 = vrot.slane %v2700_v58, %v6458_v11 }
 0x1b6   : > { %v1508_v16 = vsel %vm619_vm11, %v1506_v57, %v7230_v63  ;;  %v1518_v37 = vsel %vm882_vm15, %v1499_v27, 0  ;;  %v2560_v35 = vcombine.high %v7096_v44, %v9539_v28  ;;  %v1998_v38 = vcombine.high %v7282_v54, %v9539_v28 }
 0x1b7   : > { %1749 = vrot.lane.b32.xlu1 %v1719_v24, %s6083_s8  ;;  %v1510_v31 = vsel %vm622_vm12, %v1508_v16, %v1478_v40  ;;  %v2696_v40 = vpack.i.b16 %v6866_v56, %v6840_v8  ;;  %v2725_v8 = vcombine.high %v2704_v45, %v6598_v7  ;;  %v7353_v56 = vrot.slane %v2791_v47, %v6458_v11 }
 0x1b8   : > { %v1512_v29 = vsel %vm625_vm13, %v1510_v31, %v1481_v36  ;;  %v1484_v22 = vpop.permute.xlu1 %1483  ;;  %v7346_v1 = vpop.permute.xlu0 %816  ;;  %v7364_v33 = vrot.slane %v2776_v55, %v6458_v11  ;;  %v2806_v59 = vcombine.low %v7358_v43, %v7344_v20 }
 0x1b9   : > { %v1514_v63 = vsel %vm628_vm14, %v1512_v29, %v1484_v22  ;;  %2006 = vrot.lane.b32.xlu0 %v1995_v10, %s6083_s8  ;;  %v2710_v48 = vcombine.high %v2696_v40, %v6598_v7  ;;  %v2739_v51 = vrot.slane %v2725_v8, %v6458_v11  ;;  %v2717_v24 = vrot.slane %v2696_v40, %v6458_v11 }
 0x1ba   : > { %5785 = vmatprep.subr.msk.bf16.mxu1 %vm882_vm15, %v1514_v63  ;;  %v2822_v57 = vcombine.low %v7364_v33, %v7353_v56  ;;  %v2814_v27 = vrot.slane %v2806_v59, %v6618_v53  ;;  %v9550_v10 = vcombine.high %v6857_v18, %v6861_v42 }
 0x1bb   : > { %1761 = vrot.lane.b32.xlu1 %v1720_v12, %s6084_s11  ;;  %1523 = vmatpush1.bf16.msra.mxu1 %v1518_v37  ;;  %v2724_v16 = vrot.slane %v2710_v48, %v6458_v11  ;;  %v2740_v44 = vcombine.low %v2717_v24, %v2732_v3  ;;  %v9551_v12 = vcombine.high %v7017_v32, %v7002_v25 }
 0x1bc   : > { %v7348_v36 = vpop.permute.xlu1 %837  ;;  %v2830_v54 = vrot.slane %v2822_v57, %v6618_v53  ;;  %v2477_v45 = vrot.slane %v9550_v10, %v6618_v53  ;;  %v9552_v32 = vcombine.high %v7021_v46, %v7009_v39  ;;  %v2741_v57 = vcombine.high %v2717_v24, %v2732_v3 }
 0x1bd   : > { %2018 = vrot.lane.b32.xlu0 %v1996_v23, %s6084_s11  ;;  %v2756_v31 = vcombine.low %v2724_v16, %v2739_v51  ;;  %v7399_v47 = vrot.slane %v2740_v44, %v6618_v53  ;;  %v2493_v37 = vrot.slane %v9551_v12, %v6618_v53  ;;  %v2757_v12 = vcombine.high %v2724_v16, %v2739_v51  ;;  %v3470_v51 = vld [vmem:[%s9423_s2] sm:$0xff] }
 0x1be   : > { %5786 = vmatmul.mubr.msk.bf16.vlgmr.msra.gmra.mrb[4].mxu1 %vm878_vm0, %v407_v62  ;;  %v2543_v23 = vrot.slane %v9552_v32, %v6618_v53  ;;  %v2840_v46 = vcombine.high %v2830_v54, %v9539_v28 }
 0x1bf   : > { %2027 = vrot.lane.b32.xlu1 %v1997_v26, %s6083_s8  ;;  %2110 = vmatprep.mubr.bf16.mxu1 %v9539_v28  ;;  %v7369_v21 = vpop.permute.xlu0 %1142  ;;  %v7406_v40 = vrot.slane %v2756_v31, %v6618_v53  ;;  %v2772_v18 = vcombine.high %v7399_v47, %v9539_v28  ;;  %v9553_v26 = vcombine.high %v7024_v0, %v7012_v4  ;;  %v6086_v4 = vmov 1966171168  }
 0x1c0   : > { %v3474_v0 = vunpack.c.l.s4 %v6086_v4  ;;  %v2495_v31 = vcombine.high %v2477_v45, %v9539_v28  ;;  %v2771_v3 = vrot.slane %v2757_v12, %v6618_v53 }
 0x1c1   : > { %v7376_v7 = vpop.permute.xlu1 %1163  ;;  %2571 = vrot.lane.b32.xlu0 %v2560_v35, %s6083_s8  ;;  %v2774_v62 = vcombine.high %v7406_v40, %v9539_v28  ;;  %v2559_v48 = vrot.slane %v9553_v26, %v6618_v53  ;;  %v6085_v35 = vmov 1  }
 0x1c2   : > { %5904 = vset.pattern.permute.xlu0 %v6085_v35  ;;  %5905 = vset.pattern.permute.xlu1 %v6085_v35 }
 0x1c3   : > { %2039 = vrot.lane.b32.xlu1 %v1998_v38, %s6084_s11  ;;  %v7386_v58 = vpop.permute.xlu0 %807  ;;  %v2838_v38 = vcombine.high %v2814_v27, %v9539_v28 }
 0x1c5   : > { %v7389_v29 = vpop.permute.xlu1 %828  ;;  %2843 = vrot.lane.b32.xlu0 %v2814_v27, %s6079_s29  ;;  %v2497_v27 = vcombine.high %v2493_v37, %v9539_v28 }
 0x1c7   : > { %2864 = vrot.lane.b32.xlu1 %v2830_v54, %s6079_s29  ;;  %v811_v22 = vpop.permute.xlu0 %810 }
 0x1c9   : > { %v832_v63 = vpop.permute.xlu1 %831  ;;  %2574 = vrot.lane.b32.xlu0 %v2477_v45, %s6078_s23  ;;  %v2561_v45 = vcombine.high %v2543_v23, %v9539_v28 }
 0x1cb   : > { %2595 = vrot.lane.b32.xlu1 %v2493_v37, %s6078_s23  ;;  %v7410_v55 = vpop.permute.xlu0 %819  ;;  %v2807_v37 = vcombine.high %v7358_v43, %v7344_v20  ;;  %v865_v20 = vsel %vm609_vm8, %v6882_v34, %v7389_v29 }
 0x1cd   : > { %v7414_v42 = vpop.permute.xlu1 %840  ;;  %2846 = vrot.lane.b32.xlu0 %v2772_v18, %s6080_s19  ;;  %v3475_v18 = vunpack.c.0.s8 %v3474_v0  ;;  %v850_v0 = vsel %vm609_vm8, %v6874_v2, %v7386_v58 }
 0x1ce   : > { %v852_v43 = vsel %vm613_vm9, %v850_v0, %v811_v22 }
 0x1cf   : > { %2867 = vrot.lane.b32.xlu1 %v2774_v62, %s6080_s19  ;;  %v7420_v25 = vpop.permute.xlu0 %822  ;;  %v2755_v62 = vrot.slane %v2741_v57, %v6618_v53  ;;  %v7458_v24 = vsub.s32 %v3475_v18, %v6432_v5 }
 0x1d1   : > { %v7426_v8 = vpop.permute.xlu1 %843  ;;  %2577 = vrot.lane.b32.xlu0 %v2543_v23, %s6081_s21  ;;  %v3479_v4 = vrot.slane %v3470_v51, %v7458_v24  ;;  %v2773_v12 = vcombine.high %v2755_v62, %v9539_v28 }
 0x1d3   : > { %2598 = vrot.lane.b32.xlu1 %v2559_v48, %s6081_s21  ;;  %v7435_v59 = vpop.permute.xlu0 %1133  ;;  %v3487_v34 = vcombine.high %v3479_v4, %v3479_v4 }
 0x1d5   : > { %v7439_v39 = vpop.permute.xlu1 %1154  ;;  %2849 = vrot.lane.b32.xlu0 %v2838_v38, %s6083_s8  ;;  %v2563_v38 = vcombine.high %v2559_v48, %v9539_v28  ;;  %v2821_v48 = vrot.slane %v2807_v37, %v6618_v53 }
 0x1d7   : > { %2870 = vrot.lane.b32.xlu1 %v2840_v46, %s6083_s8  ;;  %v1137_v44 = vpop.permute.xlu0 %1136  ;;  %v2823_v46 = vcombine.high %v7364_v33, %v7353_v56  ;;  %v867_v56 = vsel %vm613_vm9, %v865_v20, %v832_v63  ;;  %v2839_v0 = vcombine.high %v2821_v48, %v9539_v28 }
 0x1d9   : > { %v7445_v10 = vpop.permute.xlu1 %1157  ;;  %2580 = vrot.lane.b32.xlu0 %v2495_v31, %s6082_s9  ;;  %v2837_v31 = vrot.slane %v2823_v46, %v6618_v53  ;;  %v1191_v46 = vsel %vm609_vm8, %v6944_v14, %v7439_v39 }
 0x1db   : > { %2601 = vrot.lane.b32.xlu1 %v2497_v27, %s6082_s9  ;;  %v7450_v54 = vpop.permute.xlu0 %1145  ;;  %v3472_v27 = vcombine.high %v3470_v51, %v3470_v51 }
 0x1dd   : > { %v7453_v32 = vpop.permute.xlu1 %1166  ;;  %2852 = vrot.lane.b32.xlu0 %v2755_v62, %s6078_s23  ;;  %v3495_v62 = vrot.slane %v3479_v4, %v7458_v24 }
 0x1df   : > { %2873 = vrot.lane.b32.xlu1 %v2771_v3, %s6078_s23  ;;  %v7464_v16 = vpop.permute.xlu0 %1148 }
 0x1e1   : > { %v7469_v26 = vpop.permute.xlu1 %1169  ;;  %2583 = vrot.lane.b32.xlu0 %v2561_v45, %s6084_s11 }
 0x1e3   : > { %2604 = vrot.lane.b32.xlu1 %v2563_v38, %s6084_s11  ;;  %v814_v23 = vpop.permute.xlu0 %813  ;;  %v3486_v38 = vrot.slane %v3472_v27, %v7458_v24 }
 0x1e4   : > { %v854_v33 = vsel %vm616_vm10, %v852_v43, %v814_v23  ;;  %v2841_v23 = vcombine.high %v2837_v31, %v9539_v28 }
 0x1e5   : > { %v835_v57 = vpop.permute.xlu1 %834  ;;  %v856_v2 = vsel %vm619_vm11, %v854_v33, %v7346_v1  ;;  %2855 = vrot.lane.b32.xlu0 %v2821_v48, %s6081_s21 }
 0x1e6   : > { %v869_v58 = vsel %vm616_vm10, %v867_v56, %v835_v57  ;;  %v858_v22 = vsel %vm622_vm12, %v856_v2, %v7410_v55  ;;  %v3488_v56 = vcombine.high %v3486_v38, %v3486_v38  ;;  %v3517_v57 = vcombine.high %v3495_v62, %v3495_v62 }
 0x1e7   : > { %v871_v29 = vsel %vm619_vm11, %v869_v58, %v7348_v36  ;;  %2876 = vrot.lane.b32.xlu1 %v2837_v31, %s6081_s21  ;;  %v826_v63 = vpop.permute.xlu0 %825  ;;  %v860_v1 = vsel %vm625_vm13, %v858_v22, %v7420_v25  ;;  %v2775_v36 = vcombine.high %v2771_v3, %v9539_v28  ;;  %v3509_v25 = vrot.slane %v3487_v34, %v7458_v24 }
 0x1e8   : > { %v873_v18 = vsel %vm622_vm12, %v871_v29, %v7414_v42  ;;  %v862_v37 = vsel %vm628_vm14, %v860_v1, %v826_v63  ;;  %v7511_v42 = vsub.s32 0, %v6432_v5  ;;  %v406_v63 = vld [vmem:[%s9422_s1 + $0x8] sm:$0xf] }
 0x1e9   : > { %v847_v51 = vpop.permute.xlu1 %846  ;;  %v875_v45 = vsel %vm625_vm13, %v873_v18, %v7426_v8  ;;  %2858 = vrot.lane.b32.xlu0 %v2773_v12, %s6082_s9  ;;  %v1176_v8 = vsel %vm609_vm8, %v6938_v52, %v7435_v59  ;;  %v883_v3 = vsel %vm882_vm15, %v862_v37, 0  ;;  %v405_v52 = vld [vmem:[%s9422_s1 + $0x4] sm:$0xf]  ;;  %v1193_v59 = vsel %vm613_vm9, %v1191_v46, %v7445_v10 }
 0x1ea   : > { %v877_v55 = vsel %vm628_vm14, %v875_v45, %v847_v51  ;;  %v1178_v4 = vsel %vm613_vm9, %v1176_v8, %v1137_v44  ;;  %v7537_v44 = vrot.slane %v3495_v62, %v7511_v42  ;;  %v3519_v48 = vcombine.high %v3509_v25, %v3509_v25 }
 0x1eb   : > { %5779 = vmatprep.subr.msk.bf16.mxu0 %vm882_vm15, %v877_v55  ;;  %2879 = vrot.lane.b32.xlu1 %v2775_v36, %s6082_s9  ;;  %v1140_v5 = vpop.permute.xlu0 %1139  ;;  %v3502_v18 = vrot.slane %v3486_v38, %v7458_v24  ;;  %v9456_v46 = vmov 2  }
 0x1ec   : > { %888 = vmatpush1.bf16.msra.mxu0 %v883_v3  ;;  %v1180_v20 = vsel %vm616_vm10, %v1178_v4, %v1140_v5 }
 0x1ed   : > { %v1161_v43 = vpop.permute.xlu1 %1160  ;;  %v1182_v14 = vsel %vm619_vm11, %v1180_v20, %v7369_v21  ;;  %2861 = vrot.lane.b32.xlu0 %v2839_v0, %s6084_s11  ;;  %v7588_v37 = vrot.slane %v3502_v18, %v7511_v42  ;;  %v6088_v20 = vmov 4  }
 0x1ee   : > { %v1195_v39 = vsel %vm616_vm10, %v1193_v59, %v1161_v43  ;;  %v1184_v33 = vsel %vm622_vm12, %v1182_v14, %v7450_v54  ;;  %v7554_v54 = vrot.slane %v3509_v25, %v7511_v42 }
 0x1ef   : > { %v1197_v10 = vsel %vm619_vm11, %v1195_v39, %v7376_v7  ;;  %2882 = vrot.lane.b32.xlu1 %v2841_v23, %s6084_s11  ;;  %5780 = vmatmul.mubr.msk.bf16.vlgmr.msra.gmra.mrb[0].mxu0 %vm878_vm0, %v405_v52  ;;  %v1186_v21 = vsel %vm625_vm13, %v1184_v33, %v7464_v16  ;;  %v1152_v31 = vpop.permute.xlu0 %1151  ;;  %v7559_v16 = vrot.slane %v3519_v48, %v7511_v42 }
 0x1f0   : > { %v1199_v27 = vsel %vm622_vm12, %v1197_v10, %v7453_v32  ;;  %1243 = vmatprep.mubr.bf16.mxu0 %v9539_v28  ;;  %v1188_v2 = vsel %vm628_vm14, %v1186_v21, %v1152_v31  ;;  %v3516_v32 = vrot.slane %v3488_v56, %v7458_v24  ;;  %v3518_v24 = vcombine.high %v3502_v18, %v3502_v18 }
 0x1f1   : > { %v1201_v7 = vsel %vm625_vm13, %v1199_v27, %v7469_v26  ;;  %v1173_v58 = vpop.permute.xlu1 %1172  ;;  %3618 = vperm.xlu0 %5904, %v7537_v44   ;;  %v1207_v29 = vsel %vm882_vm15, %v1188_v2, 0  ;;  %v7566_v26 = vrot.slane %v3517_v57, %v7511_v42  ;;  %v6089_v21 = vmov 5  }
 0x1f2   : > { %v1203_v34 = vsel %vm628_vm14, %v1201_v7, %v1173_v58  ;;  %v7578_v1 = vrot.slane %v3516_v32, %v7511_v42  ;;  %v3520_v51 = vcombine.high %v3516_v32, %v3516_v32  ;;  %v7598_v25 = vrot.slane %v3518_v24, %v7511_v42 }
 0x1f3   : > { %5783 = vmatprep.subr.msk.bf16.mxu0 %vm882_vm15, %v1203_v34  ;;  %3622 = vperm.xlu1 %5905, %v7554_v54   ;;  %v7568_v22 = vpop.permute.xlu0 %2565  ;;  %v2330_v27 = vsel %vm609_vm8, %v6695_v6, %v7129_v50  ;;  %v2345_v2 = vsel %vm609_vm8, %v6705_v13, %v7160_v61 }
 0x1f4   : > { %1212 = vmatpush1.bf16.msra.mxu0 %v1207_v29  ;;  %v7592_v38 = vrot.slane %v3520_v51, %v7511_v42  ;;  %v2332_v7 = vsel %vm613_vm9, %v2330_v27, %v7162_v15  ;;  %v2347_v58 = vsel %vm613_vm9, %v2345_v2, %v7177_v60  ;;  %v9557_v27 = vld [vmem:[#allocation24_spill] sm:$0xff] }
 0x1f5   : > { %v7573_v12 = vpop.permute.xlu1 %2586  ;;  %3630 = vperm.xlu0 %5904, %v7559_v16   ;;  %v2334_v32 = vsel %vm616_vm10, %v2332_v7, %v7232_v30  ;;  %v2349_v29 = vsel %vm616_vm10, %v2347_v58, %v7249_v19  ;;  %v9558_v7 = vld [vmem:[#allocation25_spill] sm:$0xff] }
 0x1f6   : > { %v2336_v60 = vsel %vm619_vm11, %v2334_v32, %v7034_v41 }
 0x1f7   : > { %5784 = vmatmul.mubr.msk.bf16.vlgmr.msra.gmra.mrb[4].mxu0 %vm878_vm0, %v406_v63  ;;  %3626 = vperm.xlu1 %5905, %v7566_v26   ;;  %v7582_v45 = vpop.permute.xlu0 %2568 }
 0x1f8   : > { %1832 = vmatprep.mubr.bf16.mxu0 %v9539_v28 }
 0x1f9   : > { %v7585_v36 = vpop.permute.xlu1 %2589  ;;  %3638 = vperm.xlu0 %5904, %v7578_v1  }
 0x1fb   : > { %3634 = vperm.xlu1 %5905, %v7588_v37   ;;  %v1732_v55 = vpop.permute.xlu0 %1731 }
 0x1fd   : > { %v7595_v62 = vpop.permute.xlu1 %1752  ;;  %3646 = vperm.xlu0 %5904, %v7592_v38  }
 0x1ff   : > { %3642 = vperm.xlu1 %5905, %v7598_v25   ;;  %v7602_v8 = vpop.permute.xlu0 %2009 }
 0x201   : > { %v7604_v3 = vpop.permute.xlu1 %2030  ;;  %5907 = vset.pattern.permute.xlu0 %v9456_v46 }
 0x202   : > { %3750 = vperm.xlu0 %5907, %v7554_v54  }
 0x203   : > { %5906 = vset.pattern.permute.xlu1 %v9456_v46  ;;  %v1723_v4 = vpop.permute.xlu0 %1722 }
 0x204   : > { %3746 = vperm.xlu1 %5906, %v7537_v44   ;;  %v1765_v34 = vsel %vm609_vm8, %v7204_v49, %v1723_v4  ;;  %v2351_v49 = vsel %vm619_vm11, %v2349_v29, %v7062_v17  ;;  %v9555_v4 = vld [vmem:[#allocation23_spill] sm:$0xff]  ;;  %v6090_v29 = vmov 7  }
 0x205   : > { %v1744_v42 = vpop.permute.xlu1 %1743  ;;  %v2353_v17 = vsel %vm622_vm12, %v2351_v49, %v9555_v4 }
 0x206   : > { %3762 = vperm.xlu0 %5907, %v7588_v37   ;;  %v1780_v19 = vsel %vm609_vm8, %v7211_v9, %v1744_v42  ;;  %v9556_v9 = vld [vmem:[#allocation28_spill] sm:$0xff]  ;;  %v2355_v58 = vsel %vm625_vm13, %v2353_v17, %v9558_v7 }
 0x207   : > { %v1726_v5 = vpop.permute.xlu0 %1725  ;;  %v2964_v7 = vld [vmem:[%s9427_s6] sm:$0xff] }
 0x208   : > { %3754 = vperm.xlu1 %5906, %v7566_v26   ;;  %v1767_v6 = vsel %vm613_vm9, %v1765_v34, %v1726_v5 }
 0x209   : > { %v1747_v0 = vpop.permute.xlu1 %1746 }
 0x20a   : > { %3770 = vperm.xlu0 %5907, %v7598_v25   ;;  %v1782_v18 = vsel %vm613_vm9, %v1780_v19, %v1747_v0 }
 0x20b   : > { %v1735_v52 = vpop.permute.xlu0 %1734 }
 0x20c   : > { %3758 = vperm.xlu1 %5906, %v7559_v16  }
 0x20d   : > { %v1756_v59 = vpop.permute.xlu1 %1755 }
 0x20e   : > { %5908 = vset.pattern.permute.xlu0 %v6088_v20 }
 0x20f   : > { %v1738_v43 = vpop.permute.xlu0 %1737  ;;  %4027 = vperm.xlu0 %5908, %v7537_v44  }
 0x210   : > { %3766 = vperm.xlu1 %5906, %v7578_v1  }
 0x211   : > { %v1759_v23 = vpop.permute.xlu1 %1758 }
 0x213   : > { %v2001_v56 = vpop.permute.xlu0 %2000  ;;  %4039 = vperm.xlu0 %5908, %v7559_v16  }
 0x214   : > { %3774 = vperm.xlu1 %5906, %v7592_v38   ;;  %v2043_v42 = vsel %vm609_vm8, %v9556_v9, %v2001_v56 }
 0x215   : > { %v7618_v14 = vpop.permute.xlu1 %2021 }
 0x217   : > { %v2004_v39 = vpop.permute.xlu0 %2003  ;;  %4047 = vperm.xlu0 %5908, %v7578_v1  }
 0x218   : > { %5909 = vset.pattern.permute.xlu1 %v6088_v20 }
 0x219   : > { %v7621_v48 = vpop.permute.xlu1 %2024  ;;  %4031 = vperm.xlu1 %5909, %v7554_v54  }
 0x21b   : > { %v2013_v10 = vpop.permute.xlu0 %2012  ;;  %4055 = vperm.xlu0 %5908, %v7592_v38  }
 0x21d   : > { %v7625_v33 = vpop.permute.xlu1 %2033  ;;  %4035 = vperm.xlu1 %5909, %v7566_v26  }
 0x21f   : > { %v2016_v57 = vpop.permute.xlu0 %2015  ;;  %5911 = vset.pattern.permute.xlu0 %v6089_v21 }
 0x220   : > { %4215 = vperm.xlu0 %5911, %v7554_v54  }
 0x221   : > { %v7628_v31 = vpop.permute.xlu1 %2036  ;;  %4043 = vperm.xlu1 %5909, %v7588_v37  }
 0x223   : > { %v1729_v50 = vpop.permute.xlu0 %1728 }
 0x224   : > { %v1769_v13 = vsel %vm616_vm10, %v1767_v6, %v1729_v50  ;;  %4227 = vperm.xlu0 %5911, %v7588_v37   ;;  %v9559_v50 = vld [vmem:[#allocation26_spill] sm:$0xff] }
 0x225   : > { %v7650_v61 = vpop.permute.xlu1 %2592  ;;  %4051 = vperm.xlu1 %5909, %v7598_v25   ;;  %v1771_v15 = vsel %vm619_vm11, %v1769_v13, %v1732_v55  ;;  %v9554_v55 = vld [vmem:[#allocation22_spill] sm:$0xff]  ;;  %v9560_v13 = vld [vmem:[#allocation27_spill] sm:$0xff] }
 0x226   : > { %v1773_v30 = vsel %vm622_vm12, %v1771_v15, %v1735_v52  ;;  %v2338_v41 = vsel %vm622_vm12, %v2336_v60, %v9554_v55  ;;  %v2045_v52 = vsel %vm613_vm9, %v2043_v42, %v2004_v39  ;;  %v2357_v15 = vsel %vm628_vm14, %v2355_v58, %v9560_v13 }
 0x227   : > { %v1741_v63 = vpop.permute.xlu0 %1740  ;;  %v1775_v51 = vsel %vm625_vm13, %v1773_v30, %v1738_v43  ;;  %v2340_v2 = vsel %vm625_vm13, %v2338_v41, %v9557_v27  ;;  %v408_v30 = vld [vmem:[%s9422_s1 + $0x10] sm:$0xf] }
 0x228   : > { %4235 = vperm.xlu0 %5911, %v7598_v25   ;;  %v1777_v20 = vsel %vm628_vm14, %v1775_v51, %v1741_v63 }
 0x229   : > { %v1750_v24 = vpop.permute.xlu1 %1749  ;;  %5910 = vset.pattern.permute.xlu1 %v6089_v21 }
 0x22a   : > { %v1784_v5 = vsel %vm616_vm10, %v1782_v18, %v1750_v24  ;;  %4211 = vperm.xlu1 %5910, %v7537_v44  }
 0x22b   : > { %v1786_v0 = vsel %vm619_vm11, %v1784_v5, %v7595_v62  ;;  %v2007_v43 = vpop.permute.xlu0 %2006 }
 0x22c   : > { %v1788_v21 = vsel %vm622_vm12, %v1786_v0, %v1756_v59  ;;  %v2047_v34 = vsel %vm616_vm10, %v2045_v52, %v2007_v43  ;;  %5912 = vset.pattern.permute.xlu0 %v6090_v29  ;;  %v1796_v59 = vsel %vm882_vm15, %v1777_v20, 0  ;;  %v6091_v0 = vmov 8  }
 0x22d   : > { %v1790_v56 = vsel %vm625_vm13, %v1788_v21, %v1759_v23  ;;  %v1762_v32 = vpop.permute.xlu1 %1761  ;;  %v2049_v62 = vsel %vm619_vm11, %v2047_v34, %v7602_v8  ;;  %4548 = vperm.xlu0 %5912, %v7537_v44   ;;  %v2342_v23 = vsel %vm628_vm14, %v2340_v2, %v9559_v50  ;;  %v9561_v8 = vld [vmem:[#allocation29_spill] sm:$0xff] }
 0x22e   : > { %v1792_v39 = vsel %vm628_vm14, %v1790_v56, %v1762_v32  ;;  %4219 = vperm.xlu1 %5910, %v7566_v26   ;;  %v2051_v6 = vsel %vm622_vm12, %v2049_v62, %v2013_v10  ;;  %v2058_v60 = vsel %vm609_vm8, %v9561_v8, %v7618_v14  ;;  %v2361_v14 = vsel %vm882_vm15, %v2342_v23, 0  ;;  %v9562_v56 = vld [vmem:[#allocation20_spill] sm:$0xff] }
 0x22f   : > { %5787 = vmatprep.subr.msk.bf16.mxu0 %vm882_vm15, %v1792_v39  ;;  %v2019_v49 = vpop.permute.xlu0 %2018  ;;  %v2060_v19 = vsel %vm613_vm9, %v2058_v60, %v7621_v48  ;;  %v2053_v10 = vsel %vm625_vm13, %v2051_v6, %v2016_v57  ;;  %v2608_v32 = vsel %vm609_vm8, %v9562_v56, %v7568_v22 }
 0x230   : > { %1801 = vmatpush1.bf16.msra.mxu0 %v1796_v59  ;;  %v2055_v48 = vsel %vm628_vm14, %v2053_v10, %v2019_v49  ;;  %v2610_v39 = vsel %vm613_vm9, %v2608_v32, %v7582_v45 }
 0x231   : > { %v2028_v63 = vpop.permute.xlu1 %2027  ;;  %5791 = vmatprep.subr.msk.bf16.mxu0 %vm882_vm15, %v2357_v15  ;;  %4560 = vperm.xlu0 %5912, %v7559_v16  }
 0x232   : > { %v2062_v18 = vsel %vm616_vm10, %v2060_v19, %v2028_v63  ;;  %4223 = vperm.xlu1 %5910, %v7559_v16   ;;  %v411_v63 = vld [vmem:[%s9422_s1 + $0x1c] sm:$0xf] }
 0x233   : > { %v2064_v51 = vsel %vm619_vm11, %v2062_v18, %v7604_v3  ;;  %5788 = vmatmul.mubr.msk.bf16.vlgmr.msra.gmra.mrb[8].mxu0 %vm878_vm0, %v408_v30  ;;  %v2572_v24 = vpop.permute.xlu0 %2571  ;;  %v2074_v3 = vsel %vm882_vm15, %v2055_v48, 0 }
 0x234   : > { %2366 = vmatpush1.bf16.msra.mxu0 %v2361_v14  ;;  %v2066_v57 = vsel %vm622_vm12, %v2064_v51, %v7625_v33  ;;  %2397 = vmatprep.mubr.bf16.mxu0 %v9539_v28  ;;  %v409_v33 = vld [vmem:[%s9422_s1 + $0x14] sm:$0xf]  ;;  %v2612_v50 = vsel %vm616_vm10, %v2610_v39, %v2572_v24  ;;  %v9564_v14 = vmov 0.0  }
 0x235   : > { %v2068_v55 = vsel %vm625_vm13, %v2066_v57, %v7628_v31  ;;  %v2040_v41 = vpop.permute.xlu1 %2039  ;;  %4568 = vperm.xlu0 %5912, %v7578_v1   ;;  %v410_v31 = vld [vmem:[%s9422_s1 + $0x18] sm:$0xf] }
 0x236   : > { %v2070_v4 = vsel %vm628_vm14, %v2068_v55, %v2040_v41  ;;  %4231 = vperm.xlu1 %5910, %v7578_v1  }
 0x237   : > { %5789 = vmatprep.subr.msk.bf16.mxu1 %vm882_vm15, %v2070_v4  ;;  %v7724_v17 = vpop.permute.xlu0 %2843 }
 0x238   : > { %2079 = vmatpush1.bf16.msra.mxu1 %v2074_v3  ;;  %v2886_v51 = vsel %vm609_vm8, %v7399_v47, %v7724_v17 }
 0x239   : > { %v7732_v5 = vpop.permute.xlu1 %2864  ;;  %4576 = vperm.xlu0 %5912, %v7592_v38  }
 0x23a   : > { %4239 = vperm.xlu1 %5910, %v7592_v38   ;;  %v2901_v48 = vsel %vm609_vm8, %v7406_v40, %v7732_v5 }
 0x23b   : > { %5790 = vmatmul.mubr.msk.bf16.vlgmr.msra.gmra.mrb[8].mxu1 %vm878_vm0, %v409_v33  ;;  %5792 = vmatmul.mubr.msk.bf16.vlgmr.msra.gmra.mrb[12].mxu0 %vm878_vm0, %v410_v31  ;;  %v2575_v9 = vpop.permute.xlu0 %2574 }
 0x23c   : > { %2675 = vmatprep.mubr.bf16.mxu1 %v9539_v28  ;;  %2953 = vmatprep.mubr.bf16.mxu0 %v9539_v28  ;;  %v2614_v13 = vsel %vm619_vm11, %v2612_v50, %v2575_v9 }
 0x23d   : > { %v2596_v42 = vpop.permute.xlu1 %2595  ;;  %5915 = vset.pattern.permute.xlu0 %v6091_v0 }
 0x23e   : > { %5913 = vset.pattern.permute.xlu1 %v6090_v29  ;;  %4736 = vperm.xlu0 %5915, %v7554_v54   ;;  %v9563_v29 = vld [vmem:[#allocation21_spill] sm:$0xff] }
 0x23f   : > { %4552 = vperm.xlu1 %5913, %v7554_v54   ;;  %v2847_v52 = vpop.permute.xlu0 %2846  ;;  %v2623_v62 = vsel %vm609_vm8, %v9563_v29, %v7573_v12 }
 0x240   : > { %v2625_v6 = vsel %vm613_vm9, %v2623_v62, %v7585_v36  ;;  %v2888_v24 = vsel %vm613_vm9, %v2886_v51, %v2847_v52  ;;  %v6093_v62 = vmov 6  }
 0x241   : > { %v2868_v20 = vpop.permute.xlu1 %2867  ;;  %v2627_v22 = vsel %vm616_vm10, %v2625_v6, %v7650_v61 }
 0x242   : > { %4748 = vperm.xlu0 %5915, %v7588_v37   ;;  %v2629_v12 = vsel %vm619_vm11, %v2627_v22, %v2596_v42  ;;  %v2903_v55 = vsel %vm613_vm9, %v2901_v48, %v2868_v20  ;;  %v6092_v20 = vmov 3  }
 0x243   : > { %4556 = vperm.xlu1 %5913, %v7566_v26   ;;  %v2578_v43 = vpop.permute.xlu0 %2577 }
 0x244   : > { %v2616_v45 = vsel %vm622_vm12, %v2614_v13, %v2578_v43 }
 0x245   : > { %v2599_v21 = vpop.permute.xlu1 %2598 }
 0x246   : > { %4756 = vperm.xlu0 %5915, %v7598_v25   ;;  %v2631_v15 = vsel %vm622_vm12, %v2629_v12, %v2599_v21 }
 0x247   : > { %4564 = vperm.xlu1 %5913, %v7588_v37   ;;  %v2850_v27 = vpop.permute.xlu0 %2849 }
 0x248   : > { %v2890_v41 = vsel %vm616_vm10, %v2888_v24, %v2850_v27 }
 0x249   : > { %v2871_v2 = vpop.permute.xlu1 %2870 }
 0x24a   : > { %5916 = vset.pattern.permute.xlu0 %v9539_v28  ;;  %v2905_v47 = vsel %vm616_vm10, %v2903_v55, %v2871_v2 }
 0x24b   : > { %4572 = vperm.xlu1 %5913, %v7598_v25   ;;  %v2581_v58 = vpop.permute.xlu0 %2580  ;;  %2967 = vperm.xlu0 %5916, %v2964_v7  }
 0x24c   : > { %v2618_v8 = vsel %vm625_vm13, %v2616_v45, %v2581_v58  ;;  %v412_v58 = vld [vmem:[%s9422_s1 + $0x20] sm:$0xf] }
 0x24d   : > { %v2602_v34 = vpop.permute.xlu1 %2601 }
 0x24e   : > { %v2633_v36 = vsel %vm625_vm13, %v2631_v15, %v2602_v34 }
 0x24f   : > { %5914 = vset.pattern.permute.xlu1 %v6091_v0  ;;  %v2853_v59 = vpop.permute.xlu0 %2852  ;;  %3554 = vperm.xlu0 %5916, %v7537_v44  }
 0x250   : > { %4732 = vperm.xlu1 %5914, %v7537_v44   ;;  %v2892_v17 = vsel %vm619_vm11, %v2890_v41, %v2853_v59 }
 0x251   : > { %v2874_v23 = vpop.permute.xlu1 %2873 }
 0x252   : > { %v2907_v40 = vsel %vm619_vm11, %v2905_v47, %v2874_v23 }
 0x253   : > { %v2584_v60 = vpop.permute.xlu0 %2583  ;;  %3566 = vperm.xlu0 %5916, %v7559_v16  }
 0x254   : > { %4740 = vperm.xlu1 %5914, %v7566_v26   ;;  %v2620_v49 = vsel %vm628_vm14, %v2618_v8, %v2584_v60 }
 0x255   : > { %v2605_v61 = vpop.permute.xlu1 %2604  ;;  %v2639_v19 = vsel %vm882_vm15, %v2620_v49, 0 }
 0x256   : > { %v2635_v30 = vsel %vm628_vm14, %v2633_v36, %v2605_v61 }
 0x257   : > { %5793 = vmatprep.subr.msk.bf16.mxu1 %vm882_vm15, %v2635_v30  ;;  %v2856_v10 = vpop.permute.xlu0 %2855  ;;  %3574 = vperm.xlu0 %5916, %v7578_v1  }
 0x258   : > { %2644 = vmatpush1.bf16.msra.mxu1 %v2639_v19  ;;  %4744 = vperm.xlu1 %5914, %v7559_v16   ;;  %v2894_v31 = vsel %vm622_vm12, %v2892_v17, %v2856_v10 }
 0x259   : > { %v2877_v18 = vpop.permute.xlu1 %2876  ;;  %5818 = vmatprep.subr.bf16.mxu1 %v9564_v14 }
 0x25a   : > { %v2909_v9 = vsel %vm622_vm12, %v2907_v40, %v2877_v18 }
 0x25b   : > { %5794 = vmatmul.mubr.msk.bf16.vlgmr.msra.gmra.mrb[12].mxu1 %vm878_vm0, %v411_v63  ;;  %v2859_v57 = vpop.permute.xlu0 %2858  ;;  %3582 = vperm.xlu0 %5916, %v7592_v38  }
 0x25c   : > { %4752 = vperm.xlu1 %5914, %v7578_v1   ;;  %v2896_v42 = vsel %vm625_vm13, %v2894_v31, %v2859_v57 }
 0x25d   : > { %v2880_v4 = vpop.permute.xlu1 %2879  ;;  %v969_v3 = vpop.f32.mrb[0].mxu1 }
 0x25e   : > { %v971_v33 = vpop.f32.mrb[1].mxu1  ;;  %v2911_v43 = vsel %vm625_vm13, %v2909_v9, %v2880_v4 }
 0x25f   : > { %v973_v5 = vpop.f32.mrb[2].mxu1  ;;  %v2862_v0 = vpop.permute.xlu0 %2861  ;;  %5919 = vset.pattern.permute.xlu0 %v6092_v20 }
 0x260   : > { %v974_v52 = vpop.f32.mrb[3].mxu1  ;;  %v2898_v21 = vsel %vm628_vm14, %v2896_v42, %v2862_v0  ;;  %4760 = vperm.xlu1 %5914, %v7592_v38   ;;  %3878 = vperm.xlu0 %5919, %v7554_v54  }
 0x261   : > { %v2883_v27 = vpop.permute.xlu1 %2882  ;;  %v2917_v7 = vsel %vm882_vm15, %v2898_v21, 0 }
 0x262   : > { %v2913_v2 = vsel %vm628_vm14, %v2911_v43, %v2883_v27 }
 0x263   : > { %5795 = vmatprep.subr.msk.bf16.mxu0 %vm882_vm15, %v2913_v2 }
 0x264   : > { %2922 = vmatpush1.bf16.msra.mxu0 %v2917_v7  ;;  %5917 = vset.pattern.permute.xlu1 %v9539_v28 }
 0x265   : > { %3890 = vperm.xlu0 %5919, %v7588_v37   ;;  %3558 = vperm.xlu1 %5917, %v7554_v54  }
 0x266   : > { %5824 = vmatprep.subr.bf16.mxu0 %v9564_v14 }
 0x267   : > { %5796 = vmatmul.mubr.msk.bf16.vlgmr.msra.gmra.mrb[16].mxu0 %vm878_vm0, %v412_v58 }
 0x269   : > { %3898 = vperm.xlu0 %5919, %v7598_v25   ;;  %3562 = vperm.xlu1 %5917, %v7566_v26  }
 0x26d   : > { %3570 = vperm.xlu1 %5917, %v7588_v37   ;;  %5920 = vset.pattern.permute.xlu0 %v6093_v62 }
 0x26e   : > { %4395 = vperm.xlu0 %5920, %v7537_v44  }
 0x270   : > { %v7834_v39 = vpop.permute.xlu0 %3618 }
 0x271   : > { %3578 = vperm.xlu1 %5917, %v7598_v25  }
 0x272   : > { %4407 = vperm.xlu0 %5920, %v7559_v16   ;;  %v7850_v36 = vpop.permute.xlu1 %3622 }
 0x274   : > { %v7838_v50 = vpop.permute.xlu0 %3630 }
 0x275   : > { %5918 = vset.pattern.permute.xlu1 %v6092_v20 }
 0x276   : > { %3874 = vperm.xlu1 %5918, %v7537_v44   ;;  %4415 = vperm.xlu0 %5920, %v7578_v1   ;;  %v7854_v61 = vpop.permute.xlu1 %3626 }
 0x27a   : > { %3882 = vperm.xlu1 %5918, %v7566_v26   ;;  %4423 = vperm.xlu0 %5920, %v7592_v38   ;;  %v7858_v19 = vpop.permute.xlu1 %3634 }
 0x27e   : > { %3886 = vperm.xlu1 %5918, %v7559_v16   ;;  %5925 = vset.pattern.permute.xlu0 %v9456_v46  ;;  %v7862_v63 = vpop.permute.xlu1 %3642 }
 0x282   : > { %3894 = vperm.xlu1 %5918, %v7578_v1  }
 0x283   : > { %v7866_v51 = vpop.permute.xlu1 %3746 }
 0x286   : > { %3902 = vperm.xlu1 %5918, %v7592_v38  }
 0x287   : > { %v7870_v24 = vpop.permute.xlu1 %3754 }
 0x28a   : > { %5921 = vset.pattern.permute.xlu1 %v6093_v62 }
 0x28b   : > { %4399 = vperm.xlu1 %5921, %v7554_v54  }
 0x28f   : > { %4403 = vperm.xlu1 %5921, %v7566_v26  }
 0x291   : > { %v1556_v34 = vpop.f32.mrb[4].mxu1 }
 0x292   : > { %v1558_v56 = vpop.f32.mrb[5].mxu1 }
 0x293   : > { %v1560_v32 = vpop.f32.mrb[6].mxu1  ;;  %4411 = vperm.xlu1 %5921, %v7588_v37  }
 0x294   : > { %v1561_v29 = vpop.f32.mrb[7].mxu1 }
 0x297   : > { %4419 = vperm.xlu1 %5921, %v7598_v25   ;;  %v7840_v25 = vpop.permute.xlu0 %3638 }
 0x29b   : > { %5922 = vset.pattern.permute.xlu1 %v6085_v35  ;;  %v7842_v35 = vpop.permute.xlu0 %3646 }
 0x29f   : > { %v7844_v15 = vpop.permute.xlu0 %3750 }
 0x2a3   : > { %v7846_v8 = vpop.permute.xlu0 %3762 }
 0x2a7   : > { %v7848_v60 = vpop.permute.xlu0 %3770 }
 0x2ab   : > { %v7852_v49 = vpop.permute.xlu0 %4027 }
 0x2af   : > { %v7856_v30 = vpop.permute.xlu0 %4039 }
 0x2b3   : > { %v7860_v10 = vpop.permute.xlu0 %4047 }
 0x2b7   : > { %v7864_v18 = vpop.permute.xlu0 %4055 }
 0x2bb   : > { %v7868_v48 = vpop.permute.xlu0 %4215 }
 0x2bc   : > { %9565 = vst [vmem:[#allocation22_spill] sm:$0xff] %v7868_v48 }
 0x2bf   : > { %v7872_v57 = vpop.permute.xlu0 %4227 }
 0x2c0   : > { %9566 = vst [vmem:[#allocation23_spill] sm:$0xff] %v7872_v57 }
 0x2c2   : > { %v921_v59 = vpop.f32.mrb[0].mxu0 }
 0x2c3   : > { %v923_v44 = vpop.f32.mrb[1].mxu0  ;;  %v970_v54 = vadd.f32 %v969_v3, %v921_v59  ;;  %v7874_v3 = vpop.permute.xlu1 %3758 }
 0x2c4   : > { %v925_v26 = vpop.f32.mrb[2].mxu0  ;;  %v972_v6 = vadd.f32 %v971_v33, %v923_v44  ;;  %v7876_v40 = vpop.permute.xlu0 %4235 }
 0x2c5   : > { %v926_v16 = vpop.f32.mrb[3].mxu0  ;;  %9567 = vst [vmem:[#allocation28_spill] sm:$0xff] %v7876_v40 }
 0x2c7   : > { %v7878_v31 = vpop.permute.xlu1 %3766 }
 0x2c8   : > { %v7880_v58 = vpop.permute.xlu0 %4548 }
 0x2c9   : > { %9568 = vst [vmem:[#allocation24_spill] sm:$0xff] %v7880_v58 }
 0x2ca   : > { %v1245_v37 = vpop.f32.mrb[4].mxu0 }
 0x2cb   : > { %v1252_v1 = vadd.f32 %v1245_v37, %v970_v54  ;;  %v1247_v23 = vpop.f32.mrb[5].mxu0 }
 0x2cc   : > { %v1253_v38 = vadd.f32 %v1247_v23, %v972_v6  ;;  %v1249_v22 = vpop.f32.mrb[6].mxu0  ;;  %v7884_v32 = vpop.permute.xlu0 %4560 }
 0x2cd   : > { %v1563_v13 = vadd.f32 %v1556_v34, %v1252_v1  ;;  %v1250_v12 = vpop.f32.mrb[7].mxu0  ;;  %9569 = vst [vmem:[#allocation25_spill] sm:$0xff] %v7884_v32 }
 0x2ce   : > { %v1564_v45 = vadd.f32 %v1558_v56, %v1253_v38  ;;  %v7882_v56 = vpop.permute.xlu1 %3774 }
 0x2d0   : > { %v7888_v62 = vpop.permute.xlu0 %4568 }
 0x2d1   : > { %9570 = vst [vmem:[#allocation26_spill] sm:$0xff] %v7888_v62 }
 0x2d2   : > { %v7886_v29 = vpop.permute.xlu1 %4031 }
 0x2d4   : > { %v7892_v44 = vpop.permute.xlu0 %4576 }
 0x2d6   : > { %v7890_v59 = vpop.permute.xlu1 %4035 }
 0x2d8   : > { %v7896_v26 = vpop.permute.xlu0 %4736 }
 0x2d9   : > { %9571 = vst [vmem:[#allocation27_spill] sm:$0xff] %v7896_v26 }
 0x2da   : > { %v7894_v54 = vpop.permute.xlu1 %4043 }
 0x2dc   : > { %v7900_v23 = vpop.permute.xlu0 %4748 }
 0x2dd   : > { %9572 = vst [vmem:[#allocation29_spill] sm:$0xff] %v7900_v23 }
 0x2de   : > { %v7898_v6 = vpop.permute.xlu1 %4051 }
 0x2e2   : > { %v7902_v12 = vpop.permute.xlu1 %4211 }
 0x306   : > { %v1834_v55 = vpop.f32.mrb[8].mxu0 }
 0x307   : > { %v1841_v41 = vadd.f32 %v1834_v55, %v1563_v13  ;;  %v1836_v4 = vpop.f32.mrb[9].mxu0  ;;  %v7906_v55 = vpop.permute.xlu1 %4219 }
 0x308   : > { %v1842_v47 = vadd.f32 %v1836_v4, %v1564_v45  ;;  %v1838_v17 = vpop.f32.mrb[10].mxu0  ;;  %v7904_v45 = vpop.permute.xlu0 %4756  ;;  %9574 = vst [vmem:[#allocation21_spill] sm:$0xff] %v7906_v55 }
 0x309   : > { %v1839_v33 = vpop.f32.mrb[11].mxu0  ;;  %9573 = vst [vmem:[#allocation20_spill] sm:$0xff] %v7904_v45 }
 0x30c   : > { %v2968_v17 = vpop.permute.xlu0 %2967 }
 0x30e   : > { %v2112_v5 = vpop.f32.mrb[8].mxu1  ;;  %v2399_v9 = vpop.f32.mrb[12].mxu0 }
 0x30f   : > { %v2119_v42 = vadd.f32 %v2112_v5, %v1841_v41  ;;  %v2114_v0 = vpop.f32.mrb[9].mxu1  ;;  %v2401_v52 = vpop.f32.mrb[13].mxu0 }
 0x310   : > { %v2120_v20 = vadd.f32 %v2114_v0, %v1842_v47  ;;  %v2116_v43 = vpop.f32.mrb[10].mxu1  ;;  %v2403_v21 = vpop.f32.mrb[14].mxu0 }
 0x311   : > { %v2406_v27 = vadd.f32 %v2399_v9, %v2119_v42  ;;  %v2117_v2 = vpop.f32.mrb[11].mxu1  ;;  %v2404_v7 = vpop.f32.mrb[15].mxu0 }
 0x312   : > { %v2407_v34 = vadd.f32 %v2401_v52, %v2120_v20  ;;  %v7908_v20 = vpop.permute.xlu1 %4223 }
 0x313   : > { %9575 = vst [vmem:[#allocation30_spill] sm:$0xff] %v7908_v20 }
 0x316   : > { %v7910_v21 = vpop.permute.xlu1 %4231 }
 0x317   : > { %9576 = vst [vmem:[#allocation31_spill] sm:$0xff] %v7910_v21 }
 0x31a   : > { %v7912_v2 = vpop.permute.xlu1 %4239 }
 0x31b   : > { %9577 = vst [vmem:[#allocation32_spill] sm:$0xff] %v7912_v2 }
 0x32e   : > { %v2677_v16 = vpop.f32.mrb[12].mxu1 }
 0x32f   : > { %v2684_v37 = vadd.f32 %v2677_v16, %v2406_v27  ;;  %v2679_v1 = vpop.f32.mrb[13].mxu1 }
 0x330   : > { %v2685_v38 = vadd.f32 %v2679_v1, %v2407_v34  ;;  %v2681_v22 = vpop.f32.mrb[14].mxu1  ;;  %v7914_v34 = vpop.permute.xlu1 %4552 }
 0x331   : > { %v2682_v13 = vpop.f32.mrb[15].mxu1  ;;  %9578 = vst [vmem:[#allocation33_spill] sm:$0xff] %v7914_v34 }
 0x334   : > { %v7916_v1 = vpop.permute.xlu1 %4556 }
 0x335   : > { %9579 = vst [vmem:[#allocation34_spill] sm:$0xff] %v7916_v1 }
 0x338   : > { %v7924_v13 = vpop.permute.xlu1 %4564 }
 0x339   : > { %9580 = vst [vmem:[#allocation35_spill] sm:$0xff] %v7924_v13 }
 0x33a   : > { %v2955_v41 = vpop.f32.mrb[16].mxu0 }
 0x33b   : > { %v2962_v4 = vadd.f32 %v2955_v41, %v2684_v37  ;;  %v2957_v47 = vpop.f32.mrb[17].mxu0 }
 0x33c   : > { %v2963_v33 = vadd.f32 %v2957_v47, %v2685_v38  ;;  %v2959_v5 = vpop.f32.mrb[18].mxu0  ;;  %v7930_v41 = vpop.permute.xlu1 %4572 }
 0x33d   : > { %v2970_v9 = vadd.f32 %v2968_v17, %v2962_v4  ;;  %v2960_v42 = vpop.f32.mrb[19].mxu0  ;;  %9581 = vst [vmem:[#allocation36_spill] sm:$0xff] %v7930_v41 }
 0x33e   : > { %v2971_v52 = vadd.f32 %v2968_v17, %v2963_v33 }
 0x33f   : > { %v5797_v0 = vmul.f32 -1.442695, %v2970_v9 }
 0x340   : > { %v5798_v43 = vmul.f32 -1.442695, %v2971_v52  ;;  %v7942_v17 = vpop.permute.xlu1 %4732 }
 0x341   : > { %5927 = vpow2.f32 %v5797_v0  ;;  %9582 = vst [vmem:[#allocation37_spill] sm:$0xff] %v7942_v17 }
 0x342   : > { %5929 = vpow2.f32 %v5798_v43  ;;  %v7968_v43 = vpop.permute.xlu0 %3554 }
 0x343   : > { %9588 = vst [vmem:[#allocation43_spill] sm:$0xff] %v7968_v43 }
 0x344   : > { %v7948_v33 = vpop.permute.xlu1 %4740 }
 0x345   : > { %9583 = vst [vmem:[#allocation38_spill] sm:$0xff] %v7948_v33 }
 0x348   : > { %v7956_v5 = vpop.permute.xlu1 %4744 }
 0x349   : > { %9584 = vst [vmem:[#allocation39_spill] sm:$0xff] %v7956_v5 }
 0x34b   : > { %v5928_v27 = vpop.eup %5927 }
 0x34c   : > { %v2978_v7 = vadd.f32 1.0, %v5928_v27  ;;  %v5930_v16 = vpop.eup %5929 }
 0x34d   : > { %v2979_v37 = vadd.f32 1.0, %v5930_v16 }
 0x34e   : > { %5931 = vrcp.f32 %v2978_v7  ;;  %v7972_v7 = vpop.permute.xlu0 %3566 }
 0x34f   : > { %5933 = vrcp.f32 %v2979_v37  ;;  %9590 = vst [vmem:[#allocation45_spill] sm:$0xff] %v7972_v7 }
 0x352   : > { %v7976_v37 = vpop.permute.xlu0 %3574 }
 0x353   : > { %9592 = vst [vmem:[#allocation47_spill] sm:$0xff] %v7976_v37 }
 0x358   : > { %v5932_v38 = vpop.eup %5931 }
 0x359   : > { %v7918_v22 = vmul.f32 %v5932_v38, %v2970_v9  ;;  %v5934_v4 = vpop.eup %5933  ;;  %v7960_v9 = vpop.permute.xlu1 %4752 }
 0x35a   : > { %v7936_v47 = vmul.f32 %v5934_v4, %v2971_v52  ;;  %9585 = vst [vmem:[#allocation40_spill] sm:$0xff] %v7960_v9  ;;  %v7980_v4 = vpop.permute.xlu0 %3582 }
 0x35b   : > { %2993 = vrot.lane.b32.xlu0 %v7918_v22, %s6081_s21  ;;  %2987 = vrot.lane.b32.xlu1 %v7918_v22, %s6084_s11  ;;  %9594 = vst [vmem:[#allocation49_spill] sm:$0xff] %v7980_v4 }
 0x35d   : > { %v7962_v42 = vpop.permute.xlu1 %4760 }
 0x35e   : > { %v7984_v14 = vpop.permute.xlu0 %3878 }
 0x35f   : > { %2999 = vrot.lane.b32.xlu0 %v7918_v22, %s6083_s8  ;;  %2990 = vrot.lane.b32.xlu1 %v7918_v22, %s6082_s9  ;;  %9596 = vst [vmem:[#allocation51_spill] sm:$0xff] %v7984_v14 }
 0x361   : > { %v7964_v0 = vpop.permute.xlu1 %3558 }
 0x362   : > { %9586 = vst [vmem:[#allocation41_spill] sm:$0xff] %v7964_v0 }
 0x363   : > { %3005 = vrot.lane.b32.xlu0 %v7918_v22, %s6079_s29  ;;  %2996 = vrot.lane.b32.xlu1 %v7918_v22, %s6078_s23 }
 0x365   : > { %v7966_v52 = vpop.permute.xlu1 %3562 }
 0x366   : > { %9587 = vst [vmem:[#allocation42_spill] sm:$0xff] %v7966_v52  ;;  %v7988_v52 = vpop.permute.xlu0 %3890 }
 0x367   : > { %3012 = vrot.lane.b32.xlu0 %v7936_v47, %s6082_s9  ;;  %3002 = vrot.lane.b32.xlu1 %v7918_v22, %s6080_s19  ;;  %9598 = vst [vmem:[#allocation53_spill] sm:$0xff] %v7988_v52 }
 0x369   : > { %v7970_v27 = vpop.permute.xlu1 %3570 }
 0x36a   : > { %9589 = vst [vmem:[#allocation44_spill] sm:$0xff] %v7970_v27  ;;  %v7992_v27 = vpop.permute.xlu0 %3898 }
 0x36b   : > { %3018 = vrot.lane.b32.xlu0 %v7936_v47, %s6078_s23  ;;  %3009 = vrot.lane.b32.xlu1 %v7936_v47, %s6084_s11  ;;  %9600 = vst [vmem:[#allocation55_spill] sm:$0xff] %v7992_v27 }
 0x36d   : > { %v7974_v16 = vpop.permute.xlu1 %3578 }
 0x36e   : > { %9591 = vst [vmem:[#allocation46_spill] sm:$0xff] %v7974_v16  ;;  %v7998_v16 = vpop.permute.xlu0 %4395 }
 0x36f   : > { %3024 = vrot.lane.b32.xlu0 %v7936_v47, %s6080_s19  ;;  %3015 = vrot.lane.b32.xlu1 %v7936_v47, %s6081_s21  ;;  %9603 = vst [vmem:[#allocation58_spill] sm:$0xff] %v7998_v16 }
 0x371   : > { %v7978_v38 = vpop.permute.xlu1 %3874 }
 0x372   : > { %9593 = vst [vmem:[#allocation48_spill] sm:$0xff] %v7978_v38  ;;  %v8002_v4 = vpop.permute.xlu0 %4407 }
 0x373   : > { %3021 = vrot.lane.b32.xlu1 %v7936_v47, %s6083_s8  ;;  %9605 = vst [vmem:[#allocation60_spill] sm:$0xff] %v8002_v4 }
 0x375   : > { %v7982_v46 = vpop.permute.xlu1 %3882 }
 0x376   : > { %9595 = vst [vmem:[#allocation50_spill] sm:$0xff] %v7982_v46  ;;  %v8006_v14 = vpop.permute.xlu0 %4415 }
 0x377   : > { %3027 = vrot.lane.b32.xlu1 %v7936_v47, %s6079_s29  ;;  %9607 = vst [vmem:[#allocation62_spill] sm:$0xff] %v8006_v14 }
 0x379   : > { %v7986_v28 = vpop.permute.xlu1 %3886 }
 0x37a   : > { %9597 = vst [vmem:[#allocation52_spill] sm:$0xff] %v7986_v28  ;;  %v8010_v52 = vpop.permute.xlu0 %4423 }
 0x37b   : > { %9609 = vst [vmem:[#allocation64_spill] sm:$0xff] %v8010_v52 }
 0x37d   : > { %v7990_v0 = vpop.permute.xlu1 %3894 }
 0x37e   : > { %9599 = vst [vmem:[#allocation54_spill] sm:$0xff] %v7990_v0 }
 0x381   : > { %v7994_v7 = vpop.permute.xlu1 %3902 }
 0x382   : > { %9601 = vst [vmem:[#allocation56_spill] sm:$0xff] %v7994_v7 }
 0x385   : > { %v7996_v43 = vpop.permute.xlu1 %4399 }
 0x386   : > { %9602 = vst [vmem:[#allocation57_spill] sm:$0xff] %v7996_v43 }
 0x389   : > { %v8000_v38 = vpop.permute.xlu1 %4403 }
 0x38a   : > { %9604 = vst [vmem:[#allocation59_spill] sm:$0xff] %v8000_v38 }
 0x38d   : > { %v8004_v46 = vpop.permute.xlu1 %4411 }
 0x38e   : > { %9606 = vst [vmem:[#allocation61_spill] sm:$0xff] %v8004_v46 }
 0x391   : > { %v8008_v28 = vpop.permute.xlu1 %4419 }
 0x392   : > { %9608 = vst [vmem:[#allocation63_spill] sm:$0xff] %v8008_v28 }
 0x3cd   : > { %v2988_v37 = vpop.permute.xlu1 %2987  ;;  %v2994_v27 = vpop.permute.xlu0 %2993 }
 0x3ce   : > { %v3046_v23 = vcombine.low %v2988_v37, %v2994_v27 }
 0x3d0   : > { %v3054_v28 = vrot.slane %v3046_v23, %v6458_v11 }
 0x3d1   : > { %v2991_v0 = vpop.permute.xlu1 %2990  ;;  %v3000_v45 = vpop.permute.xlu0 %2999 }
 0x3d2   : > { %v3030_v43 = vcombine.low %v7918_v22, %v2991_v0  ;;  %v3031_v23 = vcombine.high %v7918_v22, %v2991_v0 }
 0x3d4   : > { %v3038_v4 = vrot.slane %v3030_v43, %v6458_v11  ;;  %v3045_v22 = vrot.slane %v3031_v23, %v6458_v11 }
 0x3d5   : > { %v2997_v9 = vpop.permute.xlu1 %2996  ;;  %v3006_v16 = vpop.permute.xlu0 %3005 }
 0x3d6   : > { %v3078_v38 = vcombine.low %v3000_v45, %v3006_v16  ;;  %v3094_v17 = vcombine.low %v3038_v4, %v3054_v28  ;;  %v3079_v21 = vcombine.high %v3000_v45, %v3006_v16 }
 0x3d8   : > { %v3086_v33 = vrot.slane %v3078_v38, %v6458_v11  ;;  %v3102_v43 = vrot.slane %v3094_v17, %v6618_v53  ;;  %v3095_v38 = vcombine.high %v3038_v4, %v3054_v28  ;;  %v3093_v28 = vrot.slane %v3079_v21, %v6458_v11 }
 0x3d9   : > { %v3003_v5 = vpop.permute.xlu1 %3002  ;;  %v8014_v46 = vpop.permute.xlu0 %3012 }
 0x3da   : > { %v3062_v14 = vcombine.low %v2997_v9, %v3003_v5  ;;  %v3063_v34 = vcombine.high %v2997_v9, %v3003_v5  ;;  %v3166_v52 = vcombine.low %v7936_v47, %v8014_v46 }
 0x3dc   : > { %v3070_v26 = vrot.slane %v3062_v14, %v6458_v11  ;;  %v3077_v20 = vrot.slane %v3063_v34, %v6458_v11  ;;  %v3174_v9 = vrot.slane %v3166_v52, %v6458_v11 }
 0x3dd   : > { %v8019_v41 = vpop.permute.xlu1 %3009  ;;  %v3019_v13 = vpop.permute.xlu0 %3018 }
 0x3de   : > { %v3126_v62 = vcombine.low %v3070_v26, %v3086_v33  ;;  %v3127_v58 = vcombine.high %v3070_v26, %v3086_v33  ;;  %v3143_v55 = vcombine.high %v3077_v20, %v3093_v28 }
 0x3e0   : > { %v3134_v32 = vrot.slane %v3126_v62, %v6618_v53  ;;  %v3047_v62 = vcombine.high %v2988_v37, %v2994_v27  ;;  %v3141_v26 = vrot.slane %v3127_v58, %v6618_v53 }
 0x3e1   : > { %v3016_v1 = vpop.permute.xlu1 %3015  ;;  %v3025_v14 = vpop.permute.xlu0 %3024 }
 0x3e2   : > { %v3158_v2 = vcombine.low %v3102_v43, %v3134_v32  ;;  %v3182_v40 = vcombine.low %v8019_v41, %v3016_v1  ;;  %v3159_v17 = vcombine.high %v3102_v43, %v3134_v32  ;;  %v3198_v5 = vcombine.low %v3019_v13, %v3025_v14 }
 0x3e3   : > { %v3061_v34 = vrot.slane %v3047_v62, %v6458_v11  ;;  %v3142_v32 = vcombine.low %v3077_v20, %v3093_v28  ;;  %v3183_v48 = vcombine.high %v8019_v41, %v3016_v1  ;;  %v3199_v7 = vcombine.high %v3019_v13, %v3025_v14 }
 0x3e4   : > { %3382 = vrot.lane.b32.xlu0 %v3158_v2, %s6073_s12  ;;  %v3190_v33 = vrot.slane %v3182_v40, %v6458_v11  ;;  %v3109_v2 = vrot.slane %v3095_v38, %v6618_v53  ;;  %v3206_v40 = vrot.slane %v3198_v5, %v6458_v11  ;;  %v3157_v20 = vrot.slane %v3143_v55, %v6618_v53 }
 0x3e5   : > { %v3022_v57 = vpop.permute.xlu1 %3021  ;;  %v3110_v37 = vcombine.low %v3045_v22, %v3061_v34  ;;  %v3150_v43 = vrot.slane %v3142_v32, %v6618_v53  ;;  %v3197_v1 = vrot.slane %v3183_v48, %v6458_v11  ;;  %v3213_v13 = vrot.slane %v3199_v7, %v6458_v11 }
 0x3e6   : > { %v3160_v27 = vcombine.low %v3109_v2, %v3141_v26  ;;  %v3230_v58 = vcombine.low %v3174_v9, %v3190_v33  ;;  %v3161_v4 = vcombine.high %v3109_v2, %v3141_v26  ;;  %v3111_v26 = vcombine.high %v3045_v22, %v3061_v34 }
 0x3e7   : > { %v3118_v38 = vrot.slane %v3110_v37, %v6618_v53  ;;  %v3167_v2 = vcombine.high %v7936_v47, %v8014_v46 }
 0x3e8   : > { %3386 = vrot.lane.b32.xlu0 %v3159_v17, %s6073_s12  ;;  %v3238_v23 = vrot.slane %v3230_v58, %v6618_v53  ;;  %v3125_v46 = vrot.slane %v3111_v26, %v6618_v53 }
 0x3e9   : > { %v3028_v45 = vpop.permute.xlu1 %3027  ;;  %v3181_v47 = vrot.slane %v3167_v2, %v6458_v11 }
 0x3ea   : > { %v3214_v0 = vcombine.low %v3022_v57, %v3028_v45  ;;  %v3215_v62 = vcombine.high %v3022_v57, %v3028_v45  ;;  %v3163_v45 = vcombine.high %v3118_v38, %v3150_v43  ;;  %v3164_v22 = vcombine.low %v3125_v46, %v3157_v20 }
 0x3eb   : > { %v3246_v28 = vcombine.low %v3181_v47, %v3197_v1  ;;  %v3165_v7 = vcombine.high %v3125_v46, %v3157_v20 }
 0x3ec   : > { %v3222_v16 = vrot.slane %v3214_v0, %v6458_v11  ;;  %3390 = vrot.lane.b32.xlu0 %v3160_v27, %s6073_s12  ;;  %v3162_v0 = vcombine.low %v3118_v38, %v3150_v43  ;;  %v3231_v27 = vcombine.high %v3174_v9, %v3190_v33  ;;  %v3229_v32 = vrot.slane %v3215_v62, %v6458_v11 }
 0x3ed   : > { %v3254_v9 = vrot.slane %v3246_v28, %v6618_v53 }
 0x3ee   : > { %v3262_v21 = vcombine.low %v3206_v40, %v3222_v16  ;;  %v3263_v17 = vcombine.high %v3206_v40, %v3222_v16  ;;  %v3245_v41 = vrot.slane %v3231_v27, %v6618_v53  ;;  %v3278_v14 = vcombine.low %v3213_v13, %v3229_v32 }
 0x3ef   : > { %v3279_v34 = vcombine.high %v3213_v13, %v3229_v32  ;;  %v3247_v16 = vcombine.high %v3181_v47, %v3197_v1 }
 0x3f0   : > { %v3270_v52 = vrot.slane %v3262_v21, %v6618_v53  ;;  %3394 = vrot.lane.b32.xlu0 %v3161_v4, %s6073_s12  ;;  %v3277_v57 = vrot.slane %v3263_v17, %v6618_v53  ;;  %v3286_v55 = vrot.slane %v3278_v14, %v6618_v53 }
 0x3f1   : > { %v3293_v21 = vrot.slane %v3279_v34, %v6618_v53  ;;  %v3261_v4 = vrot.slane %v3247_v16, %v6618_v53 }
 0x3f2   : > { %v3294_v5 = vcombine.low %v3238_v23, %v3270_v52  ;;  %v3295_v58 = vcombine.high %v3238_v23, %v3270_v52  ;;  %v3296_v33 = vcombine.low %v3245_v41, %v3277_v57  ;;  %v3297_v48 = vcombine.high %v3245_v41, %v3277_v57 }
 0x3f3   : > { %v3298_v40 = vcombine.low %v3254_v9, %v3286_v55  ;;  %v3299_v37 = vcombine.high %v3254_v9, %v3286_v55  ;;  %v3300_v43 = vcombine.low %v3261_v4, %v3293_v21  ;;  %v3301_v23 = vcombine.high %v3261_v4, %v3293_v21 }
 0x3f4   : > { %3384 = vrot.lane.b32.xlu1 %v3294_v5, %s6073_s12  ;;  %3398 = vrot.lane.b32.xlu0 %v3162_v0, %s6073_s12 }
 0x3f8   : > { %3388 = vrot.lane.b32.xlu1 %v3295_v58, %s6073_s12  ;;  %3402 = vrot.lane.b32.xlu0 %v3163_v45, %s6073_s12 }
 0x3fc   : > { %3392 = vrot.lane.b32.xlu1 %v3296_v33, %s6073_s12  ;;  %3406 = vrot.lane.b32.xlu0 %v3164_v22, %s6073_s12 }
 0x400   : > { %3396 = vrot.lane.b32.xlu1 %v3297_v48, %s6073_s12  ;;  %3410 = vrot.lane.b32.xlu0 %v3165_v7, %s6073_s12 }
 0x404   : > { %3400 = vrot.lane.b32.xlu1 %v3298_v40, %s6073_s12 }
 0x408   : > { %3404 = vrot.lane.b32.xlu1 %v3299_v37, %s6073_s12 }
 0x40c   : > { %3408 = vrot.lane.b32.xlu1 %v3300_v43, %s6073_s12 }
 0x410   : > { %3412 = vrot.lane.b32.xlu1 %v3301_v23, %s6073_s12  ;;  %s9610_s12 = smov 126  }
 0x456   : > { %v3383_v52 = vpop.permute.xlu0 %3382 }
 0x457   : > { %3430 = vst.msk [vmem:[#allocation3 + $0x1] sm:$0xff] %vm375_vm5, %v3383_v52 }
 0x45a   : > { %v3387_v38 = vpop.permute.xlu0 %3386 }
 0x45b   : > { %3432 = vst.msk [vmem:[#allocation3 + $0x19] sm:$0xff] %vm375_vm5, %v3387_v38 }
 0x45e   : > { %v3391_v62 = vpop.permute.xlu0 %3390  ;;  %v8074_v17 = vld [vmem:[#allocation3] sm:$0xff] }
 0x45f   : > { %3434 = vst.msk [vmem:[#allocation3 + $0x31] sm:$0xff] %vm375_vm5, %v3391_v62  ;;  %v3649_v5 = vmul.f32 %v7834_v39, %v8074_v17 }
 0x461   : > { %3681 = vrot.lane.b32.xlu1 %v3649_v5, %s6075_s20 }
 0x462   : > { %v3395_v0 = vpop.permute.xlu0 %3394  ;;  %v8080_v27 = vld [vmem:[#allocation3 + $0x18] sm:$0xff] }
 0x463   : > { %3436 = vst.msk [vmem:[#allocation3 + $0x49] sm:$0xff] %vm375_vm5, %v3395_v0  ;;  %v3651_v26 = vmul.f32 %v7850_v36, %v8080_v27 }
 0x465   : > { %3685 = vrot.lane.b32.xlu1 %v3651_v26, %s6075_s20 }
 0x466   : > { %v3385_v2 = vpop.permute.xlu1 %3384  ;;  %v3399_v32 = vpop.permute.xlu0 %3398  ;;  %v8087_v58 = vld [vmem:[#allocation3 + $0x30] sm:$0xff] }
 0x467   : > { %3431 = vst.msk [vmem:[#allocation3 + $0x9] sm:$0xff] %vm375_vm5, %v3385_v2  ;;  %3438 = vst.msk [vmem:[#allocation3 + $0x61] sm:$0xff] %vm375_vm5, %v3399_v32  ;;  %v3653_v57 = vmul.f32 %v7854_v61, %v8087_v58  ;;  %v3779_v2 = vmul.f32 %v7844_v15, %v8080_v27 }
 0x469   : > { %3689 = vrot.lane.b32.xlu1 %v3653_v57, %s6075_s20  ;;  %v3781_v57 = vmul.f32 %v7870_v24, %v8087_v58 }
 0x46a   : > { %v3389_v45 = vpop.permute.xlu1 %3388  ;;  %v3403_v20 = vpop.permute.xlu0 %3402  ;;  %v8094_v1 = vld [vmem:[#allocation3 + $0x48] sm:$0xff] }
 0x46b   : > { %3433 = vst.msk [vmem:[#allocation3 + $0x21] sm:$0xff] %vm375_vm5, %v3389_v45  ;;  %3440 = vst.msk [vmem:[#allocation3 + $0x79] sm:$0xff] %vm375_vm5, %v3403_v20  ;;  %v3655_v13 = vmul.f32 %v7838_v50, %v8094_v1  ;;  %v3783_v20 = vmul.f32 %v7874_v3, %v8094_v1 }
 0x46d   : > { %3693 = vrot.lane.b32.xlu1 %v3655_v13, %s6075_s20 }
 0x46e   : > { %v3393_v41 = vpop.permute.xlu1 %3392  ;;  %v8100_v46 = vld [vmem:[#allocation3 + $0x8] sm:$0xff]  ;;  %v3407_v47 = vpop.permute.xlu0 %3406  ;;  %v8105_v33 = vld [vmem:[#allocation3 + $0x60] sm:$0xff] }
 0x46f   : > { %3435 = vst.msk [vmem:[#allocation3 + $0x39] sm:$0xff] %vm375_vm5, %v3393_v41  ;;  %v3650_v14 = vmul.f32 %v7834_v39, %v8100_v46  ;;  %3442 = vst.msk [vmem:[#allocation3 + $0x91] sm:$0xff] %vm375_vm5, %v3407_v47  ;;  %v3657_v22 = vmul.f32 %v7858_v19, %v8105_v33  ;;  %v3785_v13 = vmul.f32 %v7846_v8, %v8105_v33 }
 0x471   : > { %3683 = vrot.lane.b32.xlu0 %v3650_v14, %s6075_s20  ;;  %3697 = vrot.lane.b32.xlu1 %v3657_v22, %s6075_s20  ;;  %v4059_v14 = vmul.f32 %v7852_v49, %v8100_v46 }
 0x472   : > { %v3397_v28 = vpop.permute.xlu1 %3396  ;;  %v8112_v48 = vld [vmem:[#allocation3 + $0x20] sm:$0xff]  ;;  %v3411_v55 = vpop.permute.xlu0 %3410  ;;  %v8117_v7 = vld [vmem:[#allocation3 + $0x78] sm:$0xff] }
 0x473   : > { %3437 = vst.msk [vmem:[#allocation3 + $0x51] sm:$0xff] %vm375_vm5, %v3397_v28  ;;  %v3652_v39 = vmul.f32 %v7850_v36, %v8112_v48  ;;  %3444 = vst.msk [vmem:[#allocation3 + $0xa9] sm:$0xff] %vm375_vm5, %v3411_v55  ;;  %v3659_v9 = vmul.f32 %v7840_v25, %v8117_v7  ;;  %v3787_v41 = vmul.f32 %v7878_v31, %v8117_v7 }
 0x474   : > { %v8209_v55 = vmul.f32 %v7886_v29, %v8112_v48 }
 0x475   : > { %3687 = vrot.lane.b32.xlu0 %v3652_v39, %s6075_s20  ;;  %3701 = vrot.lane.b32.xlu1 %v3659_v9, %s6075_s20 }
 0x476   : > { %v3401_v34 = vpop.permute.xlu1 %3400  ;;  %v8124_v40 = vld [vmem:[#allocation3 + $0x38] sm:$0xff]  ;;  %v8129_v36 = vld [vmem:[#allocation3 + $0x90] sm:$0xff] }
 0x477   : > { %3439 = vst.msk [vmem:[#allocation3 + $0x69] sm:$0xff] %vm375_vm5, %v3401_v34  ;;  %v3654_v16 = vmul.f32 %v7854_v61, %v8124_v40  ;;  %v3661_v37 = vmul.f32 %v7862_v63, %v8129_v36  ;;  %v3789_v47 = vmul.f32 %v7848_v60, %v8129_v36 }
 0x479   : > { %3691 = vrot.lane.b32.xlu0 %v3654_v16, %s6075_s20  ;;  %3705 = vrot.lane.b32.xlu1 %v3661_v37, %s6075_s20  ;;  %v4061_v16 = vmul.f32 %v7886_v29, %v8080_v27 }
 0x47a   : > { %v3405_v21 = vpop.permute.xlu1 %3404  ;;  %v8135_v4 = vld [vmem:[#allocation3 + $0x50] sm:$0xff]  ;;  %v8140_v23 = vld [vmem:[#allocation3 + $0xa8] sm:$0xff] }
 0x47b   : > { %3441 = vst.msk [vmem:[#allocation3 + $0x81] sm:$0xff] %vm375_vm5, %v3405_v21  ;;  %v3656_v43 = vmul.f32 %v7838_v50, %v8135_v4  ;;  %v3663_v61 = vmul.f32 %v7842_v35, %v8140_v23  ;;  %v3777_v50 = vmul.f32 %v7866_v51, %v8074_v17  ;;  %v3784_v22 = vmul.f32 %v7874_v3, %v8135_v4 }
 0x47c   : > { %v3791_v28 = vmul.f32 %v7882_v56, %v8140_v23  ;;  %v4112_v21 = vrot.slane %v8209_v55, 1 }
 0x47d   : > { %3695 = vrot.lane.b32.xlu0 %v3656_v43, %s6075_s20  ;;  %3709 = vrot.lane.b32.xlu1 %v3663_v61, %s6075_s20  ;;  %v8227_v43 = vmul.f32 %v7890_v59, %v8124_v40 }
 0x47e   : > { %v3409_v52 = vpop.permute.xlu1 %3408  ;;  %v8146_v38 = vld [vmem:[#allocation3 + $0x68] sm:$0xff] }
 0x47f   : > { %3443 = vst.msk [vmem:[#allocation3 + $0x99] sm:$0xff] %vm375_vm5, %v3409_v52  ;;  %v3658_v62 = vmul.f32 %v7858_v19, %v8146_v38  ;;  %v3786_v3 = vmul.f32 %v7846_v8, %v8146_v38 }
 0x481   : > { %3699 = vrot.lane.b32.xlu0 %v3658_v62, %s6075_s20  ;;  %3809 = vrot.lane.b32.xlu1 %v3777_v50, %s9610_s12  ;;  %v4111_v62 = vrot.slane %v4061_v16, 1  ;;  %v4064_v50 = vmul.f32 %v7890_v59, %v8087_v58  ;;  %v4073_v16 = vmul.f32 %v7860_v10, %v8117_v7 }
 0x482   : > { %v3413_v5 = vpop.permute.xlu1 %3412  ;;  %v8155_v0 = vld [vmem:[#allocation3 + $0x80] sm:$0xff] }
 0x483   : > { %3445 = vst.msk [vmem:[#allocation3 + $0xb1] sm:$0xff] %vm375_vm5, %v3413_v5  ;;  %v3660_v26 = vmul.f32 %v7840_v25, %v8155_v0  ;;  %v3788_v8 = vmul.f32 %v7878_v31, %v8155_v0  ;;  %vm5291_vm5 = vcmask 64512  }
 0x485   : > { %3703 = vrot.lane.b32.xlu0 %v3660_v26, %s6075_s20  ;;  %3813 = vrot.lane.b32.xlu1 %v3779_v2, %s9610_s12  ;;  %v4113_v26 = vsel %vm2125_vm6, %v4111_v62, %v4112_v21  ;;  %v4117_v2 = vrot.slane %v8227_v43, 1 }
 0x486   : > { %v8164_v19 = vld [vmem:[#allocation3 + $0x98] sm:$0xff] }
 0x487   : > { %v3662_v32 = vmul.f32 %v7862_v63, %v8164_v19  ;;  %v3778_v63 = vmul.f32 %v7866_v51, %v8100_v46  ;;  %v3782_v51 = vmul.f32 %v7870_v24, %v8124_v40  ;;  %v4107_v24 = vrot.slane %v4059_v14, 1 }
 0x489   : > { %3707 = vrot.lane.b32.xlu0 %v3662_v32, %s6075_s20  ;;  %3817 = vrot.lane.b32.xlu1 %v3781_v57, %s9610_s12  ;;  %v8242_v32 = vmul.f32 %v7856_v30, %v8135_v4  ;;  %v8244_v57 = vld [vmem:[#allocation3 + $0x10] sm:$0x3] }
 0x48a   : > { %v8172_v25 = vld [vmem:[#allocation3 + $0xb0] sm:$0xff]  ;;  %v8216_v34 = vld [vmem:[#allocation3 + $0xb8] sm:$0x3]  ;;  %9611 = vst [vmem:[#allocation65_spill] sm:$0xff] %v8244_v57 }
 0x48b   : > { %v3664_v45 = vmul.f32 %v7842_v35, %v8172_v25  ;;  %v3780_v35 = vmul.f32 %v7844_v15, %v8112_v48  ;;  %v4058_v15 = vmul.f32 %v7852_v49, %v8074_v17  ;;  %v8213_v39 = vmul.f32 %v7892_v44, %v8172_v25 }
 0x48c   : > { %v4602_v52 = vmul.f32 %v7892_v44, %v8216_v34 }
 0x48d   : > { %3711 = vrot.lane.b32.xlu0 %v3664_v45, %s6075_s20  ;;  %3821 = vrot.lane.b32.xlu1 %v3783_v20, %s9610_s12  ;;  %v4106_v9 = vrot.slane %v4058_v15, 1  ;;  %v9507_v61 = vrot.slane %v8213_v39, 2  ;;  %v3790_v45 = vmul.f32 %v7848_v60, %v8164_v19  ;;  %v4116_v20 = vrot.slane %v4064_v50, 1 }
 0x48e   : > { %v4665_v5 = vrot.slane %v4602_v52, 2  ;;  %v3792_v60 = vmul.f32 %v7882_v56, %v8172_v25  ;;  %v8289_v52 = vld [vmem:[#allocation3 + $0x58] sm:$0x3]  ;;  %v8296_v50 = vmul.f32 %v7898_v6, %v8164_v19 }
 0x48f   : > { %v4108_v37 = vsel %vm2125_vm6, %v4106_v9, %v4107_v24  ;;  %v8279_v9 = vmul.f32 %v7860_v10, %v8155_v0 }
 0x490   : > { %v8249_v31 = vsel %vm4474_vm2, %v9507_v61, %v4665_v5  ;;  %v4131_v5 = vrot.slane %v4073_v16, 1 }
 0x491   : > { %3811 = vrot.lane.b32.xlu0 %v3778_v63, %s9610_s12  ;;  %3825 = vrot.lane.b32.xlu1 %v3785_v13, %s9610_s12  ;;  %v4067_v63 = vmul.f32 %v7856_v30, %v8094_v1  ;;  %v4060_v13 = vmul.f32 %v7852_v49, %v8244_v57  ;;  %v4070_v49 = vmul.f32 %v7894_v54, %v8105_v33  ;;  %v4132_v62 = vrot.slane %v8279_v9, 1 }
 0x493   : > { %v4121_v14 = vrot.slane %v4067_v63, 1  ;;  %v4109_v15 = vrot.slane %v4060_v13, 1  ;;  %v4126_v56 = vrot.slane %v4070_v49, 1  ;;  %v4137_v63 = vrot.slane %v8296_v50, 1 }
 0x494   : > { %v8313_v13 = vmul.f32 %v7864_v18, %v8172_v25 }
 0x495   : > { %3815 = vrot.lane.b32.xlu0 %v3780_v35, %s9610_s12  ;;  %3829 = vrot.lane.b32.xlu1 %v3787_v41, %s9610_s12  ;;  %v4118_v35 = vsel %vm2125_vm6, %v4116_v20, %v4117_v2  ;;  %v4122_v41 = vrot.slane %v8242_v32, 1  ;;  %v4133_v20 = vsel %vm2125_vm6, %v4131_v5, %v4132_v62 }
 0x496   : > { %v4142_v9 = vrot.slane %v8313_v13, 1  ;;  %v8360_v13 = vld [vmem:[#allocation3 + $0xa0] sm:$0x3] }
 0x499   : > { %3819 = vrot.lane.b32.xlu0 %v3782_v51, %s9610_s12  ;;  %3833 = vrot.lane.b32.xlu1 %v3789_v47, %s9610_s12  ;;  %v8263_v51 = vmul.f32 %v7894_v54, %v8146_v38  ;;  %v8265_v47 = vld [vmem:[#allocation3 + $0x28] sm:$0x3] }
 0x49a   : > { %9612 = vst [vmem:[#allocation66_spill] sm:$0xff] %v8265_v47 }
 0x49b   : > { %v4127_v55 = vrot.slane %v8263_v51, 1 }
 0x49d   : > { %3823 = vrot.lane.b32.xlu0 %v3784_v22, %s9610_s12  ;;  %3837 = vrot.lane.b32.xlu1 %v3791_v28, %s9610_s12  ;;  %v4063_v22 = vmul.f32 %v7886_v29, %v8265_v47  ;;  %v4123_v28 = vsel %vm2125_vm6, %v4121_v14, %v4122_v41  ;;  %v4110_v29 = vsel %vm2125_vm6, %v4107_v24, %v4109_v15 }
 0x49e   : > { %v4076_v24 = vmul.f32 %v7898_v6, %v8129_v36  ;;  %v4786_v14 = vmul.f32 %v7962_v42, %v8216_v34 }
 0x4a0   : > { %v4849_v16 = vrot.slane %v4786_v14, 2 }
 0x4a1   : > { %3827 = vrot.lane.b32.xlu0 %v3786_v3, %s9610_s12  ;;  %4146 = vrot.lane.b32.xlu1 %v4108_v37, %s6075_s20  ;;  %v8281_v3 = vld [vmem:[#allocation3 + $0x40] sm:$0x3]  ;;  %v4114_v37 = vrot.slane %v4063_v22, 1  ;;  %v8328_v22 = vmul.f32 %v7902_v12, %v8100_v46 }
 0x4a2   : > { %v4066_v43 = vmul.f32 %v7890_v59, %v8281_v3  ;;  %v4069_v59 = vmul.f32 %v7856_v30, %v8289_v52  ;;  %v4136_v30 = vrot.slane %v4076_v24, 1 }
 0x4a3   : > { %v4115_v32 = vsel %vm2125_vm6, %v4112_v21, %v4114_v37  ;;  %v4079_v21 = vmul.f32 %v7864_v18, %v8140_v23 }
 0x4a4   : > { %v4124_v51 = vrot.slane %v4069_v59, 1 }
 0x4a5   : > { %3831 = vrot.lane.b32.xlu0 %v3788_v8, %s9610_s12  ;;  %4150 = vrot.lane.b32.xlu1 %v4113_v26, %s6075_s20  ;;  %v4128_v8 = vsel %vm2125_vm6, %v4126_v56, %v4127_v55  ;;  %v8305_v26 = vmul.f32 %v7962_v42, %v8172_v25  ;;  %v8333_v56 = vld [vmem:[#allocation3 + $0x88] sm:$0x3] }
 0x4a6   : > { %9613 = vst [vmem:[#allocation67_spill] sm:$0xff] %v8333_v56  ;;  %v4075_v24 = vmul.f32 %v7860_v10, %v8333_v56 }
 0x4a8   : > { %v4134_v14 = vrot.slane %v4075_v24, 1 }
 0x4a9   : > { %3835 = vrot.lane.b32.xlu0 %v3790_v45, %s9610_s12  ;;  %4154 = vrot.lane.b32.xlu1 %v4118_v35, %s6075_s20  ;;  %v4119_v45 = vrot.slane %v4066_v43, 1  ;;  %v8315_v35 = vld [vmem:[#allocation3 + $0x70] sm:$0x3]  ;;  %v4242_v43 = vmul.f32 %v7902_v12, %v8074_v17 }
 0x4aa   : > { %v4072_v15 = vmul.f32 %v7894_v54, %v8315_v35  ;;  %v4125_v54 = vsel %vm2125_vm6, %v4122_v41, %v4124_v51 }
 0x4ab   : > { %v4120_v49 = vsel %vm2125_vm6, %v4117_v2, %v4119_v45  ;;  %v4141_v2 = vrot.slane %v4079_v21, 1  ;;  %v9616_v45 = vld [vmem:[#allocation22_spill] sm:$0xff] }
 0x4ac   : > { %v4129_v50 = vrot.slane %v4072_v15, 1  ;;  %9617 = vst [vmem:[#allocation22_spill] sm:$0xff] %v8360_v13  ;;  %v4245_v51 = vmul.f32 %v9616_v45, %v8080_v27 }
 0x4ad   : > { %3839 = vrot.lane.b32.xlu0 %v3792_v60, %s9610_s12  ;;  %4158 = vrot.lane.b32.xlu1 %v4123_v28, %s6075_s20  ;;  %v9506_v60 = vrot.slane %v8305_v26, 2  ;;  %v4138_v28 = vsel %vm2125_vm6, %v4136_v30, %v4137_v63  ;;  %v4143_v41 = vsel %vm2125_vm6, %v4141_v2, %v4142_v9  ;;  %v4290_v30 = vrot.slane %v4242_v43, 1 }
 0x4ae   : > { %v4130_v21 = vsel %vm2125_vm6, %v4127_v55, %v4129_v50  ;;  %v4295_v55 = vrot.slane %v4245_v51, 1  ;;  %v4135_v2 = vsel %vm2125_vm6, %v4132_v62, %v4134_v14  ;;  %v4081_v50 = vmul.f32 %v7864_v18, %v8216_v34 }
 0x4af   : > { %v4244_v14 = vmul.f32 %v7902_v12, %v8244_v57 }
 0x4b1   : > { %4148 = vrot.lane.b32.xlu0 %v4110_v29, %s6075_s20  ;;  %4162 = vrot.lane.b32.xlu1 %v4128_v8, %s6075_s20  ;;  %v9614_v29 = vld [vmem:[#allocation56_spill] sm:$0xff]  ;;  %v8346_v8 = vsel %vm4474_vm2, %v9506_v60, %v4849_v16  ;;  %v9618_v16 = vld [vmem:[#allocation21_spill] sm:$0xff] }
 0x4b2   : > { %v8337_v37 = vmul.f32 %v9614_v29, %v8172_v25  ;;  %v3928_v59 = vmul.f32 %v9614_v29, %v8216_v34 }
 0x4b4   : > { %9615 = vst [vmem:[#allocation56_spill] sm:$0xff] %v8337_v37  ;;  %v9504_v5 = vrot.slane %v8337_v37, 1  ;;  %v3992_v10 = vrot.slane %v3928_v59, 1 }
 0x4b5   : > { %4152 = vrot.lane.b32.xlu0 %v4115_v32, %s6075_s20  ;;  %4166 = vrot.lane.b32.xlu1 %v4133_v20, %s6075_s20  ;;  %v4291_v32 = vrot.slane %v8328_v22, 1  ;;  %v8358_v20 = vmul.f32 %v9616_v45, %v8112_v48 }
 0x4b6   : > { %v8371_v15 = vsel %vm2125_vm6, %v9504_v5, %v3992_v10 }
 0x4b7   : > { %v4292_v22 = vsel %vm2125_vm6, %v4290_v30, %v4291_v32  ;;  %v9620_v30 = vld [vmem:[#allocation64_spill] sm:$0xff] }
 0x4b8   : > { %v8398_v51 = vmul.f32 %v9620_v30, %v8172_v25 }
 0x4b9   : > { %4156 = vrot.lane.b32.xlu0 %v4120_v49, %s6075_s20  ;;  %4170 = vrot.lane.b32.xlu1 %v4138_v28, %s6075_s20  ;;  %v4078_v49 = vmul.f32 %v7898_v6, %v8360_v13  ;;  %v4296_v28 = vrot.slane %v8358_v20, 1  ;;  %v4248_v6 = vmul.f32 %v9618_v16, %v8087_v58 }
 0x4ba   : > { %9621 = vst [vmem:[#allocation21_spill] sm:$0xff] %v8398_v51 }
 0x4bb   : > { %v4139_v43 = vrot.slane %v4078_v49, 1  ;;  %v4297_v24 = vsel %vm2125_vm6, %v4295_v55, %v4296_v28  ;;  %v4300_v10 = vrot.slane %v4248_v6, 1  ;;  %v9505_v6 = vrot.slane %v8398_v51, 2 }
 0x4bd   : > { %4160 = vrot.lane.b32.xlu0 %v4125_v54, %s6075_s20  ;;  %4174 = vrot.lane.b32.xlu1 %v4143_v41, %s6075_s20  ;;  %v8378_v54 = vmul.f32 %v9618_v16, %v8124_v40  ;;  %v9619_v41 = vld [vmem:[#allocation30_spill] sm:$0xff]  ;;  %v4140_v18 = vsel %vm2125_vm6, %v4137_v63, %v4139_v43  ;;  %v4449_v63 = vmul.f32 %v9620_v30, %v8216_v34 }
 0x4be   : > { %v8391_v20 = vmul.f32 %v9619_v41, %v8135_v4  ;;  %v4251_v62 = vmul.f32 %v9619_v41, %v8094_v1 }
 0x4bf   : > { %v4301_v59 = vrot.slane %v8378_v54, 1  ;;  %v9622_v54 = vld [vmem:[#allocation23_spill] sm:$0xff] }
 0x4c0   : > { %v8408_v55 = vmul.f32 %v9622_v54, %v8146_v38  ;;  %v4254_v12 = vmul.f32 %v9622_v54, %v8105_v33 }
 0x4c1   : > { %4164 = vrot.lane.b32.xlu0 %v4130_v21, %s6075_s20  ;;  %4330 = vrot.lane.b32.xlu1 %v4292_v22, %s9610_s12  ;;  %v4144_v21 = vrot.slane %v4081_v50, 1  ;;  %v4302_v49 = vsel %vm2125_vm6, %v4300_v10, %v4301_v59  ;;  %v4306_v22 = vrot.slane %v8391_v20, 1  ;;  %v4293_v50 = vrot.slane %v4244_v14, 1 }
 0x4c2   : > { %v4513_v20 = vrot.slane %v4449_v63, 2 }
 0x4c3   : > { %v4145_v43 = vsel %vm2125_vm6, %v4142_v9, %v4144_v21  ;;  %v4294_v21 = vsel %vm2125_vm6, %v4291_v32, %v4293_v50 }
 0x4c4   : > { %v8430_v9 = vsel %vm4474_vm2, %v9505_v6, %v4513_v20 }
 0x4c5   : > { %4168 = vrot.lane.b32.xlu0 %v4135_v2, %s6075_s20  ;;  %4334 = vrot.lane.b32.xlu1 %v4297_v24, %s9610_s12  ;;  %v4305_v2 = vrot.slane %v4251_v62, 1  ;;  %v4247_v24 = vmul.f32 %v9616_v45, %v8265_v47  ;;  %9624 = vst [vmem:[#allocation30_spill] sm:$0xff] %v8430_v9  ;;  %v4310_v62 = vrot.slane %v4254_v12, 1 }
 0x4c7   : > { %v4307_v10 = vsel %vm2125_vm6, %v4305_v2, %v4306_v22  ;;  %v4298_v14 = vrot.slane %v4247_v24, 1 }
 0x4c9   : > { %4172 = vrot.lane.b32.xlu0 %v4140_v18, %s6075_s20  ;;  %4338 = vrot.lane.b32.xlu1 %v4302_v49, %s9610_s12  ;;  %v4311_v18 = vrot.slane %v8408_v55, 1  ;;  %v9623_v49 = vld [vmem:[#allocation31_spill] sm:$0xff]  ;;  %v4250_v55 = vmul.f32 %v9618_v16, %v8281_v3  ;;  %v4299_v16 = vsel %vm2125_vm6, %v4296_v28, %v4298_v14 }
 0x4ca   : > { %v8424_v5 = vmul.f32 %v9623_v49, %v8155_v0  ;;  %v4257_v45 = vmul.f32 %v9623_v49, %v8117_v7 }
 0x4cb   : > { %v4312_v63 = vsel %vm2125_vm6, %v4310_v62, %v4311_v18  ;;  %v4303_v24 = vrot.slane %v4250_v55, 1 }
 0x4cc   : > { %v4316_v2 = vrot.slane %v8424_v5, 1  ;;  %v4315_v12 = vrot.slane %v4257_v45, 1 }
 0x4cd   : > { %4176 = vrot.lane.b32.xlu0 %v4145_v43, %s6075_s20  ;;  %4342 = vrot.lane.b32.xlu1 %v4307_v10, %s9610_s12  ;;  %v9625_v43 = vld [vmem:[#allocation28_spill] sm:$0xff]  ;;  %v4253_v10 = vmul.f32 %v9619_v41, %v8289_v52  ;;  %v4304_v41 = vsel %vm2125_vm6, %v4301_v59, %v4303_v24 }
 0x4ce   : > { %v8442_v20 = vmul.f32 %v9625_v43, %v8164_v19  ;;  %v4260_v32 = vmul.f32 %v9625_v43, %v8129_v36  ;;  %v4317_v5 = vsel %vm2125_vm6, %v4315_v12, %v4316_v2  ;;  %v4256_v12 = vmul.f32 %v9622_v54, %v8315_v35 }
 0x4cf   : > { %v4308_v55 = vrot.slane %v4253_v10, 1 }
 0x4d0   : > { %v4321_v62 = vrot.slane %v8442_v20, 1  ;;  %v4313_v10 = vrot.slane %v4256_v12, 1 }
 0x4d1   : > { %4332 = vrot.lane.b32.xlu0 %v4294_v21, %s9610_s12  ;;  %4346 = vrot.lane.b32.xlu1 %v4312_v63, %s9610_s12  ;;  %v9626_v21 = vld [vmem:[#allocation32_spill] sm:$0xff]  ;;  %v4320_v63 = vrot.slane %v4260_v32, 1  ;;  %v4309_v54 = vsel %vm2125_vm6, %v4306_v22, %v4308_v55 }
 0x4d2   : > { %v8457_v45 = vmul.f32 %v9626_v21, %v8172_v25  ;;  %v4263_v28 = vmul.f32 %v9626_v21, %v8140_v23 }
 0x4d3   : > { %v8447_v50 = vpop.permute.xlu1 %3681  ;;  %v4322_v20 = vsel %vm2125_vm6, %v4320_v63, %v4321_v62  ;;  %v4259_v63 = vmul.f32 %v9623_v49, %v8333_v56  ;;  %v4314_v49 = vsel %vm2125_vm6, %v4311_v18, %v4313_v10 }
 0x4d4   : > { %v4325_v6 = vrot.slane %v4263_v28, 1 }
 0x4d5   : > { %4336 = vrot.lane.b32.xlu0 %v4299_v16, %s9610_s12  ;;  %4350 = vrot.lane.b32.xlu1 %v4317_v5, %s9610_s12  ;;  %v4326_v16 = vrot.slane %v8457_v45, 1  ;;  %v9628_v5 = vld [vmem:[#allocation24_spill] sm:$0xff]  ;;  %v4318_v12 = vrot.slane %v4259_v63, 1 }
 0x4d6   : > { %v8472_v32 = vmul.f32 %v9628_v5, %v8100_v46  ;;  %v4579_v59 = vmul.f32 %v9628_v5, %v8074_v17 }
 0x4d7   : > { %v8462_v14 = vpop.permute.xlu1 %3685  ;;  %v4327_v45 = vsel %vm2125_vm6, %v4325_v6, %v4326_v16  ;;  %v4262_v6 = vmul.f32 %v9625_v43, %v8360_v13  ;;  %v4319_v43 = vsel %vm2125_vm6, %v4316_v2, %v4318_v12 }
 0x4d8   : > { %9627 = vst [vmem:[#allocation23_spill] sm:$0xff] %v8462_v14  ;;  %v4627_v60 = vrot.slane %v4579_v59, 2 }
 0x4d9   : > { %4340 = vrot.lane.b32.xlu0 %v4304_v41, %s9610_s12  ;;  %4354 = vrot.lane.b32.xlu1 %v4322_v20, %s9610_s12  ;;  %v4628_v41 = vrot.slane %v8472_v32, 2  ;;  %v9630_v20 = vld [vmem:[#allocation33_spill] sm:$0xff]  ;;  %v4323_v63 = vrot.slane %v4262_v6, 1 }
 0x4da   : > { %v8487_v28 = vmul.f32 %v9630_v20, %v8112_v48  ;;  %v4582_v22 = vmul.f32 %v9630_v20, %v8080_v27 }
 0x4db   : > { %v8477_v24 = vpop.permute.xlu1 %3689  ;;  %v4629_v32 = vsel %vm4474_vm2, %v4627_v60, %v4628_v41  ;;  %v4265_v60 = vmul.f32 %v9626_v21, %v8216_v34  ;;  %v4324_v34 = vsel %vm2125_vm6, %v4321_v62, %v4323_v63 }
 0x4dc   : > { %9629 = vst [vmem:[#allocation31_spill] sm:$0xff] %v8477_v24  ;;  %v4632_v53 = vrot.slane %v4582_v22, 2 }
 0x4dd   : > { %4344 = vrot.lane.b32.xlu0 %v4309_v54, %s9610_s12  ;;  %4358 = vrot.lane.b32.xlu1 %v4327_v45, %s9610_s12  ;;  %v4633_v54 = vrot.slane %v8487_v28, 2  ;;  %v9632_v45 = vld [vmem:[#allocation34_spill] sm:$0xff]  ;;  %v4328_v21 = vrot.slane %v4265_v60, 1 }
 0x4de   : > { %v8502_v59 = vmul.f32 %v9632_v45, %v8124_v40  ;;  %v4585_v18 = vmul.f32 %v9632_v45, %v8087_v58 }
 0x4df   : > { %v8492_v55 = vpop.permute.xlu1 %3693  ;;  %v4634_v28 = vsel %vm4474_vm2, %v4632_v53, %v4633_v54  ;;  %v4581_v53 = vmul.f32 %v9628_v5, %v8244_v57  ;;  %v4329_v5 = vsel %vm2125_vm6, %v4326_v16, %v4328_v21 }
 0x4e0   : > { %9631 = vst [vmem:[#allocation28_spill] sm:$0xff] %v8492_v55 }
 0x4e1   : > { %4348 = vrot.lane.b32.xlu0 %v4314_v49, %s9610_s12  ;;  %4667 = vrot.lane.b32.xlu1 %v4629_v32, %s6075_s20  ;;  %v4638_v49 = vrot.slane %v8502_v59, 2  ;;  %v9635_v32 = vld [vmem:[#allocation25_spill] sm:$0xff]  ;;  %v4630_v60 = vrot.slane %v4581_v53, 2 }
 0x4e2   : > { %v8519_v22 = vmul.f32 %v9635_v32, %v8135_v4  ;;  %v4588_v2 = vmul.f32 %v9635_v32, %v8094_v1 }
 0x4e3   : > { %v8505_v61 = vpop.permute.xlu0 %3683  ;;  %v8509_v10 = vpop.permute.xlu1 %3697 }
 0x4e4   : > { %9633 = vst [vmem:[#allocation32_spill] sm:$0xff] %v8505_v61  ;;  %9634 = vst [vmem:[#allocation24_spill] sm:$0xff] %v8509_v10  ;;  %v4637_v10 = vrot.slane %v4585_v18, 2  ;;  %v4643_v59 = vrot.slane %v8519_v22, 2  ;;  %v4642_v9 = vrot.slane %v4588_v2, 2  ;;  %v4600_v61 = vmul.f32 %v7892_v44, %v8140_v23 }
 0x4e5   : > { %4352 = vrot.lane.b32.xlu0 %v4319_v43, %s9610_s12  ;;  %4671 = vrot.lane.b32.xlu1 %v4634_v28, %s6075_s20  ;;  %v9638_v43 = vld [vmem:[#allocation35_spill] sm:$0xff] }
 0x4e6   : > { %v4639_v6 = vsel %vm4474_vm2, %v4637_v10, %v4638_v49  ;;  %v8536_v18 = vmul.f32 %v9638_v43, %v8146_v38  ;;  %v4591_v62 = vmul.f32 %v9638_v43, %v8105_v33  ;;  %v4584_v10 = vmul.f32 %v9630_v20, %v8265_v47 }
 0x4e7   : > { %v8522_v11 = vpop.permute.xlu0 %3687  ;;  %v8526_v12 = vpop.permute.xlu1 %3701  ;;  %v4644_v22 = vsel %vm4474_vm2, %v4642_v9, %v4643_v59  ;;  %v4631_v20 = vsel %vm4474_vm2, %v4628_v41, %v4630_v60  ;;  %v4587_v9 = vmul.f32 %v9632_v45, %v8281_v3  ;;  %v4662_v44 = vrot.slane %v4600_v61, 2  ;;  %v9645_v61 = vld [vmem:[#allocation27_spill] sm:$0xff] }
 0x4e8   : > { %9636 = vst [vmem:[#allocation33_spill] sm:$0xff] %v8522_v11  ;;  %9637 = vst [vmem:[#allocation34_spill] sm:$0xff] %v8526_v12  ;;  %v4647_v30 = vrot.slane %v4591_v62, 2  ;;  %v4635_v53 = vrot.slane %v4584_v10, 2 }
 0x4e9   : > { %4356 = vrot.lane.b32.xlu0 %v4324_v34, %s9610_s12  ;;  %4675 = vrot.lane.b32.xlu1 %v4639_v6, %s6075_s20  ;;  %v4648_v34 = vrot.slane %v8536_v18, 2  ;;  %v9639_v6 = vld [vmem:[#allocation26_spill] sm:$0xff]  ;;  %v4640_v10 = vrot.slane %v4587_v9, 2  ;;  %v9642_v9 = vld [vmem:[#allocation37_spill] sm:$0xff] }
 0x4ea   : > { %v8553_v2 = vmul.f32 %v9639_v6, %v8155_v0  ;;  %v4594_v16 = vmul.f32 %v9639_v6, %v8117_v7  ;;  %v4636_v45 = vsel %vm4474_vm2, %v4633_v54, %v4635_v53 }
 0x4eb   : > { %v8539_v28 = vpop.permute.xlu0 %3691  ;;  %v8543_v63 = vpop.permute.xlu1 %3705  ;;  %v4649_v18 = vsel %vm4474_vm2, %v4647_v30, %v4648_v34  ;;  %v4590_v30 = vmul.f32 %v9635_v32, %v8289_v52  ;;  %v4641_v54 = vsel %vm4474_vm2, %v4638_v49, %v4640_v10  ;;  %v4593_v32 = vmul.f32 %v9638_v43, %v8315_v35 }
 0x4ec   : > { %v4652_v11 = vrot.slane %v4594_v16, 2  ;;  %v4763_v49 = vmul.f32 %v9642_v9, %v8074_v17 }
 0x4ed   : > { %4360 = vrot.lane.b32.xlu0 %v4329_v5, %s9610_s12  ;;  %4679 = vrot.lane.b32.xlu1 %v4644_v22, %s6075_s20  ;;  %v4653_v5 = vrot.slane %v8553_v2, 2  ;;  %v9640_v22 = vld [vmem:[#allocation36_spill] sm:$0xff]  ;;  %v4645_v53 = vrot.slane %v4590_v30, 2  ;;  %v4650_v10 = vrot.slane %v4593_v32, 2  ;;  %v4596_v30 = vmul.f32 %v9639_v6, %v8333_v56 }
 0x4ee   : > { %v8570_v62 = vmul.f32 %v9640_v22, %v8164_v19  ;;  %v4597_v41 = vmul.f32 %v9640_v22, %v8129_v36  ;;  %v4766_v6 = vmul.f32 %v9645_v61, %v8080_v27 }
 0x4ef   : > { %v8556_v51 = vpop.permute.xlu0 %3695  ;;  %v8560_v21 = vpop.permute.xlu1 %3709  ;;  %v4654_v2 = vsel %vm4474_vm2, %v4652_v11, %v4653_v5  ;;  %v4646_v43 = vsel %vm4474_vm2, %v4643_v59, %v4645_v53  ;;  %v4811_v59 = vrot.slane %v4763_v49, 2  ;;  %v4655_v32 = vrot.slane %v4596_v30, 2 }
 0x4f1   : > { %4669 = vrot.lane.b32.xlu0 %v4631_v20, %s6075_s20  ;;  %4683 = vrot.lane.b32.xlu1 %v4649_v18, %s6075_s20  ;;  %v4658_v20 = vrot.slane %v8570_v62, 2  ;;  %v4657_v18 = vrot.slane %v4597_v41, 2  ;;  %v8599_v62 = vmul.f32 %v9642_v9, %v8100_v46 }
 0x4f3   : > { %v8573_v12 = vpop.permute.xlu0 %3699  ;;  %v8577_v60 = vpop.permute.xlu1 %3809  ;;  %v4659_v11 = vsel %vm4474_vm2, %v4657_v18, %v4658_v20 }
 0x4f5   : > { %4673 = vrot.lane.b32.xlu0 %v4636_v45, %s6075_s20  ;;  %4687 = vrot.lane.b32.xlu1 %v4654_v2, %s6075_s20  ;;  %v9644_v2 = vrot.slane %v8213_v39, 2  ;;  %v4651_v39 = vsel %vm4474_vm2, %v4648_v34, %v4650_v10 }
 0x4f7   : > { %v8586_v16 = vpop.permute.xlu0 %3703  ;;  %v8590_v55 = vpop.permute.xlu1 %3813  ;;  %v4664_v18 = vsel %vm4474_vm2, %v4662_v44, %v9644_v2 }
 0x4f8   : > { %9641 = vst [vmem:[#allocation25_spill] sm:$0xff] %v8590_v55 }
 0x4f9   : > { %4677 = vrot.lane.b32.xlu0 %v4641_v54, %s6075_s20  ;;  %4691 = vrot.lane.b32.xlu1 %v4659_v11, %s6075_s20  ;;  %v4812_v54 = vrot.slane %v8599_v62, 2  ;;  %v8618_v11 = vmul.f32 %v9645_v61, %v8112_v48  ;;  %v4599_v62 = vmul.f32 %v9640_v22, %v8360_v13  ;;  %v4656_v22 = vsel %vm4474_vm2, %v4653_v5, %v4655_v32 }
 0x4fb   : > { %v8602_v41 = vpop.permute.xlu0 %3707  ;;  %v8606_v45 = vpop.permute.xlu1 %3817  ;;  %v4813_v48 = vsel %vm4474_vm2, %v4811_v59, %v4812_v54  ;;  %v4817_v44 = vrot.slane %v8618_v11, 2  ;;  %v4660_v30 = vrot.slane %v4599_v62, 2  ;;  %v4765_v62 = vmul.f32 %v9642_v9, %v8244_v57 }
 0x4fc   : > { %9643 = vst [vmem:[#allocation35_spill] sm:$0xff] %v8606_v45 }
 0x4fd   : > { %4681 = vrot.lane.b32.xlu0 %v4646_v43, %s6075_s20  ;;  %4695 = vrot.lane.b32.xlu1 %v4664_v18, %s6075_s20  ;;  %v9647_v43 = vld [vmem:[#allocation38_spill] sm:$0xff]  ;;  %v4816_v18 = vrot.slane %v4766_v6, 2  ;;  %v4661_v32 = vsel %vm4474_vm2, %v4658_v20, %v4660_v30  ;;  %v4768_v30 = vmul.f32 %v9645_v61, %v8265_v47 }
 0x4fe   : > { %v8635_v49 = vmul.f32 %v9647_v43, %v8124_v40  ;;  %v4769_v34 = vmul.f32 %v9647_v43, %v8087_v58 }
 0x4ff   : > { %v8621_v45 = vpop.permute.xlu0 %3711  ;;  %v8625_v53 = vpop.permute.xlu1 %3821  ;;  %v4818_v11 = vsel %vm4474_vm2, %v4816_v18, %v4817_v44 }
 0x500   : > { %9646 = vst [vmem:[#allocation26_spill] sm:$0xff] %v8625_v53  ;;  %v9514_v59 = vrot.slane %v8635_v49, 2  ;;  %v4821_v58 = vrot.slane %v4769_v34, 2  ;;  %v9653_v34 = vld [vmem:[#allocation29_spill] sm:$0xff] }
 0x501   : > { %4685 = vrot.lane.b32.xlu0 %v4651_v39, %s6075_s20  ;;  %4851 = vrot.lane.b32.xlu1 %v4813_v48, %s9610_s12  ;;  %v9650_v39 = vld [vmem:[#allocation39_spill] sm:$0xff]  ;;  %v4775_v9 = vmul.f32 %v9653_v34, %v8105_v33 }
 0x502   : > { %v8650_v48 = vmul.f32 %v9650_v39, %v8135_v4  ;;  %v4823_v18 = vsel %vm4474_vm2, %v4821_v58, %v9514_v59  ;;  %v4814_v58 = vrot.slane %v4765_v62, 2  ;;  %v9654_v59 = vld [vmem:[#allocation40_spill] sm:$0xff] }
 0x503   : > { %v8638_v2 = vpop.permute.xlu0 %3811  ;;  %v8642_v10 = vpop.permute.xlu1 %3825  ;;  %v4778_v33 = vmul.f32 %v9654_v59, %v8117_v7  ;;  %v4831_v62 = vrot.slane %v4775_v9, 2 }
 0x504   : > { %9648 = vst [vmem:[#allocation36_spill] sm:$0xff] %v8638_v2  ;;  %9649 = vst [vmem:[#allocation37_spill] sm:$0xff] %v8642_v10  ;;  %v4772_v10 = vmul.f32 %v9650_v39, %v8094_v1  ;;  %v4815_v47 = vsel %vm4474_vm2, %v4812_v54, %v4814_v58  ;;  %v9659_v58 = vld [vmem:[#allocation47_spill] sm:$0xff] }
 0x505   : > { %4689 = vrot.lane.b32.xlu0 %v4656_v22, %s6075_s20  ;;  %4855 = vrot.lane.b32.xlu1 %v4818_v11, %s9610_s12  ;;  %v8669_v11 = vmul.f32 %v9653_v34, %v8146_v38  ;;  %v8682_v22 = vmul.f32 %v9654_v59, %v8155_v0 }
 0x506   : > { %v4826_v20 = vrot.slane %v4772_v10, 2 }
 0x507   : > { %v8653_v6 = vpop.permute.xlu0 %3815  ;;  %v8657_v5 = vpop.permute.xlu1 %3829  ;;  %v9657_v7 = vrot.slane %v8669_v11, 2  ;;  %v9661_v57 = vrot.slane %v8682_v22, 2 }
 0x508   : > { %9651 = vst [vmem:[#allocation27_spill] sm:$0xff] %v8653_v6  ;;  %9652 = vst [vmem:[#allocation38_spill] sm:$0xff] %v8657_v5  ;;  %v4819_v6 = vrot.slane %v4768_v30, 2  ;;  %v9658_v30 = vld [vmem:[#allocation54_spill] sm:$0xff] }
 0x509   : > { %4693 = vrot.lane.b32.xlu0 %v4661_v32, %s6075_s20  ;;  %4859 = vrot.lane.b32.xlu1 %v4823_v18, %s9610_s12  ;;  %v9655_v18 = vrot.slane %v8650_v48, 2  ;;  %v4833_v9 = vsel %vm4474_vm2, %v4831_v62, %v9657_v7  ;;  %v3922_v54 = vmul.f32 %v9658_v30, %v8333_v56 }
 0x50b   : > { %v8672_v1 = vpop.permute.xlu0 %3819  ;;  %v8678_v32 = vpop.permute.xlu1 %3833  ;;  %v4828_v10 = vsel %vm4474_vm2, %v4826_v20, %v9655_v18  ;;  %v4771_v20 = vmul.f32 %v9647_v43, %v8281_v3  ;;  %v9656_v18 = vld [vmem:[#allocation20_spill] sm:$0xff]  ;;  %v4836_v43 = vrot.slane %v4778_v33, 2  ;;  %v4774_v33 = vmul.f32 %v9650_v39, %v8289_v52 }
 0x50c   : > { %v8703_v5 = vmul.f32 %v9656_v18, %v8164_v19  ;;  %v4781_v62 = vmul.f32 %v9656_v18, %v8129_v36 }
 0x50d   : > { %4697 = vrot.lane.b32.xlu0 %v8249_v31, %s6075_s20  ;;  %4863 = vrot.lane.b32.xlu1 %v4828_v10, %s9610_s12  ;;  %v8711_v10 = vmul.f32 %v9658_v30, %v8155_v0  ;;  %v3596_v31 = vmul.f32 %v9659_v58, %v8155_v0  ;;  %v4838_v24 = vsel %vm4474_vm2, %v4836_v43, %v9661_v57  ;;  %v4824_v30 = vrot.slane %v4771_v20, 2  ;;  %v9663_v20 = vld [vmem:[#allocation46_spill] sm:$0xff] }
 0x50e   : > { %v3982_v58 = vrot.slane %v3922_v54, 1  ;;  %v3598_v43 = vmul.f32 %v9663_v20, %v8164_v19  ;;  %v9664_v54 = vrot.slane %v8635_v49, 2  ;;  %v4829_v37 = vrot.slane %v4774_v33, 2 }
 0x50f   : > { %v8693_v61 = vpop.permute.xlu0 %3823  ;;  %v8695_v2 = vpop.permute.xlu1 %3837  ;;  %v3740_v57 = vadd.f32 %v8586_v16, %v3596_v31  ;;  %v4777_v16 = vmul.f32 %v9653_v34, %v8315_v35  ;;  %v9667_v34 = vld [vmem:[#allocation49_spill] sm:$0xff] }
 0x510   : > { %v4825_v14 = vsel %vm4474_vm2, %v9664_v54, %v4824_v30  ;;  %v3742_v49 = vadd.f32 %v8602_v41, %v3598_v43  ;;  %v4780_v41 = vmul.f32 %v9654_v59, %v8333_v56 }
 0x511   : > { %4853 = vrot.lane.b32.xlu0 %v4815_v47, %s9610_s12  ;;  %4867 = vrot.lane.b32.xlu1 %v4833_v9, %s9610_s12  ;;  %v4820_v47 = vsel %vm4474_vm2, %v4817_v44, %v4819_v6  ;;  %v9662_v44 = vld [vmem:[#allocation55_spill] sm:$0xff]  ;;  %v4841_v9 = vrot.slane %v4781_v62, 2 }
 0x512   : > { %v8735_v6 = vmul.f32 %v9662_v44, %v8164_v19  ;;  %v9665_v19 = vrot.slane %v8703_v5, 2 }
 0x513   : > { %v8718_v53 = vpop.permute.xlu0 %3827  ;;  %v8723_v7 = vpop.permute.xlu1 %4146 }
 0x514   : > { %9660 = vst [vmem:[#allocation39_spill] sm:$0xff] %v8723_v7  ;;  %v3925_v7 = vmul.f32 %v9662_v44, %v8360_v13 }
 0x515   : > { %4857 = vrot.lane.b32.xlu0 %v4820_v47, %s9610_s12  ;;  %4871 = vrot.lane.b32.xlu1 %v4838_v24, %s9610_s12  ;;  %v4784_v47 = vmul.f32 %v7962_v42, %v8140_v23  ;;  %v4843_v24 = vsel %vm4474_vm2, %v4841_v9, %v9665_v19  ;;  %v9666_v42 = vrot.slane %v8711_v10, 1  ;;  %v9668_v19 = vrot.slane %v8650_v48, 2  ;;  %v9671_v48 = vld [vmem:[#allocation48_spill] sm:$0xff] }
 0x517   : > { %v3832_v39 = vpop.permute.xlu0 %3831  ;;  %v8745_v0 = vpop.permute.xlu1 %4150  ;;  %v3983_v62 = vsel %vm2125_vm6, %v9666_v42, %v3982_v58  ;;  %v4830_v31 = vsel %vm4474_vm2, %v9668_v19, %v4829_v37  ;;  %v4834_v58 = vrot.slane %v4777_v16, 2  ;;  %v9672_v16 = vld [vmem:[#allocation58_spill] sm:$0xff] }
 0x518   : > { %v3868_v55 = vadd.f32 %v3832_v39, %v3740_v57  ;;  %v3987_v57 = vrot.slane %v3925_v7, 1  ;;  %v4846_v39 = vrot.slane %v4784_v47, 2 }
 0x519   : > { %4861 = vrot.lane.b32.xlu0 %v4825_v14, %s9610_s12  ;;  %4875 = vrot.lane.b32.xlu1 %v4843_v24, %s9610_s12  ;;  %v3600_v14 = vmul.f32 %v9667_v34, %v8172_v25  ;;  %v9670_v25 = vrot.slane %v8735_v6, 1  ;;  %v8783_v24 = vmul.f32 %v9671_v48, %v8074_v17 }
 0x51a   : > { %v8762_v30 = vadd.f32 %v3983_v62, %v3868_v55  ;;  %v9669_v55 = vrot.slane %v8305_v26, 2  ;;  %v8790_v26 = vmul.f32 %v9672_v16, %v8074_v17  ;;  %v9674_v62 = vrot.slane %v8669_v11, 2  ;;  %v9677_v11 = vld [vmem:[#allocation41_spill] sm:$0xff] }
 0x51b   : > { %v3836_v33 = vpop.permute.xlu0 %3835  ;;  %v8766_v54 = vpop.permute.xlu1 %4154  ;;  %v3988_v43 = vsel %vm2125_vm6, %v9670_v25, %v3987_v57  ;;  %v3744_v47 = vadd.f32 %v8621_v45, %v3600_v14  ;;  %v4783_v14 = vmul.f32 %v9656_v18, %v8360_v13  ;;  %v3597_v25 = vmul.f32 %v9663_v20, %v8129_v36 }
 0x51c   : > { %v3870_v9 = vadd.f32 %v3836_v33, %v3742_v49  ;;  %v4848_v7 = vsel %vm4474_vm2, %v4846_v39, %v9669_v55  ;;  %v4835_v57 = vsel %vm4474_vm2, %v9674_v62, %v4834_v58  ;;  %v4839_v49 = vrot.slane %v4780_v41, 2  ;;  %v9675_v33 = vld [vmem:[#allocation43_spill] sm:$0xff]  ;;  %v9678_v58 = vld [vmem:[#allocation42_spill] sm:$0xff] }
 0x51d   : > { %4865 = vrot.lane.b32.xlu0 %v4830_v31, %s9610_s12  ;;  %4879 = vrot.lane.b32.xlu1 %v4848_v7, %s9610_s12  ;;  %v8795_v31 = vld [vmem:[%s9427_s6] sm:$0xff]  ;;  %v3585_v39 = vmul.f32 %v9675_v33, %v8074_v17  ;;  %v8815_v7 = vmul.f32 %v9677_v11, %v8080_v27  ;;  %v3590_v41 = vmul.f32 %v9678_v58, %v8124_v40  ;;  %v4844_v18 = vrot.slane %v4783_v14, 2 }
 0x51e   : > { %v8786_v37 = vadd.f32 %v3988_v43, %v3870_v9  ;;  %9673 = vst [vmem:[#allocation29_spill] sm:$0xff] %v8795_v31  ;;  %v9676_v9 = vld [vmem:[#allocation50_spill] sm:$0xff]  ;;  %v9679_v43 = vld [vmem:[#allocation51_spill] sm:$0xff] }
 0x51f   : > { %v3840_v59 = vpop.permute.xlu0 %3839  ;;  %v8797_v42 = vpop.permute.xlu1 %4158  ;;  %v8808_v19 = vmul.f32 %v9676_v9, %v8124_v40  ;;  %v3913_v55 = vmul.f32 %v9676_v9, %v8281_v3  ;;  %v8828_v3 = vmul.f32 %v9679_v43, %v8080_v27  ;;  %v3923_v27 = vmul.f32 %v9662_v44, %v8129_v36  ;;  %v9684_v44 = vld [vmem:[#allocation44_spill] sm:$0xff] }
 0x520   : > { %v3872_v45 = vadd.f32 %v3840_v59, %v3744_v47  ;;  %v9680_v47 = vld [vmem:[#allocation52_spill] sm:$0xff]  ;;  %v8857_v36 = vmul.f32 %v9671_v48, %v8100_v46  ;;  %v9686_v46 = vrot.slane %v8703_v5, 2 }
 0x521   : > { %4869 = vrot.lane.b32.xlu0 %v4835_v57, %s9610_s12  ;;  %5260 = vperm.xlu1 %5922, %v8795_v31   ;;  %v8832_v59 = vmul.f32 %v9680_v47, %v8135_v4  ;;  %v9681_v57 = vrot.slane %v8682_v22, 2  ;;  %v3741_v31 = vadd.f32 %v8543_v63, %v3597_v25  ;;  %v3965_v13 = vrot.slane %v8808_v19, 1  ;;  %v9682_v22 = vld [vmem:[#allocation45_spill] sm:$0xff] }
 0x522   : > { %v8821_v17 = vadd.f32 %v8371_v15, %v3872_v45  ;;  %v3734_v15 = vadd.f32 %v8539_v28, %v3590_v41  ;;  %v3967_v56 = vrot.slane %v3913_v55, 1  ;;  %v3916_v28 = vmul.f32 %v9680_v47, %v8289_v52 }
 0x523   : > { %v8834_v62 = vpop.permute.xlu0 %4148  ;;  %v8838_v45 = vpop.permute.xlu1 %4162  ;;  %v4840_v20 = vsel %vm4474_vm2, %v9681_v57, %v4839_v49  ;;  %v3599_v41 = vmul.f32 %v9667_v34, %v8140_v23  ;;  %v3592_v49 = vmul.f32 %v9682_v22, %v8135_v4  ;;  %v9683_v63 = vmov 0   ;;  %v9685_v34 = vld [vmem:[#allocation53_spill] sm:$0xff] }
 0x524   : > { %v3862_v14 = vadd.f32 %v8672_v1, %v3734_v15  ;;  %v3594_v55 = vmul.f32 %v9684_v44, %v8146_v38  ;;  %v3869_v25 = vadd.f32 %v8678_v32, %v3741_v31  ;;  %v8866_v57 = vmul.f32 %v9685_v34, %v8146_v38 }
 0x525   : > { %4873 = vrot.lane.b32.xlu0 %v4840_v20, %s9610_s12  ;;  %5923 = vset.pattern.permute.xlu1 %v9683_v63  ;;  %v3736_v1 = vadd.f32 %v8556_v51, %v3592_v49  ;;  %v4845_v20 = vsel %vm4474_vm2, %v9686_v46, %v4844_v18  ;;  %v3984_v40 = vrot.slane %v3923_v27, 1  ;;  %v3926_v32 = vmul.f32 %v9614_v29, %v8140_v23  ;;  %v8892_v49 = vld [vmem:[#allocation3 + $0x20] sm:$0xff] }
 0x526   : > { %v3743_v31 = vadd.f32 %v8560_v21, %v3599_v41  ;;  %v3968_v38 = vsel %vm2125_vm6, %v3965_v13, %v3967_v56  ;;  %v3972_v52 = vrot.slane %v3916_v28, 1  ;;  %v3919_v51 = vmul.f32 %v9685_v34, %v8315_v35 }
 0x527   : > { %v8868_v4 = vpop.permute.xlu0 %4152  ;;  %v8871_v15 = vpop.permute.xlu1 %4166  ;;  %v3864_v5 = vadd.f32 %v8693_v61, %v3736_v1  ;;  %v3955_v18 = vrot.slane %v8857_v36, 1  ;;  %v9687_v27 = vrot.slane %v8735_v6, 1  ;;  %v4015_v29 = vadd.f32 %v3968_v38, %v3862_v14 }
 0x528   : > { %v3729_v21 = vadd.f32 %v8447_v50, %v3585_v39  ;;  %v3871_v41 = vadd.f32 %v8695_v2, %v3743_v31  ;;  %v8896_v56 = vmul.f32 %v8892_v49, %v9679_v43  ;;  %v3738_v61 = vadd.f32 %v8573_v12, %v3594_v55  ;;  %v9689_v55 = vld [vmem:[#allocation56_spill] sm:$0xff] }
 0x529   : > { %4877 = vrot.lane.b32.xlu0 %v4845_v20, %s9610_s12  ;;  %v3986_v23 = vsel %vm2125_vm6, %v3984_v40, %v9687_v27  ;;  %v9522_v1 = vrot.slane %v8866_v57, 1  ;;  %v3989_v40 = vrot.slane %v3926_v32, 1  ;;  %v9688_v2 = vrot.slane %v8832_v59, 1  ;;  %v5952_v32 = vld [vmem:[#allocation3 + $0x8] sm:$0xff]  ;;  %v9691_v27 = vld [vmem:[#allocation23_spill] sm:$0xff] }
 0x52a   : > { %v4022_v35 = vadd.f32 %v3986_v23, %v3869_v25  ;;  %v3857_v50 = vadd.f32 %v8577_v60, %v3729_v21  ;;  %v3977_v25 = vrot.slane %v3919_v51, 1  ;;  %v3866_v12 = vadd.f32 %v8718_v53, %v3738_v61  ;;  %v9692_v51 = vld [vmem:[#allocation57_spill] sm:$0xff]  ;;  %v5954_v53 = vld [vmem:[#allocation3 + $0x30] sm:$0xff] }
 0x52b   : > { %v4157_v28 = vpop.permute.xlu0 %4156  ;;  %v4171_v6 = vpop.permute.xlu1 %4170  ;;  %v3973_v14 = vsel %vm2125_vm6, %v9688_v2, %v3972_v52  ;;  %v9690_v20 = vrot.slane %v9689_v55, 1  ;;  %v8915_v60 = vmul.f32 %v5952_v32, %v9672_v16  ;;  %v3731_v23 = vadd.f32 %v9691_v27, %v8815_v7  ;;  %v5953_v52 = vld [vmem:[#allocation3 + $0x18] sm:$0xff] }
 0x52c   : > { %v8900_v46 = vadd.f32 %v4157_v28, %v4015_v29  ;;  %v8903_v39 = vadd.f32 %v4171_v6, %v4022_v35  ;;  %v4017_v38 = vadd.f32 %v3973_v14, %v3864_v5  ;;  %v4429_v35 = vmul.f32 %v5953_v52, %v9692_v51  ;;  %v9697_v52 = vld [vmem:[#allocation59_spill] sm:$0xff] }
 0x52d   : > { %4881 = vrot.lane.b32.xlu0 %v8346_v8, %s9610_s12  ;;  %v3991_v31 = vsel %vm2125_vm6, %v3989_v40, %v9690_v20  ;;  %v3959_v8 = vrot.slane %v8828_v3, 1  ;;  %v3589_v28 = vmul.f32 %v5954_v53, %v9678_v58  ;;  %v9693_v5 = vrot.slane %v8783_v24, 1  ;;  %v9694_v3 = vld [vmem:[#allocation25_spill] sm:$0xff] }
 0x52e   : > { %v4024_v29 = vadd.f32 %v3991_v31, %v3871_v41  ;;  %v3960_v6 = vrot.slane %v8896_v56, 1  ;;  %v3859_v41 = vadd.f32 %v9694_v3, %v3731_v23  ;;  %v3978_v58 = vsel %vm2125_vm6, %v9522_v1, %v3977_v25 }
 0x52f   : > { %v4161_v21 = vpop.permute.xlu0 %4160  ;;  %v3956_v61 = vsel %vm2125_vm6, %v9693_v5, %v3955_v18  ;;  %v4175_v40 = vpop.permute.xlu1 %4174  ;;  %v3911_v55 = vmul.f32 %v5954_v53, %v9676_v9  ;;  %v4019_v20 = vadd.f32 %v3978_v58, %v3866_v12  ;;  %v4476_v24 = vrot.slane %v8915_v60, 2  ;;  %v9698_v58 = vld [vmem:[#allocation35_spill] sm:$0xff] }
 0x530   : > { %v8928_v7 = vadd.f32 %v4161_v21, %v4017_v38  ;;  %v4010_v2 = vadd.f32 %v3956_v61, %v3857_v50  ;;  %v8931_v14 = vadd.f32 %v4175_v40, %v4024_v29  ;;  %v8940_v31 = vmul.f32 %v8892_v49, %v9692_v51  ;;  %v9695_v38 = vld [vmem:[#allocation31_spill] sm:$0xff]  ;;  %v5955_v61 = vld [vmem:[#allocation3 + $0x48] sm:$0xff] }
 0x531   : > { %v3733_v27 = vadd.f32 %v9695_v38, %v3589_v28  ;;  %v9696_v21 = vld [vmem:[#allocation39_spill] sm:$0xff]  ;;  %v4480_v29 = vrot.slane %v4429_v35, 2  ;;  %v4432_v5 = vmul.f32 %v5954_v53, %v9697_v52  ;;  %v3591_v25 = vmul.f32 %v5955_v61, %v9682_v22 }
 0x532   : > { %v4194_v23 = vadd.f32 %v9696_v21, %v4010_v2  ;;  %v3961_v9 = vsel %vm2125_vm6, %v3959_v8, %v3960_v6  ;;  %v3914_v12 = vmul.f32 %v5955_v61, %v9680_v47  ;;  %v9699_v2 = vld [vmem:[#allocation65_spill] sm:$0xff]  ;;  %v3964_v53 = vrot.slane %v3911_v55, 1  ;;  %v5956_v47 = vld [vmem:[#allocation3 + $0x38] sm:$0xff] }
 0x533   : > { %v4165_v50 = vpop.permute.xlu0 %4164  ;;  %v4331_v40 = vpop.permute.xlu1 %4330  ;;  %v3861_v28 = vadd.f32 %v9698_v58, %v3733_v27  ;;  %v4012_v38 = vadd.f32 %v3961_v9, %v3859_v41  ;;  %v3907_v35 = vmul.f32 %v9671_v48, %v9699_v2  ;;  %v9700_v22 = vrot.slane %v8790_v26, 2 }
 0x534   : > { %v8950_v3 = vadd.f32 %v4165_v50, %v4019_v20  ;;  %v4378_v21 = vadd.f32 %v4331_v40, %v4194_v23  ;;  %v4481_v8 = vrot.slane %v8940_v31, 2  ;;  %v8962_v20 = vmul.f32 %v5956_v47, %v9697_v52  ;;  %v9701_v50 = vld [vmem:[#allocation28_spill] sm:$0xff] }
 0x535   : > { %v4477_v1 = vsel %vm4474_vm2, %v9700_v22, %v4476_v24  ;;  %v3735_v27 = vadd.f32 %v9701_v50, %v3591_v25  ;;  %v4196_v41 = vadd.f32 %v8745_v0, %v4012_v38  ;;  %v4485_v55 = vrot.slane %v4432_v5, 2  ;;  %v9702_v22 = vld [vmem:[#allocation26_spill] sm:$0xff]  ;;  %v9703_v38 = vld [vmem:[#allocation32_spill] sm:$0xff] }
 0x536   : > { %v8966_v48 = vadd.f32 %v4477_v1, %v4378_v21  ;;  %v3586_v23 = vmul.f32 %v5952_v32, %v9675_v33  ;;  %v3966_v26 = vsel %vm2125_vm6, %v3964_v53, %v3965_v13  ;;  %v3969_v40 = vrot.slane %v3914_v12, 1  ;;  %v5957_v32 = vld [vmem:[#allocation3 + $0x50] sm:$0xff]  ;;  %v9704_v13 = vld [vmem:[#allocation60_spill] sm:$0xff] }
 0x537   : > { %v4169_v9 = vpop.permute.xlu0 %4168  ;;  %v4335_v58 = vpop.permute.xlu1 %4334  ;;  %v3863_v47 = vadd.f32 %v9702_v22, %v3735_v27  ;;  %v4014_v25 = vadd.f32 %v3966_v26, %v3861_v28  ;;  %v3957_v50 = vrot.slane %v3907_v35, 1  ;;  %v4482_v33 = vsel %vm4474_vm2, %v4480_v29, %v4481_v8  ;;  %v9705_v12 = vld [vmem:[#allocation66_spill] sm:$0xff]  ;;  %v9706_v29 = vld [vmem:[#allocation36_spill] sm:$0xff] }
 0x538   : > { %v8973_v2 = vadd.f32 %v4169_v9, %v8762_v30  ;;  %v4380_v0 = vadd.f32 %v4335_v58, %v4196_v41  ;;  %v3730_v1 = vadd.f32 %v9703_v38, %v3586_v23  ;;  %v4486_v19 = vrot.slane %v8962_v20, 2  ;;  %v5958_v58 = vld [vmem:[#allocation3 + $0x78] sm:$0xff] }
 0x539   : > { %v8982_v5 = vmul.f32 %v5957_v32, %v9704_v13  ;;  %v4198_v30 = vadd.f32 %v8766_v54, %v4014_v25  ;;  %v3910_v21 = vmul.f32 %v9679_v43, %v9705_v12  ;;  %v4435_v53 = vmul.f32 %v5955_v61, %v9704_v13  ;;  %v9708_v43 = vld [vmem:[#allocation47_spill] sm:$0xff] }
 0x53a   : > { %v8987_v35 = vadd.f32 %v4482_v33, %v4380_v0  ;;  %v3588_v27 = vmul.f32 %v8892_v49, %v9677_v11  ;;  %v3858_v41 = vadd.f32 %v9706_v29, %v3730_v1  ;;  %v9707_v9 = vrot.slane %v8832_v59, 1  ;;  %v9709_v0 = vld [vmem:[#allocation54_spill] sm:$0xff]  ;;  %v9710_v33 = vld [vmem:[#allocation33_spill] sm:$0xff] }
 0x53b   : > { %v4173_v28 = vpop.permute.xlu0 %4172  ;;  %v4339_v26 = vpop.permute.xlu1 %4338  ;;  %v3595_v22 = vmul.f32 %v5958_v58, %v9708_v43  ;;  %v3920_v38 = vmul.f32 %v5958_v58, %v9709_v0  ;;  %v3958_v11 = vsel %vm2125_vm6, %v3955_v18, %v3957_v50  ;;  %v4487_v59 = vsel %vm4474_vm2, %v4485_v55, %v4486_v19  ;;  %v9711_v49 = vld [vmem:[#allocation34_spill] sm:$0xff] }
 0x53c   : > { %v3971_v23 = vsel %vm2125_vm6, %v3969_v40, %v9707_v9  ;;  %v8997_v54 = vadd.f32 %v4173_v28, %v8786_v37  ;;  %v4382_v61 = vadd.f32 %v4339_v26, %v4198_v30  ;;  %v3732_v32 = vadd.f32 %v9710_v33, %v3588_v27  ;;  %v9712_v30 = vld [vmem:[#allocation27_spill] sm:$0xff]  ;;  %v9713_v9 = vld [vmem:[#allocation38_spill] sm:$0xff] }
 0x53d   : > { %v4016_v25 = vadd.f32 %v3971_v23, %v3863_v47  ;;  %v9523_v37 = vrot.slane %v8982_v5, 2  ;;  %v3739_v40 = vadd.f32 %v9711_v49, %v3595_v22  ;;  %v3962_v47 = vrot.slane %v3910_v21, 1  ;;  %v5959_v21 = vld [vmem:[#allocation3 + $0x80] sm:$0xff]  ;;  %v9714_v22 = vld [vmem:[#allocation62_spill] sm:$0xff]  ;;  %v5960_v49 = vld [vmem:[#allocation3 + $0x98] sm:$0xff] }
 0x53e   : > { %v9011_v28 = vadd.f32 %v4487_v59, %v4382_v61  ;;  %v3860_v27 = vadd.f32 %v9712_v30, %v3732_v32  ;;  %v4011_v29 = vadd.f32 %v3958_v11, %v3858_v41  ;;  %v4490_v50 = vrot.slane %v4435_v53, 2 }
 0x53f   : > { %v4200_v1 = vadd.f32 %v8797_v42, %v4016_v25  ;;  %v4177_v12 = vpop.permute.xlu0 %4176  ;;  %v4343_v36 = vpop.permute.xlu1 %4342  ;;  %v3867_v55 = vadd.f32 %v9713_v9, %v3739_v40  ;;  %v3979_v43 = vrot.slane %v3920_v38, 1  ;;  %v4442_v25 = vmul.f32 %v5959_v21, %v9714_v22 }
 0x540   : > { %v9015_v18 = vadd.f32 %v4177_v12, %v8821_v17  ;;  %v4195_v26 = vadd.f32 %v8834_v62, %v4011_v29  ;;  %v4492_v42 = vsel %vm4474_vm2, %v4490_v50, %v9523_v37  ;;  %v3963_v41 = vsel %vm2125_vm6, %v3960_v6, %v3962_v47  ;;  %v9716_v6 = vld [vmem:[#allocation63_spill] sm:$0xff] }
 0x541   : > { %v4384_v23 = vadd.f32 %v4343_v36, %v4200_v1  ;;  %v9715_v53 = vrot.slane %v8711_v10, 1  ;;  %v4013_v62 = vadd.f32 %v3963_v41, %v3860_v27  ;;  %v4441_v32 = vmul.f32 %v5958_v58, %v9714_v22  ;;  %v5961_v27 = vld [vmem:[#allocation3 + $0x90] sm:$0xff] }
 0x542   : > { %v4501_v56 = vrot.slane %v4442_v25, 2  ;;  %v4445_v40 = vmul.f32 %v5960_v49, %v9716_v6  ;;  %v4444_v29 = vmul.f32 %v5961_v27, %v9716_v6 }
 0x543   : > { %v4333_v17 = vpop.permute.xlu0 %4332  ;;  %v9026_v0 = vadd.f32 %v4492_v42, %v4384_v23  ;;  %v3981_v61 = vsel %vm2125_vm6, %v3979_v43, %v9715_v53  ;;  %v9031_v38 = vpop.permute.xlu1 %4346  ;;  %v4197_v59 = vadd.f32 %v8868_v4, %v4013_v62  ;;  %v4500_v30 = vrot.slane %v4441_v32, 2  ;;  %v9717_v43 = vld [vmem:[#allocation64_spill] sm:$0xff] }
 0x544   : > { %v9033_v33 = vadd.f32 %v4333_v17, %v4195_v26  ;;  %v4020_v11 = vadd.f32 %v3981_v61, %v3867_v55  ;;  %v4506_v50 = vrot.slane %v4445_v40, 2  ;;  %v5962_v26 = vld [vmem:[#allocation3 + $0xa8] sm:$0xff] }
 0x545   : > { %v4502_v58 = vsel %vm4474_vm2, %v4500_v30, %v4501_v56  ;;  %v4447_v42 = vmul.f32 %v5962_v26, %v9717_v43 }
 0x546   : > { %v4204_v1 = vadd.f32 %v8871_v15, %v4020_v11  ;;  %v4505_v15 = vrot.slane %v4444_v29, 2 }
 0x547   : > { %v4337_v47 = vpop.permute.xlu0 %4336  ;;  %v4351_v10 = vpop.permute.xlu1 %4350  ;;  %v4510_v62 = vrot.slane %v4447_v42, 2 }
 0x548   : > { %v9039_v12 = vadd.f32 %v4337_v47, %v4197_v59  ;;  %v4388_v36 = vadd.f32 %v4351_v10, %v4204_v1  ;;  %v4507_v25 = vsel %vm4474_vm2, %v4505_v15, %v4506_v50  ;;  %v9719_v59 = vld [vmem:[#allocation21_spill] sm:$0xff] }
 0x549   : > { %v9720_v49 = vrot.slane %v9719_v59, 2 }
 0x54a   : > { %v9043_v4 = vadd.f32 %v4502_v58, %v4388_v36 }
 0x54b   : > { %v4341_v9 = vpop.permute.xlu0 %4340  ;;  %v4355_v55 = vpop.permute.xlu1 %4354  ;;  %v4512_v40 = vsel %vm4474_vm2, %v4510_v62, %v9720_v49  ;;  %v5963_v49 = vld [vmem:[#allocation3 + $0x60] sm:$0xff] }
 0x54c   : > { %v9046_v23 = vadd.f32 %v4341_v9, %v8900_v46  ;;  %v4390_v21 = vadd.f32 %v4355_v55, %v8903_v39  ;;  %v9718_v46 = vld [vmem:[#allocation67_spill] sm:$0xff] }
 0x54d   : > { %v4443_v11 = vmul.f32 %v9714_v22, %v9718_v46 }
 0x54e   : > { %v9051_v17 = vadd.f32 %v4507_v25, %v4390_v21  ;;  %v9722_v25 = vld [vmem:[#allocation30_spill] sm:$0xff] }
 0x54f   : > { %v4345_v41 = vpop.permute.xlu0 %4344  ;;  %v4359_v53 = vpop.permute.xlu1 %4358  ;;  %v4503_v30 = vrot.slane %v4443_v11, 2 }
 0x550   : > { %v9054_v61 = vadd.f32 %v4345_v41, %v8928_v7  ;;  %v4392_v32 = vadd.f32 %v4359_v53, %v8931_v14  ;;  %v9721_v7 = vld [vmem:[#allocation22_spill] sm:$0xff] }
 0x551   : > { %v4446_v27 = vmul.f32 %v9716_v6, %v9721_v7  ;;  %v4504_v22 = vsel %vm4474_vm2, %v4501_v56, %v4503_v30  ;;  %v9723_v7 = vld [vmem:[#allocation24_spill] sm:$0xff] }
 0x552   : > { %v9062_v1 = vadd.f32 %v4512_v40, %v4392_v32  ;;  %v3593_v40 = vmul.f32 %v5963_v49, %v9684_v44 }
 0x553   : > { %v4349_v39 = vpop.permute.xlu0 %4348  ;;  %v4668_v47 = vpop.permute.xlu1 %4667  ;;  %v4508_v58 = vrot.slane %v4446_v27, 2 }
 0x554   : > { %v9065_v10 = vadd.f32 %v4349_v39, %v8950_v3  ;;  %v3917_v39 = vmul.f32 %v5963_v49, %v9685_v34  ;;  %v3737_v27 = vadd.f32 %v9723_v7, %v3593_v40  ;;  %v5964_v34 = vld [vmem:[#allocation3 + $0x10] sm:$0x3]  ;;  %v5965_v40 = vld [vmem:[#allocation3 + $0x40] sm:$0x3] }
 0x555   : > { %v4509_v3 = vsel %vm4474_vm2, %v4506_v50, %v4508_v58  ;;  %v9724_v58 = vld [vmem:[#allocation37_spill] sm:$0xff]  ;;  %v4428_v37 = vmul.f32 %v5964_v34, %v9672_v16 }
 0x556   : > { %v5967_v16 = vld [vmem:[#allocation3 + $0x28] sm:$0x3] }
 0x557   : > { %v4353_v29 = vpop.permute.xlu0 %4352  ;;  %v4672_v14 = vpop.permute.xlu1 %4671 }
 0x558   : > { %v4389_v36 = vadd.f32 %v4353_v29, %v8973_v2  ;;  %v4715_v29 = vadd.f32 %v4668_v47, %v8966_v48  ;;  %v4434_v48 = vmul.f32 %v5965_v40, %v9697_v52 }
 0x55a   : > { %v9071_v9 = vadd.f32 %v4504_v22, %v4389_v36 }
 0x55b   : > { %v4357_v55 = vpop.permute.xlu0 %4356  ;;  %v4676_v15 = vpop.permute.xlu1 %4675 }
 0x55c   : > { %v4391_v26 = vadd.f32 %v4357_v55, %v8997_v54  ;;  %v4719_v36 = vadd.f32 %v4676_v15, %v9011_v28  ;;  %v3865_v55 = vadd.f32 %v9724_v58, %v3737_v27  ;;  %v4717_v28 = vadd.f32 %v4672_v14, %v8987_v35  ;;  %v9726_v27 = vld [vmem:[#allocation61_spill] sm:$0xff] }
 0x55d   : > { %v4488_v14 = vrot.slane %v4434_v48, 2 }
 0x55e   : > { %v9075_v43 = vadd.f32 %v4509_v3, %v4391_v26  ;;  %v3974_v26 = vrot.slane %v3917_v39, 1 }
 0x55f   : > { %v4361_v42 = vpop.permute.xlu0 %4360  ;;  %v4680_v21 = vpop.permute.xlu1 %4679  ;;  %v4489_v48 = vsel %vm4474_vm2, %v4486_v19, %v4488_v14 }
 0x560   : > { %v4393_v6 = vadd.f32 %v4361_v42, %v9015_v18  ;;  %v4721_v47 = vadd.f32 %v4680_v21, %v9026_v0  ;;  %v4478_v0 = vrot.slane %v4428_v37, 2  ;;  %v5968_v21 = vld [vmem:[#allocation3 + $0x58] sm:$0x3]  ;;  %v4536_v19 = vadd.f32 %v4489_v48, %v9046_v23 }
 0x561   : > { %v9728_v23 = vrot.slane %v8982_v5, 2 }
 0x562   : > { %v9079_v41 = vadd.f32 %v9722_v25, %v4393_v6  ;;  %v9725_v25 = vrot.slane %v8866_v57, 1  ;;  %v5966_v57 = vld [vmem:[#allocation3 + $0x68] sm:$0xff]  ;;  %v4479_v37 = vsel %vm4474_vm2, %v4476_v24, %v4478_v0 }
 0x563   : > { %v9081_v2 = vpop.permute.xlu0 %4669  ;;  %v9083_v56 = vpop.permute.xlu1 %4683  ;;  %v4532_v20 = vadd.f32 %v4479_v37, %v9033_v33 }
 0x564   : > { %v3976_v44 = vsel %vm2125_vm6, %v3974_v26, %v9725_v25  ;;  %v4431_v26 = vmul.f32 %v5967_v16, %v9692_v51  ;;  %vm5354_vm6 = vcmask 1040384  }
 0x567   : > { %v9085_v53 = vpop.permute.xlu0 %4673  ;;  %v9087_v62 = vpop.permute.xlu1 %4687 }
 0x568   : > { %v4725_v5 = vadd.f32 %v9087_v62, %v9043_v4 }
 0x56b   : > { %v9089_v54 = vpop.permute.xlu0 %4677  ;;  %v9091_v50 = vpop.permute.xlu1 %4691 }
 0x56c   : > { %v4727_v33 = vadd.f32 %v9091_v50, %v9051_v17 }
 0x56f   : > { %v9093_v32 = vpop.permute.xlu0 %4681  ;;  %v9095_v46 = vpop.permute.xlu1 %4695 }
 0x573   : > { %v9097_v18 = vpop.permute.xlu0 %4685  ;;  %v4852_v11 = vpop.permute.xlu1 %4851 }
 0x574   : > { %v4899_v42 = vadd.f32 %v4852_v11, %v4715_v29  ;;  %v4018_v11 = vadd.f32 %v3976_v44, %v3865_v55  ;;  %v4438_v29 = vmul.f32 %v5963_v49, %v9726_v27 }
 0x576   : > { %v4202_v35 = vadd.f32 %v8838_v45, %v4018_v11  ;;  %v4495_v44 = vrot.slane %v4438_v29, 2 }
 0x577   : > { %v9099_v59 = vpop.permute.xlu0 %4689  ;;  %v4856_v30 = vpop.permute.xlu1 %4855 }
 0x578   : > { %v4901_v52 = vadd.f32 %v4856_v30, %v4717_v28  ;;  %v4386_v25 = vadd.f32 %v9031_v38, %v4202_v35  ;;  %v4483_v38 = vrot.slane %v4431_v26, 2  ;;  %v4716_v26 = vadd.f32 %v9081_v2, %v4532_v20 }
 0x57a   : > { %v4484_v35 = vsel %vm4474_vm2, %v4481_v8, %v4483_v38 }
 0x57b   : > { %v9106_v22 = vpop.permute.xlu0 %4693  ;;  %v4860_v3 = vpop.permute.xlu1 %4859 }
 0x57c   : > { %v4903_v6 = vadd.f32 %v4860_v3, %v4719_v36  ;;  %v9120_v36 = vmul.f32 %v5966_v57, %v9726_v27  ;;  %v9727_v57 = vld [vmem:[#allocation10_spill] sm:$0xff] }
 0x57e   : > { %v4915_v15 = vcombine.low %v4899_v42, %v4903_v6  ;;  %v4916_v7 = vcombine.high %v4899_v42, %v4903_v6  ;;  %v4437_v42 = vmul.f32 %v5968_v21, %v9704_v13  ;;  %v4496_v34 = vrot.slane %v9120_v36, 2 }
 0x57f   : > { %v9116_v39 = vpop.permute.xlu0 %4697  ;;  %v4864_v58 = vpop.permute.xlu1 %4863 }
 0x580   : > { %v4905_v3 = vadd.f32 %v4864_v58, %v4721_v47  ;;  %v9128_v51 = vrot.slane %v4915_v15, %v9727_v57  ;;  %v9131_v30 = vrot.slane %v4916_v7, %v9727_v57  ;;  %v4493_v28 = vrot.slane %v4437_v42, 2  ;;  %v5969_v58 = vld [vmem:[#allocation3 + $0x70] sm:$0x3] }
 0x581   : > { %v4497_v24 = vsel %vm4474_vm2, %v4495_v44, %v4496_v34  ;;  %v4440_v16 = vmul.f32 %v5969_v58, %v9726_v27  ;;  %v4534_v27 = vadd.f32 %v4484_v35, %v9039_v12  ;;  %v4729_v12 = vadd.f32 %v9095_v46, %v9062_v1 }
 0x582   : > { %v4931_v55 = vcombine.low %v4901_v52, %v4905_v3  ;;  %v4932_v6 = vcombine.high %v4901_v52, %v4905_v3  ;;  %v4539_v36 = vadd.f32 %v4497_v24, %v4386_v25  ;;  %v4720_v52 = vadd.f32 %v9089_v54, %v4536_v19 }
 0x583   : > { %v4854_v49 = vpop.permute.xlu0 %4853  ;;  %v4868_v40 = vpop.permute.xlu1 %4867  ;;  %v4494_v0 = vsel %vm4474_vm2, %v9728_v23, %v4493_v28  ;;  %v4718_v8 = vadd.f32 %v9085_v53, %v4534_v27  ;;  %v9729_v27 = vld [vmem:[#allocation19_spill] sm:$0xff] }
 0x584   : > { %v9134_v45 = vrot.slane %v4931_v55, %v9727_v57  ;;  %v9137_v13 = vrot.slane %v4932_v6, %v9727_v57  ;;  %v4723_v3 = vadd.f32 %v9083_v56, %v4539_v36  ;;  %v4538_v2 = vadd.f32 %v4494_v0, %v9054_v61 }
 0x585   : > { %v4900_v21 = vadd.f32 %v4854_v49, %v4716_v26  ;;  %v4498_v56 = vrot.slane %v4440_v16, 2 }
 0x586   : > { %v4979_v47 = vcombine.low %v9128_v51, %v9134_v45  ;;  %v4980_v15 = vcombine.high %v9128_v51, %v9134_v45  ;;  %v4995_v7 = vcombine.low %v9131_v30, %v9137_v13  ;;  %v4996_v60 = vcombine.high %v9131_v30, %v9137_v13 }
 0x587   : > { %v4858_v11 = vpop.permute.xlu0 %4857  ;;  %v4872_v29 = vpop.permute.xlu1 %4871  ;;  %v4907_v55 = vadd.f32 %v4868_v40, %v4723_v3  ;;  %v4722_v6 = vadd.f32 %v9093_v32, %v4538_v2  ;;  %v4499_v53 = vsel %vm4474_vm2, %v4496_v34, %v4498_v56  ;;  %v4730_v30 = vadd.f32 %v9116_v39, %v9079_v41 }
 0x588   : > { %v4902_v44 = vadd.f32 %v4858_v11, %v4718_v8  ;;  %v4909_v40 = vadd.f32 %v4872_v29, %v4725_v5  ;;  %v4540_v24 = vadd.f32 %v4499_v53, %v9065_v10  ;;  %v9199_v2 = vrot.slane %v4979_v47, %v9729_v27 }
 0x589   : > { %v5010_v51 = vrot.slane %v4996_v60, %v9729_v27 }
 0x58b   : > { %v4862_v14 = vpop.permute.xlu0 %4861  ;;  %v4876_v54 = vpop.permute.xlu1 %4875 }
 0x58c   : > { %v4904_v42 = vadd.f32 %v4862_v14, %v4720_v52  ;;  %v4911_v31 = vadd.f32 %v4876_v54, %v4727_v33  ;;  %v4724_v14 = vadd.f32 %v9097_v18, %v4540_v24  ;;  %v5003_v54 = vrot.slane %v4995_v7, %v9729_v27 }
 0x58e   : > { %v5051_v17 = vcombine.low %v4900_v21, %v4904_v42  ;;  %v5052_v50 = vcombine.high %v4900_v21, %v4904_v42  ;;  %v4947_v25 = vcombine.low %v4907_v55, %v4911_v31  ;;  %v4948_v61 = vcombine.high %v4907_v55, %v4911_v31 }
 0x58f   : > { %v4866_v49 = vpop.permute.xlu0 %4865  ;;  %v4880_v37 = vpop.permute.xlu1 %4879  ;;  %v4994_v21 = vrot.slane %v4980_v15, %v9729_v27  ;;  %v4728_v55 = vadd.f32 %v9106_v22, %v9075_v43  ;;  %v4726_v22 = vadd.f32 %v9099_v59, %v9071_v9 }
 0x590   : > { %v4906_v38 = vadd.f32 %v4866_v49, %v4722_v6  ;;  %v4913_v48 = vadd.f32 %v4880_v37, %v4729_v12  ;;  %v5059_v62 = vrot.slane %v5051_v17, %v9727_v57  ;;  %v9180_v1 = vrot.slane %v5052_v50, %v9727_v57 }
 0x591   : > { %v4955_v29 = vrot.slane %v4947_v25, %v9727_v57  ;;  %v4962_v34 = vrot.slane %v4948_v61, %v9727_v57 }
 0x592   : > { %v5067_v28 = vcombine.low %v4902_v44, %v4906_v38  ;;  %v5068_v32 = vcombine.high %v4902_v44, %v4906_v38  ;;  %v4963_v20 = vcombine.low %v4909_v40, %v4913_v48  ;;  %v4964_v19 = vcombine.high %v4909_v40, %v4913_v48 }
 0x593   : > { %v4870_v4 = vpop.permute.xlu0 %4869 }
 0x594   : > { %v5075_v46 = vrot.slane %v5067_v28, %v9727_v57  ;;  %v9184_v11 = vrot.slane %v5068_v32, %v9727_v57  ;;  %v4971_v36 = vrot.slane %v4963_v20, %v9727_v57  ;;  %v4978_v10 = vrot.slane %v4964_v19, %v9727_v57 }
 0x595   : > { %v4908_v45 = vadd.f32 %v4870_v4, %v4724_v14 }
 0x596   : > { %v5115_v58 = vcombine.low %v5059_v62, %v5075_v46  ;;  %v5116_v16 = vcombine.high %v5059_v62, %v5075_v46  ;;  %v5131_v26 = vcombine.low %v9180_v1, %v9184_v11  ;;  %v5132_v52 = vcombine.high %v9180_v1, %v9184_v11 }
 0x597   : > { %v5011_v3 = vcombine.low %v4955_v29, %v4971_v36  ;;  %v5012_v35 = vcombine.high %v4955_v29, %v4971_v36  ;;  %v5027_v33 = vcombine.low %v4962_v34, %v4978_v10  ;;  %v5028_v23 = vcombine.high %v4962_v34, %v4978_v10  ;;  %v4874_v0 = vpop.permute.xlu0 %4873 }
 0x598   : > { %v4910_v61 = vadd.f32 %v4874_v0, %v4726_v22  ;;  %v5123_v28 = vrot.slane %v5115_v58, %v9729_v27  ;;  %v5130_v32 = vrot.slane %v5116_v16, %v9729_v27  ;;  %v5139_v24 = vrot.slane %v5131_v26, %v9729_v27 }
 0x599   : > { %v9210_v42 = vrot.slane %v5011_v3, %v9729_v27  ;;  %v5026_v18 = vrot.slane %v5012_v35, %v9729_v27  ;;  %v5035_v56 = vrot.slane %v5027_v33, %v9729_v27  ;;  %v5042_v47 = vrot.slane %v5028_v23, %v9729_v27 }
 0x59a   : > { %v5146_v62 = vrot.slane %v5132_v52, %v9729_v27 }
 0x59b   : > { %v4878_v15 = vpop.permute.xlu0 %4877  ;;  %v5045_v7 = vcombine.low %v4994_v21, %v5026_v18  ;;  %v5044_v31 = vcombine.high %v9199_v2, %v9210_v42  ;;  %v5046_v8 = vcombine.high %v4994_v21, %v5026_v18  ;;  %v5047_v6 = vcombine.low %v5003_v54, %v5035_v56 }
 0x59c   : > { %v4912_v17 = vadd.f32 %v4878_v15, %v4728_v55  ;;  %v5048_v50 = vcombine.high %v5003_v54, %v5035_v56  ;;  %v5049_v5 = vcombine.low %v5010_v51, %v5042_v47  ;;  %v5050_v12 = vcombine.high %v5010_v51, %v5042_v47 }
 0x59d   : > { %5192 = vrot.lane.b32.xlu0 %v5045_v7, %s6080_s19  ;;  %5188 = vrot.lane.b32.xlu1 %v5044_v31, %s6079_s29  ;;  %v5043_v43 = vcombine.low %v9199_v2, %v9210_v42 }
 0x59e   : > { %v5083_v13 = vcombine.low %v4908_v45, %v4912_v17  ;;  %v5084_v60 = vcombine.high %v4908_v45, %v4912_v17 }
 0x59f   : > { %v4882_v25 = vpop.permute.xlu0 %4881 }
 0x5a0   : > { %v4914_v49 = vadd.f32 %v4882_v25, %v4730_v30  ;;  %v5091_v38 = vrot.slane %v5083_v13, %v9727_v57  ;;  %v5098_v40 = vrot.slane %v5084_v60, %v9727_v57  ;;  %v5261_v52 = vpop.permute.xlu1 %5260 }
 0x5a1   : > { %5196 = vrot.lane.b32.xlu0 %v5046_v8, %s6083_s8 }
 0x5a2   : > { %v5099_v44 = vcombine.low %v4910_v61, %v4914_v49  ;;  %v5100_v37 = vcombine.high %v4910_v61, %v4914_v49 }
 0x5a4   : > { %v5107_v48 = vrot.slane %v5099_v44, %v9727_v57  ;;  %v5114_v9 = vrot.slane %v5100_v37, %v9727_v57 }
 0x5a5   : > { %5200 = vrot.lane.b32.xlu0 %v5047_v6, %s6078_s23 }
 0x5a6   : > { %v5147_v41 = vcombine.low %v5091_v38, %v5107_v48  ;;  %v5148_v59 = vcombine.high %v5091_v38, %v5107_v48  ;;  %v5163_v39 = vcombine.low %v5098_v40, %v5114_v9  ;;  %v5164_v53 = vcombine.high %v5098_v40, %v5114_v9 }
 0x5a8   : > { %v5155_v20 = vrot.slane %v5147_v41, %v9729_v27  ;;  %v5162_v19 = vrot.slane %v5148_v59, %v9729_v27  ;;  %v5171_v4 = vrot.slane %v5163_v39, %v9729_v27  ;;  %v5178_v57 = vrot.slane %v5164_v53, %v9729_v27  ;;  %v5286_v59 = vld [vmem:[%s9427_s6] sm:$0x1] }
 0x5a9   : > { %5204 = vrot.lane.b32.xlu0 %v5048_v50, %s6081_s21  ;;  %v9730_v41 = vmov 0.0  }
 0x5aa   : > { %v5181_v1 = vcombine.low %v5130_v32, %v5162_v19  ;;  %v5180_v46 = vcombine.high %v5123_v28, %v5155_v20  ;;  %v5182_v11 = vcombine.high %v5130_v32, %v5162_v19  ;;  %v5183_v29 = vcombine.low %v5139_v24, %v5171_v4  ;;  %5820 = vmatprep.mubr.msk.bf16.mxu1 %vm6094_vm3, %v9730_v41 }
 0x5ab   : > { %v5184_v34 = vcombine.high %v5139_v24, %v5171_v4  ;;  %v5185_v36 = vcombine.low %v5146_v62, %v5178_v57  ;;  %v5186_v10 = vcombine.high %v5146_v62, %v5178_v57  ;;  %v5179_v58 = vcombine.low %v5123_v28, %v5155_v20  ;;  %5826 = vmatprep.mubr.msk.bf16.mxu0 %vm6094_vm3, %v9730_v41  ;;  %v5284_v24 = vld [vmem:[%s9424_s3] sm:$0x1]  ;;  %v9731_v20 = vld [vmem:[#allocation29_spill] sm:$0xff] }
 0x5ac   : > { %5220 = vrot.lane.b32.xlu1 %v5181_v1, %s6080_s19 }
 0x5ad   : > { %5216 = vrot.lane.b32.xlu0 %v5180_v46, %s6079_s29 }
 0x5b0   : > { %5224 = vrot.lane.b32.xlu1 %v5182_v11, %s6083_s8 }
 0x5b1   : > { %5208 = vrot.lane.b32.xlu0 %v5049_v5, %s6082_s9 }
 0x5b4   : > { %5228 = vrot.lane.b32.xlu1 %v5183_v29, %s6078_s23 }
 0x5b5   : > { %5212 = vrot.lane.b32.xlu0 %v5050_v12, %s6084_s11 }
 0x5b8   : > { %5232 = vrot.lane.b32.xlu1 %v5184_v34, %s6081_s21 }
 0x5bc   : > { %5236 = vrot.lane.b32.xlu1 %v5185_v36, %s6082_s9 }
 0x5c0   : > { %5240 = vrot.lane.b32.xlu1 %v5186_v10, %s6084_s11 }
 0x5c4   : > { %5288 = vrot.lane.b32.xlu1 %v5286_v59, %s6095_s17 }
 0x5c8   : > { %5348 = vrot.lane.b32.xlu1 %v9731_v20, %s6096_s18 }
 0x60f   : > { %v5193_v16 = vpop.permute.xlu0 %5192  ;;  %v5189_v35 = vpop.permute.xlu1 %5188 }
 0x610   : > { %v5243_v14 = vsel %vm609_vm8, %v5043_v43, %v5189_v35 }
 0x611   : > { %v5244_v21 = vsel %vm613_vm9, %v5243_v14, %v5193_v16 }
 0x613   : > { %v5197_v26 = vpop.permute.xlu0 %5196 }
 0x614   : > { %v5245_v42 = vsel %vm616_vm10, %v5244_v21, %v5197_v26 }
 0x617   : > { %v5201_v3 = vpop.permute.xlu0 %5200 }
 0x618   : > { %v5246_v18 = vsel %vm619_vm11, %v5245_v42, %v5201_v3  ;;  %v9732_v42 = vmov 2  }
 0x61b   : > { %v5205_v33 = vpop.permute.xlu0 %5204 }
 0x61c   : > { %v5247_v56 = vsel %vm622_vm12, %v5246_v18, %v5205_v33  ;;  %v5416_v18 = vld [vmem:[%s9427_s6] sm:$0xf] }
 0x61e   : > { %v5221_v23 = vpop.permute.xlu1 %5220 }
 0x61f   : > { %v5217_v0 = vpop.permute.xlu0 %5216 }
 0x620   : > { %v5250_v31 = vsel %vm609_vm8, %v5179_v58, %v5217_v0  ;;  %v5356_v58 = vsel %vm5354_vm6, 65535, %v9683_v63 }
 0x621   : > { %v5251_v8 = vsel %vm613_vm9, %v5250_v31, %v5221_v23  ;;  %v9738_v31 = vld [vmem:[#allocation15_spill] sm:$0xff] }
 0x622   : > { %v5225_v2 = vpop.permute.xlu1 %5224 }
 0x623   : > { %v5209_v54 = vpop.permute.xlu0 %5208  ;;  %v5252_v50 = vsel %vm616_vm10, %v5251_v8, %v5225_v2 }
 0x624   : > { %v5248_v55 = vsel %vm625_vm13, %v5247_v56, %v5209_v54  ;;  %v9733_v56 = vld [vmem:[#allocation13_spill] sm:$0xff] }
 0x626   : > { %v5229_v47 = vpop.permute.xlu1 %5228 }
 0x627   : > { %v5213_v51 = vpop.permute.xlu0 %5212  ;;  %v5253_v5 = vsel %vm619_vm11, %v5252_v50, %v5229_v47  ;;  %v9734_v47 = vld [vmem:[#allocation17_spill] sm:$0xff] }
 0x628   : > { %v5249_v45 = vsel %vm628_vm14, %v5248_v55, %v5213_v51  ;;  %v9735_v55 = vcombine.low %v9733_v56, %v9734_v47 }
 0x629   : > { %v5263_v15 = vadd.f32 %v5261_v52, %v5249_v45  ;;  %v9736_v45 = vcombine.high %v9733_v56, %v9734_v47 }
 0x62a   : > { %v5233_v7 = vpop.permute.xlu1 %5232  ;;  %v5512_v51 = vrot.slane %v9735_v55, %v9729_v27 }
 0x62b   : > { %v5799_v6 = vmul.f32 -1.442695, %v5263_v15  ;;  %v5254_v12 = vsel %vm622_vm12, %v5253_v5, %v5233_v7  ;;  %v9737_v7 = vld [vmem:[#allocation11_spill] sm:$0xff]  ;;  %v9740_v5 = vld [vmem:[#allocation12_spill] sm:$0xff] }
 0x62c   : > { %v9739_v8 = vcombine.low %v9737_v7, %v9738_v31 }
 0x62d   : > { %5935 = vpow2.f32 %v5799_v6 }
 0x62e   : > { %v5237_v17 = vpop.permute.xlu1 %5236  ;;  %v5580_v6 = vrot.slane %v9739_v8, %v9729_v27 }
 0x62f   : > { %v5255_v43 = vsel %vm625_vm13, %v5254_v12, %v5237_v17  ;;  %v5536_v17 = vcombine.high %v5512_v51, %v9730_v41  ;;  %v9741_v12 = vld [vmem:[#allocation16_spill] sm:$0xff] }
 0x632   : > { %v5241_v22 = vpop.permute.xlu1 %5240 }
 0x633   : > { %v5256_v30 = vsel %vm628_vm14, %v5255_v43, %v5241_v22  ;;  %v9742_v43 = vcombine.high %v9740_v5, %v9741_v12 }
 0x634   : > { %v5264_v13 = vadd.f32 %v5261_v52, %v5256_v30  ;;  %v5346_v52 = vld [vmem:[%s9425_s4] sm:$0xf]  ;;  %v5604_v30 = vcombine.high %v5580_v6, %v9730_v41 }
 0x635   : > { %v5603_v22 = vrot.slane %v9742_v43, %v9729_v27 }
 0x636   : > { %v5800_v60 = vmul.f32 -1.442695, %v5264_v13  ;;  %v5289_v19 = vpop.permute.xlu1 %5288 }
 0x637   : > { %v5936_v25 = vpop.eup %5935 }
 0x638   : > { %5937 = vpow2.f32 %v5800_v60  ;;  %v5271_v61 = vadd.f32 1.0, %v5936_v25  ;;  %v9743_v60 = vcombine.high %v9737_v7, %v9738_v31 }
 0x63a   : > { %5939 = vrcp.f32 %v5271_v61  ;;  %v5349_v3 = vpop.permute.xlu1 %5348  ;;  %v5587_v25 = vrot.slane %v9743_v60, %v9729_v27 }
 0x63c   : > { %v5605_v61 = vcombine.high %v5587_v25, %v9730_v41 }
 0x642   : > { %v5938_v49 = vpop.eup %5937 }
 0x643   : > { %v5272_v44 = vadd.f32 1.0, %v5938_v49  ;;  %v9744_v49 = vld [vmem:[#allocation14_spill] sm:$0xff] }
 0x644   : > { %v5940_v37 = vpop.eup %5939 }
 0x645   : > { %5941 = vrcp.f32 %v5272_v44  ;;  %v9269_v40 = vmul.f32 %v5940_v37, %v5263_v15  ;;  %v5519_v15 = vrot.slane %v9736_v45, %v9729_v27  ;;  %v9745_v44 = vld [vmem:[#allocation18_spill] sm:$0xff] }
 0x646   : > { %v9746_v37 = vcombine.low %v9744_v49, %v9745_v44 }
 0x647   : > { %v5537_v50 = vcombine.high %v5519_v15, %v9730_v41 }
 0x64f   : > { %v5942_v38 = vpop.eup %5941 }
 0x650   : > { %v9271_v48 = vmul.f32 %v5942_v38, %v5264_v13  ;;  %v5607_v13 = vcombine.high %v5603_v22, %v9730_v41  ;;  %v5528_v38 = vrot.slane %v9746_v37, %v9729_v27 }
 0x652   : > { %v5279_v9 = vadd.f32 %v9271_v48, %v9269_v40 }
 0x654   : > { %5280 = vadd.xlane.f32.xlu0 %v5279_v9  ;;  %v9747_v9 = vcombine.low %v9740_v5, %v9741_v12 }
 0x656   : > { %v5596_v59 = vrot.slane %v9747_v9, %v9729_v27 }
 0x66a   : > { %5617 = vrot.lane.b32.xlu0 %v5537_v50, %s6083_s8 }
 0x66e   : > { %5657 = vrot.lane.b32.xlu0 %v5603_v22, %s6082_s9 }
 0x672   : > { %5661 = vrot.lane.b32.xlu0 %v5607_v13, %s6084_s11 }
 0x6e1   : > { %v5281_v39 = vpop.xlane.xlu0 %5280 }
 0x6e2   : > { %v5283_v53 = vmul.f32 0.00390625, %v5281_v39  ;;  %v5538_v39 = vcombine.high %v5528_v38, %v9730_v41 }
 0x6e4   : > { %v5285_v28 = vpack.c.bf16 %v5283_v53, %v5283_v53  ;;  %v5606_v53 = vcombine.high %v5596_v59, %v9730_v41 }
 0x6e6   : > { %v5297_v32 = vsel %vm5295_vm4, %v5285_v28, 0  ;;  %v9748_v28 = vcombine.high %v9744_v49, %v9745_v44 }
 0x6e7   : > { %5819 = vmatpush3.bf16.msra.mxu1 %v5297_v32 }
 0x6e8   : > { %v5535_v32 = vrot.slane %v9748_v28, %v9729_v27  ;;  %v5415_v27 = vld [vmem:[%s9426_s5] sm:$0x3] }
 0x6ea   : > { %5821 = vmatmul.mubr.msk.bf16.vlgmr.msra.gmra.mrb[16].mxu1 %vm5291_vm5, %v5284_v24  ;;  %v5539_v24 = vcombine.high %v5535_v32, %v9730_v41 }
 0x6eb   : > { %5463 = vmatprep.mubr.bf16.mxu1 %v9683_v63 }
 0x7bd   : > { %v5333_v4 = vpop.f32.mrb[16].mxu1 }
 0x7be   : > { %v5334_v57 = vadd.f32 %v5333_v4, %v5289_v19  ;;  %v5822_v62 = vpop.f32.mrb[17].mxu1 }
 0x7bf   : > { %v5336_v1 = vpop.f32.mrb[18].mxu1 }
 0x7c0   : > { %v5802_v46 = vmul.f32 -1.442695, %v5334_v57  ;;  %v5823_v11 = vpop.f32.mrb[19].mxu1 }
 0x7c2   : > { %5943 = vpow2.f32 %v5802_v46 }
 0x7cc   : > { %v5944_v29 = vpop.eup %5943 }
 0x7cd   : > { %v5342_v34 = vadd.f32 1.0, %v5944_v29 }
 0x7cf   : > { %5945 = vrcp.f32 %v5342_v34 }
 0x7d9   : > { %v5946_v36 = vpop.eup %5945 }
 0x7da   : > { %v5345_v10 = vmul.f32 %v5946_v36, %v5334_v57 }
 0x7dc   : > { %v5347_v16 = vpack.c.bf16 %v5345_v10, %v5345_v10 }
 0x7de   : > { %v5358_v26 = vand.u32 %v5356_v58, %v5347_v16 }
 0x7e0   : > { %5825 = vmatpush3.bf16.msra.mxu0 %v5358_v26 }
 0x7e3   : > { %5827 = vmatmul.mubr.msk.bf16.vlgmr.msra.gmra.mrb[20].mxu0 %vm315_vm1, %v5346_v52 }
 0x8b6   : > { %v5394_v35 = vpop.f32.mrb[20].mxu0 }
 0x8b7   : > { %v5395_v33 = vadd.f32 %v5394_v35, %v5349_v3  ;;  %v5828_v23 = vpop.f32.mrb[21].mxu0  ;;  %v5618_v3 = vpop.permute.xlu0 %5617 }
 0x8b8   : > { %v5397_v0 = vpop.f32.mrb[22].mxu0 }
 0x8b9   : > { %v5804_v14 = vmul.f32 -1.442695, %v5395_v33  ;;  %v5829_v2 = vpop.f32.mrb[23].mxu0 }
 0x8bb   : > { %5947 = vpow2.f32 %v5804_v14 }
 0x8c5   : > { %v5948_v21 = vpop.eup %5947 }
 0x8c6   : > { %v5403_v54 = vadd.f32 1.0, %v5948_v21  ;;  %v5658_v21 = vpop.permute.xlu0 %5657 }
 0x8c8   : > { %5949 = vrcp.f32 %v5403_v54 }
 0x8ca   : > { %v5662_v47 = vpop.permute.xlu0 %5661 }
 0x8d2   : > { %v5950_v63 = vpop.eup %5949 }
 0x8d3   : > { %5408 = vperm.xlu1 %5923, %v5950_v63  }
 0x8d7   : > { %5924 = vset.pattern.permute.xlu1 %v9732_v42 }
 0x8d8   : > { %5419 = vperm.xlu1 %5924, %v5416_v18  }
 0x8dc   : > { %5609 = vrot.lane.b32.xlu1 %v5536_v17, %s6079_s29 }
 0x8e0   : > { %5637 = vrot.lane.b32.xlu1 %v5604_v30, %s6079_s29 }
 0x8e4   : > { %5613 = vrot.lane.b32.xlu1 %v5519_v15, %s6080_s19 }
 0x8e8   : > { %5641 = vrot.lane.b32.xlu1 %v5587_v25, %s6080_s19  ;;  %s5778_s19 = sshll.u32 %s6242_s16, 3 }
 0x8ec   : > { %5645 = vrot.lane.b32.xlu1 %v5605_v61, %s6083_s8 }
 0x8f0   : > { %5621 = vrot.lane.b32.xlu1 %v5528_v38, %s6078_s23 }
 0x8f4   : > { %5649 = vrot.lane.b32.xlu1 %v5596_v59, %s6078_s23 }
 0x8f8   : > { %5625 = vrot.lane.b32.xlu1 %v5538_v39, %s6081_s21 }
 0x8fc   : > { %5653 = vrot.lane.b32.xlu1 %v5606_v53, %s6081_s21  ;;  %s5813_s21 = sshll.u32 %s6159_s28, 7  ;;  %s6097_s28 = smov [#allocation7]  }
 0x8fd   : > { %s9377_s18 = scalar_lea.hbm %s9428_s7, %s5813_s21  ;;  %s6004_s17 = sshll.u32 %s6097_s28, 4  ;;  %s6005_s17 = int_to_ptr.vmem [resolvable:$false] %s6004_s17 }
 0x8fe   : > { %s6006_s12 = scalar_lea.vmem %s6005_s17, 256 }
 0x900   : > { %5629 = vrot.lane.b32.xlu1 %v5535_v32, %s6082_s9  ;;  %s296_s9 = scalar_lea.vmem [#allocation7], %s5778_s19 }
 0x901   : > { %s5700_s8 = sshll.u32 %s296_s9, 4  ;;  %s9379_s8 = int_to_ptr.vmem [resolvable:$true] %s5700_s8 }
 0x902   : > { %s6000_s22 = scalar_lea.vmem %s9379_s8, 128  ;;  %p6007_p8 = scmp.lt.s32.totalorder %s9379_s8, %s6005_s17 }
 0x903   : > { %p6001_p6 = scmp.ne.s32.totalorder %s9379_s8, %s6000_s22  ;;  %p6008_p10 = scmp.lt.s32.totalorder %s6006_s12, %s6000_s22 }
 0x904   : > { %5633 = vrot.lane.b32.xlu1 %v5539_v24, %s6084_s11 }
 0x905   : > { %p6002_p12 = pnand %p6001_p6, %p9749_p11  ;;  %p6009_p0 = por %p6008_p10, %p6007_p8 }
 0x907   : > { %p6003_p13 = pneg %p6002_p12 }
 0x909   : > { %p6010_p2 = pnand %p6009_p0, %p6003_p13 }
 0x952   : > { %v5409_v20 = vpop.permute.xlu1 %5408 }
 0x953   : > { %v5411_v19 = vmul.f32 %v5409_v20, %v9269_v40  ;;  %v5412_v4 = vmul.f32 %v5409_v20, %v9271_v48 }
 0x955   : > { %v5413_v57 = vpack.c.bf16 %v5411_v19, %v5411_v19  ;;  %v5414_v62 = vpack.c.bf16 %v5412_v4, %v5412_v4 }
 0x957   : > { %5805 = vmatprep.subr.msk.bf16.mxu1 %vm5295_vm4, %v5414_v62  ;;  %v5426_v1 = vsel %vm5295_vm4, %v5413_v57, 0  ;;  %v5420_v41 = vpop.permute.xlu1 %5419 }
 0x958   : > { %5432 = vmatpush1.bf16.msra.mxu1 %v5426_v1 }
 0x95b   : > { %5806 = vmatmul.mubr.msk.bf16.vlgmr.msra.gmra.mrb[20].mxu1 %vm5291_vm5, %v5415_v27  ;;  %v5610_v46 = vpop.permute.xlu1 %5609 }
 0x95c   : > { %v5664_v58 = vsel %vm609_vm8, %v5512_v51, %v5610_v46 }
 0x95f   : > { %v5638_v11 = vpop.permute.xlu1 %5637 }
 0x960   : > { %v5671_v16 = vsel %vm609_vm8, %v5580_v6, %v5638_v11 }
 0x963   : > { %v5614_v29 = vpop.permute.xlu1 %5613 }
 0x964   : > { %v5665_v26 = vsel %vm613_vm9, %v5664_v58, %v5614_v29 }
 0x965   : > { %v5666_v33 = vsel %vm616_vm10, %v5665_v26, %v5618_v3 }
 0x967   : > { %v5642_v40 = vpop.permute.xlu1 %5641 }
 0x968   : > { %v5672_v35 = vsel %vm613_vm9, %v5671_v16, %v5642_v40 }
 0x96b   : > { %v5646_v34 = vpop.permute.xlu1 %5645 }
 0x96c   : > { %v5673_v23 = vsel %vm616_vm10, %v5672_v35, %v5646_v34 }
 0x96f   : > { %v5622_v48 = vpop.permute.xlu1 %5621 }
 0x970   : > { %v5667_v0 = vsel %vm619_vm11, %v5666_v33, %v5622_v48 }
 0x973   : > { %v5650_v36 = vpop.permute.xlu1 %5649 }
 0x974   : > { %v5674_v2 = vsel %vm619_vm11, %v5673_v23, %v5650_v36 }
 0x977   : > { %v5626_v10 = vpop.permute.xlu1 %5625 }
 0x978   : > { %v5668_v54 = vsel %vm622_vm12, %v5667_v0, %v5626_v10 }
 0x97b   : > { %v5654_v52 = vpop.permute.xlu1 %5653 }
 0x97c   : > { %v5675_v63 = vsel %vm622_vm12, %v5674_v2, %v5654_v52 }
 0x97d   : > { %v5676_v56 = vsel %vm625_vm13, %v5675_v63, %v5658_v21 }
 0x97e   : > { %v5677_v8 = vsel %vm628_vm14, %v5676_v56, %v5662_v47 }
 0x97f   : > { %v5630_v14 = vpop.permute.xlu1 %5629 }
 0x980   : > { %v5669_v42 = vsel %vm625_vm13, %v5668_v54, %v5630_v14 }
 0x983   : > { %v5634_v18 = vpop.permute.xlu1 %5633 }
 0x984   : > { %v5670_v15 = vsel %vm628_vm14, %v5669_v42, %v5634_v18 }
 0xa2e   : > { %v5465_v55 = vpop.f32.mrb[20].mxu1 }
 0xa2f   : > { %v5466_v51 = vadd.f32 %v5465_v55, %v5420_v41  ;;  %v5467_v45 = vpop.f32.mrb[21].mxu1 }
 0xa30   : > { %v5468_v7 = vadd.f32 %v5467_v45, %v5420_v41  ;;  %v5469_v31 = vpop.f32.mrb[22].mxu1 }
 0xa31   : > { %v5678_v6 = vadd.f32 %v5670_v15, %v5466_v51  ;;  %v5470_v17 = vpop.f32.mrb[23].mxu1 }
 0xa32   : > { %v5679_v50 = vadd.f32 %v5677_v8, %v5468_v7 }
 0xa34   : > { %v5682_v5 = vcombine.low %v5678_v6, %v5679_v50 }
 0xa36   : > { %5684 = vst [vmem:[%s296_s9] sm:$0xff] %v5682_v5 }
 0xa37   : > { %6013 = shalt.err (!%p6010_p2)
}
 0xa38   : > { %s6014_s16 = scalar_lea.hbm %s9377_s18, 128  ;;  %s6018_s19 = scalar_lea.hbm %s9428_s7, 256 }
 0xa39   : > { %p6015_p4 = scmp.ne.s32.totalorder %s9377_s18, %s6014_s16  ;;  %p6019_p9 = scmp.lt.u32.totalorder %s9377_s18, %s9428_s7 }
 0xa3a   : > { %p6020_p1 = scmp.lt.u32.totalorder %s6018_s19, %s6014_s16  ;;  %p6022_p6 = scmp.lt.u32.totalorder %s6014_s16, %s9377_s18 }
 0xa3b   : > { %p6016_p5 = pnand %p6015_p4, %p9749_p11 }
 0xa3c   : > { %p6021_p3 = por %p6020_p1, %p6019_p9 }
 0xa3d   : > { %p6017_p7 = pneg %p6016_p5 }
 0xa3e   : > { %p6023_p12 = por %p6022_p6, %p6021_p3 }
 0xa40   : > { %p6024_p13 = pnand %p6023_p12, %p6017_p7 }
 0xa42   : > { %6027 = shalt.err (!%p6024_p13)
}
 0xa43   : > { %5832 = dma.vmem_to_hbm [thread:$0]  (%p9749_p11), %s9379_s8, 128, %s9377_s18, %s5686_s15  }
 0xa44 PF: > { %s5712_s11 = sand.u32 1, %s6054_s24   ;;  %p9750_p8 = scmp.ne.s32.totalorder %s9527_s14, 0 }
 0xa45   : > { %p9751_p10 = scmp.ge.s32.totalorder %s6066_s27, 2  ;;  %s5713_s20 = scalar_lea.sflag [#allocation6], %s5712_s11 }
 0xa47   : > { %p5839_p0 = pnand %p9751_p10, %p9750_p8 }
 0xa49   : > { %6049 = dma.done.wait (!%p5839_p0), %s5713_s20, 128  }
 0xa4a   : > { %6051 = vsyncadd (!%p5839_p0), %s5713_s20, 4294967168  ;;  %p20_p2 = scmp.ge.s32.totalorder %s6163_s30, 4   ;;  %s9752_s24 = smov %s6058_s25 }
 0xa4b   : > { %s9753_s25 = smov %s6062_s26  ;;  %s9754_s26 = smov %s6175_s10 }
 0xa4c   : > { %s9755_s27 = smov %s6163_s30  ;;  %22 = sbr.rel (!%p20_p2) target bundleno = 5 (0x5), region = 93 }
 0xa53   :  { %5718 = vsyncpa [#allocation5], 1 }
 0xa54   :  { %5720 = vsyncpa [#allocation5 + $0x1], 1 }
 0xa55   :  { %5721 = vsyncpa [#allocation6], 1 }
 0xa56   :  { %5723 = vsyncpa [#allocation6 + $0x1], 1 }

</bundles_post_ra>
